<compile_context>
chip_gen: v7x
topology: tpu7x:2x2x1
jax: 0.10.0
libtpu: 0.0.40
codegen_flags: <defaults>
</compile_context>

<pallas_src>
import functools

import jax
import jax.numpy as jnp
from jax.experimental import pallas as pl
from jax.experimental.pallas import tpu as pltpu


# ---------------------------------------------------------------------------
# Pallas kernel: full time recurrence of one AGCRN layer for one batch tile.
# ---------------------------------------------------------------------------
def _agcrn_layer_kernel(x_ref, h0_ref, supp_ref, e_ref, wg_ref, bg_ref,
                        wu_ref, bu_ref, out_ref, state_ref, *,
                        N, TB, din, H, K_all, D_emb, mm_dtype):
    f32 = jnp.float32
    Kp = K_all - 1                       # number of non-identity supports
    Cx, Cs = TB * din, TB * H
    J = K_all * (din + H)
    t = pl.program_id(1)

    @pl.when(t == 0)                     # new batch tile -> load initial state
    def _():
        state_ref[...] = h0_ref[...].astype(f32)

    x2 = x_ref[...].astype(f32)          # (N, TB*din)  node-major, lane=(b,c)
    s2 = state_ref[...]                  # (N, TB*H)    f32
    s3 = s2.reshape(N, TB, H)

    supports = supp_ref[...]             # ((K-1)*N, N) in mm_dtype

    def support_products(a2):
        # Identity support -> the input itself; ONE stacked MXU matmul covers
        # all remaining supports (Chebyshev + adaptive).
        ag = jnp.dot(supports, a2.astype(mm_dtype), preferred_element_type=f32)
        return [a2] + [ag[k * N:(k + 1) * N, :] for k in range(Kp)]

    # Fused support matmul over the [x | state] columns (shared by the gate
    # gconv; the candidate gconv only needs a fresh state half).
    xs_blocks = support_products(jnp.concatenate([x2, s2], axis=1))
    xg_x = jnp.concatenate([b[:, :Cx].reshape(N, TB, din) for b in xs_blocks],
                           axis=-1)                       # (N, TB, K*din)
    xg_s = jnp.concatenate([b[:, Cx:].reshape(N, TB, H) for b in xs_blocks],
                           axis=-1)                       # (N, TB, K*H)

    e_bc = e_ref[...].astype(f32)[:, None, :, None]       # (N, 1, D, 1)

    def gconv(xg_state, w_ref, b_ref, O):
        # Reassociated variable-weight graph conv:
        #   y[n,b,(d,o)] = sum_j xg[n,b,j] * Wpool[j,(d,o)]   (one MXU matmul)
        #   out[n,b,o]   = sum_d E[n,d] * y[n,b,d,o] + bias[n,o]   (VPU)
        xg = jnp.concatenate([xg_x, xg_state], axis=-1)    # (N, TB, J)
        y = jnp.dot(xg.reshape(N * TB, J).astype(mm_dtype), w_ref[...],
                    preferred_element_type=f32)            # (N*TB, D*O)
        y4 = y.reshape(N, TB, D_emb, O)
        out = jnp.sum(e_bc * y4, axis=2)                   # (N, TB, O)
        return out + b_ref[...].astype(f32)[:, None, :]

    # ----- GRU-style gating (f32) -----
    zr = jax.nn.sigmoid(gconv(xg_s, wg_ref, bg_ref, 2 * H))   # (N, TB, 2H)
    z, r = zr[..., :H], zr[..., H:]

    zs_blocks = support_products((z * s3).reshape(N, Cs))
    xg_zs = jnp.concatenate([b.reshape(N, TB, H) for b in zs_blocks], axis=-1)
    hc = jnp.tanh(gconv(xg_zs, wu_ref, bu_ref, H))             # (N, TB, H)

    h2 = (r * s3 + (1.0 - r) * hc).reshape(N, Cs)
    state_ref[...] = h2                   # carry to next timestep
    out_ref[...] = h2.astype(out_ref.dtype)


# ---------------------------------------------------------------------------
# Timestep-invariant precompute for one AGCRN layer.
# ---------------------------------------------------------------------------
def precompute_agcrn_constants(node_embeddings, lap, params, *, cheb_k, add_apt,
                               dim_in, mm_dtype=jnp.float32):
    E = node_embeddings.astype(jnp.float32)
    lap = lap.astype(jnp.float32)
    N, D = E.shape

    supports = [jnp.eye(N, dtype=jnp.float32), lap]
    for _ in range(2, cheb_k):
        supports.append(2.0 * lap @ supports[-1] - supports[-2])
    if add_apt:
        supports.append(jax.nn.softmax(jnp.maximum(E @ E.T, 0.0), axis=1))
    K = len(supports)
    # identity support handled implicitly inside the kernel -> stack the rest
    S = jnp.concatenate(supports[1:], axis=0).astype(mm_dtype)   # ((K-1)*N, N)

    def flatten_pool(w_pool):
        d, k, i, o = w_pool.shape
        assert k == K and d == D
        # Contraction axis J ordered [all K x-feature rows | all K state rows]
        wx = w_pool[:, :, :dim_in, :].transpose(1, 2, 0, 3)
        ws = w_pool[:, :, dim_in:, :].transpose(1, 2, 0, 3)
        return jnp.concatenate(
            [wx.reshape(k * dim_in, d * o), ws.reshape(k * (i - dim_in), d * o)],
            axis=0).astype(mm_dtype)                             # (J, D*O)

    return dict(
        S=S, E=E,
        wg=flatten_pool(params["gate_w"]),
        bg=E @ params["gate_b"].astype(jnp.float32),
        wu=flatten_pool(params["update_w"]),
        bu=E @ params["update_b"].astype(jnp.float32),
        K_all=K, D_emb=D, dim_in=dim_in, mm_dtype=mm_dtype)


def _pick_batch_tile(B, H):
    """Prefer lane-dense (TB*H >= 128) tiles; keep >= 2 batch tiles when possible."""
    divisors = [t for t in range(1, B + 1) if B % t == 0]
    dense = [t for t in divisors if t * H >= 128]
    for t in dense:
        if B // t >= 2:
            return t
    if dense:
        return dense[0]
    return B // 2 if (B % 2 == 0 and B >= 4) else B


def _vmem_limit_bytes(consts, N, TB, din, H):
    resident = sum(int(consts[k].size) * consts[k].dtype.itemsize
                   for k in ("S", "E", "wg", "bg", "wu", "bu"))
    K, D = consts["K_all"], consts["D_emb"]
    io_tiles = 4 * N * TB * (din + 2 * H)
    inter = 4 * N * TB * ((din + H) * (2 * K + 4) + 4 * D * H + 8 * H)
    est = 2 * resident + 4 * io_tiles + 2 * inter + (4 << 20)
    return int(max(32 << 20, min(est, 100 << 20)))


# ---------------------------------------------------------------------------
# Wrapper: one AGCRN layer over a full sequence (AVWDCRNN inner loop).
# ---------------------------------------------------------------------------
def agcrn_layer_forward(x_seq, init_state, consts, *, batch_tile=None,
                        out_dtype=jnp.float32, vmem_limit_bytes=None):
    B, T, N, din = x_seq.shape
    H = init_state.shape[-1]
    assert din == consts["dim_in"]
    K_all, D_emb, mm_dtype = consts["K_all"], consts["D_emb"], consts["mm_dtype"]

    TB = batch_tile if batch_tile is not None else _pick_batch_tile(B, H)
    assert B % TB == 0, "batch_tile must divide the batch size"
    nt = B // TB

    # Wrapper-side relayout to node-major, lane-dense tiles (fused by XLA).
    x_nm = (x_seq.astype(jnp.float32)
            .reshape(nt, TB, T, N, din).transpose(0, 2, 3, 1, 4)
            .reshape(nt, T, N, TB * din))
    h0_nm = (init_state.astype(jnp.float32)
             .reshape(nt, TB, N, H).transpose(0, 2, 1, 3)
             .reshape(nt, N, TB * H))

    kernel = functools.partial(_agcrn_layer_kernel, N=N, TB=TB, din=din, H=H,
                               K_all=K_all, D_emb=D_emb, mm_dtype=mm_dtype)

    def resident(a):   # whole array stays in VMEM across all grid steps
        return pl.BlockSpec(a.shape, lambda i, k: (0,) * a.ndim)

    Kp = K_all - 1
    J = K_all * (din + H)
    flops = nt * T * (2 * Kp * N * N * TB * (din + 2 * H)       # support matmuls
                      + 2 * N * TB * J * D_emb * 3 * H          # pool matmuls
                      + 2 * N * TB * D_emb * 3 * H)             # E contraction
    resident_bytes = sum(int(consts[k].size) * consts[k].dtype.itemsize
                         for k in ("S", "E", "wg", "bg", "wu", "bu"))
    bytes_accessed = (4 * (x_nm.size + h0_nm.size)
                      + nt * T * N * TB * H * jnp.dtype(out_dtype).itemsize
                      + resident_bytes)

    vmem = (vmem_limit_bytes if vmem_limit_bytes is not None
            else _vmem_limit_bytes(consts, N, TB, din, H))

    out_nm = pl.pallas_call(
        kernel,
        out_shape=jax.ShapeDtypeStruct((nt, T, N, TB * H), out_dtype),
        grid=(nt, T),
        in_specs=[
            pl.BlockSpec((None, None, N, TB * din), lambda i, k: (i, k, 0, 0)),
            pl.BlockSpec((None, N, TB * H), lambda i, k: (i, 0, 0)),
            resident(consts["S"]), resident(consts["E"]),
            resident(consts["wg"]), resident(consts["bg"]),
            resident(consts["wu"]), resident(consts["bu"]),
        ],
        out_specs=pl.BlockSpec((None, None, N, TB * H), lambda i, k: (i, k, 0, 0)),
        scratch_shapes=[pltpu.VMEM((N, TB * H), jnp.float32)],
        compiler_params=pltpu.CompilerParams(
            dimension_semantics=("parallel", "arbitrary"),
            vmem_limit_bytes=vmem),
        cost_estimate=pl.CostEstimate(flops=int(flops),
                                      transcendentals=int(3 * B * T * N * H),
                                      bytes_accessed=int(bytes_accessed)),
    )(x_nm, h0_nm, consts["S"], consts["E"], consts["wg"], consts["bg"],
      consts["wu"], consts["bu"])

    # back to batch-major (B, T, N, H)
    return (out_nm.reshape(nt, T, N, TB, H).transpose(0, 3, 1, 2, 4)
            .reshape(B, T, N, H))


def agcrn_encoder_forward(x_seq, init_states, layer_consts, **kwargs):
    """AVWDCRNN: stacked AGCRN layers -> (per-step last-layer states, finals)."""
    cur = x_seq
    finals = []
    for layer, consts in enumerate(layer_consts):
        cur = agcrn_layer_forward(cur, init_states[layer], consts, **kwargs)
        finals.append(cur[:, -1])
    return cur, jnp.stack(finals, axis=0)


# ---------------------------------------------------------------------------
# Pure-JAX reference (mirrors the PyTorch module) for validation
# ---------------------------------------------------------------------------
def _vwgcn_ref(x, E, lap, wpool, bpool, cheb_k, add_apt):
    N = E.shape[0]
    supports = [jnp.eye(N, dtype=jnp.float32), lap]
    for _ in range(2, cheb_k):
        supports.append(2.0 * lap @ supports[-1] - supports[-2])
    if add_apt:
        supports.append(jax.nn.softmax(jnp.maximum(E @ E.T, 0.0), axis=1))
    S = jnp.stack(supports, axis=0)
    weights = jnp.einsum('nd,dkio->nkio', E, wpool)
    bias = E @ bpool
    x_g = jnp.einsum('knm,bmc->bknc', S, x).transpose(0, 2, 1, 3)
    return jnp.einsum('bnki,nkio->bno', x_g, weights) + bias


def _agcrn_cell_ref(x, state, E, lap, params, cheb_k, add_apt):
    H = state.shape[-1]
    xs = jnp.concatenate([x, state], axis=-1)
    zr = jax.nn.sigmoid(_vwgcn_ref(xs, E, lap, params["gate_w"],
                                   params["gate_b"], cheb_k, add_apt))
    z, r = zr[..., :H], zr[..., H:]
    cand = jnp.concatenate([x, z * state], axis=-1)
    hc = jnp.tanh(_vwgcn_ref(cand, E, lap, params["update_w"],
                             params["update_b"], cheb_k, add_apt))
    return r * state + (1.0 - r) * hc


def _agcrn_layer_ref(x_seq, h0, E, lap, params, cheb_k, add_apt):
    def step(h, x_t):
        h = _agcrn_cell_ref(x_t, h, E, lap, params, cheb_k, add_apt)
        return h, h
    _, hs = jax.lax.scan(step, h0, jnp.swapaxes(x_seq, 0, 1))
    return jnp.swapaxes(hs, 0, 1)        # (B, T, N, H)


# ---------------------------------------------------------------------------
if __name__ == "__main__":
    # accurate f32 matmuls for both the reference and the precompute
    jax.config.update("jax_default_matmul_precision", "highest")

    node_num, dim_in, hidden = 16, 4, 8
    cheb_k, embed_dim, add_apt = 3, 8, True     # dropout=0 -> identity (eval)
    B, T, num_layers = 2, 8, 2
    K = cheb_k + 1 if add_apt else cheb_k

    key = jax.random.PRNGKey(0)
    ks = jax.random.split(key, 4 + 4 * num_layers)

    x = jax.random.normal(ks[0], (B, T, node_num, dim_in), jnp.float32)
    node_emb = jax.random.normal(ks[1], (node_num, embed_dim), jnp.float32)

    # deterministic symmetric normalized "laplacian-like" support
    A = jax.random.uniform(ks[2], (node_num, node_num), jnp.float32)
    A = 0.5 * (A + A.T)
    d_inv_sqrt = 1.0 / jnp.sqrt(jnp.sum(A, axis=1))
    lap = d_inv_sqrt[:, None] * A * d_inv_sqrt[None, :]

    layer_params = []
    for layer in range(num_layers):
        di = dim_in if layer == 0 else hidden
        I = di + hidden
        b0 = 4 + 4 * layer
        layer_params.append({
            "gate_w": 0.1 * jax.random.normal(ks[b0], (embed_dim, K, I, 2 * hidden)),
            "gate_b": 0.1 * jax.random.normal(ks[b0 + 1], (embed_dim, 2 * hidden)),
            "update_w": 0.1 * jax.random.normal(ks[b0 + 2], (embed_dim, K, I, hidden)),
            "update_b": 0.1 * jax.random.normal(ks[b0 + 3], (embed_dim, hidden)),
        })

    init_states = jnp.zeros((num_layers, B, node_num, hidden), jnp.float32)

    # ----- pure-JAX reference (two stacked layers over the sequence) -----
    ref = x
    for layer in range(num_layers):
        ref = _agcrn_layer_ref(ref, init_states[layer], node_emb, lap,
                               layer_params[layer], cheb_k, add_apt)

    # ----- Pallas, f32 matmuls -----
    consts_f32 = [precompute_agcrn_constants(
        node_emb, lap, layer_params[layer], cheb_k=cheb_k, add_apt=add_apt,
        dim_in=(dim_in if layer == 0 else hidden)) for layer in range(num_layers)]

    # batch_tile=1 -> 2 "parallel" batch tiles x 8 sequential timesteps
    out1, _ = agcrn_encoder_forward(x, init_states, consts_f32, batch_tile=1)
    out1 = jax.block_until_ready(out1)
    assert out1.shape == (B, T, node_num, hidden)
    err1 = float(jnp.max(jnp.abs(out1 - ref)))
    assert err1 < 5e-3, f"f32/TB=1 max abs err {err1}"

    # batch_tile=B -> single batch tile, whole batch per step
    out2, _ = agcrn_encoder_forward(x, init_states, consts_f32, batch_tile=B)
    out2 = jax.block_until_ready(out2)
    err2 = float(jnp.max(jnp.abs(out2 - ref)))
    assert err2 < 5e-3, f"f32/TB=B max abs err {err2}"

    # ----- Pallas, bf16 matmul operands (f32 accumulation / gating) -----
    consts_bf16 = [precompute_agcrn_constants(
        node_emb, lap, layer_params[layer], cheb_k=cheb_k, add_apt=add_apt,
        dim_in=(dim_in if layer == 0 else hidden), mm_dtype=jnp.bfloat16)
        for layer in range(num_layers)]
    out3, _ = agcrn_encoder_forward(x, init_states, consts_bf16, batch_tile=B)
    out3 = jax.block_until_ready(out3)
    err3 = float(jnp.max(jnp.abs(out3 - ref)))
    assert err3 < 0.35, f"bf16 max abs err {err3}"

    print("KERNEL_OK")
</pallas_src>

<mosaic_0001>
module attributes {stable_mosaic.version = 11 : i64} {
  func.func @_agcrn_layer_kernel(%arg0: i32, %arg1: i32, %arg2: memref<1x1x16x4xf32, #tpu.memory_space<vmem>>, %arg3: memref<1x16x8xf32, #tpu.memory_space<vmem>>, %arg4: memref<48x16xf32, #tpu.memory_space<vmem>>, %arg5: memref<16x8xf32, #tpu.memory_space<vmem>>, %arg6: memref<48x128xf32, #tpu.memory_space<vmem>>, %arg7: memref<16x16xf32, #tpu.memory_space<vmem>>, %arg8: memref<48x64xf32, #tpu.memory_space<vmem>>, %arg9: memref<16x8xf32, #tpu.memory_space<vmem>>, %arg10: memref<1x1x16x8xf32, #tpu.memory_space<vmem>>, %arg11: memref<16x8xf32, #tpu.memory_space<vmem>>) attributes {dimension_semantics = [#tpu.dimension_semantics<parallel>, #tpu.dimension_semantics<arbitrary>], iteration_bounds = array<i64: 2, 8>, scalar_prefetch = 0 : i64, scratch_operands = 1 : i64, tpu.core_type = #tpu.core_type<tc>, window_params = [{transform_indices = @transform_0, window_bounds = array<i64: 1, 1, 16, 4>}, {transform_indices = @transform_1, window_bounds = array<i64: 1, 16, 8>}, {pipeline_mode = #tpu.pipeline_mode<synchronous>, transform_indices = @transform_2, window_bounds = array<i64: 48, 16>}, {pipeline_mode = #tpu.pipeline_mode<synchronous>, transform_indices = @transform_3, window_bounds = array<i64: 16, 8>}, {pipeline_mode = #tpu.pipeline_mode<synchronous>, transform_indices = @transform_4, window_bounds = array<i64: 48, 128>}, {pipeline_mode = #tpu.pipeline_mode<synchronous>, transform_indices = @transform_5, window_bounds = array<i64: 16, 16>}, {pipeline_mode = #tpu.pipeline_mode<synchronous>, transform_indices = @transform_6, window_bounds = array<i64: 48, 64>}, {pipeline_mode = #tpu.pipeline_mode<synchronous>, transform_indices = @transform_7, window_bounds = array<i64: 16, 8>}, {transform_indices = @transform_8, window_bounds = array<i64: 1, 1, 16, 8>}]} {
    %c0_i32 = arith.constant 0 : i32
    %0 = arith.cmpi eq, %arg1, %c0_i32 : i32
    %1 = arith.extui %0 : i1 to i32
    %c0_i32_0 = arith.constant 0 : i32
    %2 = arith.cmpi ne, %1, %c0_i32_0 : i32
    scf.if %2 {
      %c0_31 = arith.constant 0 : index
      %c0_32 = arith.constant 0 : index
      %c0_33 = arith.constant 0 : index
      %84 = vector.load %arg3[%c0_31, %c0_32, %c0_33] : memref<1x16x8xf32, #tpu.memory_space<vmem>>, vector<1x16x8xf32>
      %85 = vector.shape_cast %84 : vector<1x16x8xf32> to vector<16x8xf32>
      %c0_34 = arith.constant 0 : index
      %c0_35 = arith.constant 0 : index
      %86 = vector.load %arg11[%c0_34, %c0_35] : memref<16x8xf32, #tpu.memory_space<vmem>>, vector<16x8xf32>
      tpu.vector_store %arg11[%c0_34, %c0_35], %85 {strides = array<i32>} : memref<16x8xf32, #tpu.memory_space<vmem>>, vector<16x8xf32>,
    } else {
    }
    %c0 = arith.constant 0 : index
    %c0_1 = arith.constant 0 : index
    %c0_2 = arith.constant 0 : index
    %c0_3 = arith.constant 0 : index
    %3 = vector.load %arg2[%c0, %c0_1, %c0_2, %c0_3] : memref<1x1x16x4xf32, #tpu.memory_space<vmem>>, vector<1x1x16x4xf32>
    %4 = vector.shape_cast %3 : vector<1x1x16x4xf32> to vector<16x4xf32>
    %c0_4 = arith.constant 0 : index
    %c0_5 = arith.constant 0 : index
    %5 = vector.load %arg11[%c0_4, %c0_5] : memref<16x8xf32, #tpu.memory_space<vmem>>, vector<16x8xf32>
    %6 = vector.shape_cast %5 : vector<16x8xf32> to vector<16x1x8xf32>
    %c0_6 = arith.constant 0 : index
    %c0_7 = arith.constant 0 : index
    %7 = vector.load %arg4[%c0_6, %c0_7] : memref<48x16xf32, #tpu.memory_space<vmem>>, vector<48x16xf32>
    %8 = tpu.concatenate %4, %5 in 1 : vector<16x4xf32>, vector<16x8xf32> -> vector<16x12xf32>
    %cst = arith.constant dense<0.000000e+00> : vector<48x12xf32>
    %9 = tpu.matmul %7, %8, %cst {dimension_numbers = #tpu.dot_dimension_numbers<[1], [0], [0], [1], [0, 0, 1, 1], [], []>, precision = #tpu.contract_precision<fp32>} : vector<48x16xf32>, vector<16x12xf32>, vector<48x12xf32> -> vector<48x12xf32>
    %10 = vector.extract_strided_slice %9 {offsets = [0, 0], sizes = [16, 12], strides = [1, 1]} : vector<48x12xf32> to vector<16x12xf32>
    %11 = vector.extract_strided_slice %9 {offsets = [16, 0], sizes = [16, 12], strides = [1, 1]} : vector<48x12xf32> to vector<16x12xf32>
    %12 = vector.extract_strided_slice %9 {offsets = [32, 0], sizes = [16, 12], strides = [1, 1]} : vector<48x12xf32> to vector<16x12xf32>
    %13 = vector.extract_strided_slice %8 {offsets = [0, 0], sizes = [16, 4], strides = [1, 1]} : vector<16x12xf32> to vector<16x4xf32>
    %14 = vector.shape_cast %13 : vector<16x4xf32> to vector<16x1x4xf32>
    %15 = vector.extract_strided_slice %10 {offsets = [0, 0], sizes = [16, 4], strides = [1, 1]} : vector<16x12xf32> to vector<16x4xf32>
    %16 = vector.shape_cast %15 : vector<16x4xf32> to vector<16x1x4xf32>
    %17 = vector.extract_strided_slice %11 {offsets = [0, 0], sizes = [16, 4], strides = [1, 1]} : vector<16x12xf32> to vector<16x4xf32>
    %18 = vector.shape_cast %17 : vector<16x4xf32> to vector<16x1x4xf32>
    %19 = vector.extract_strided_slice %12 {offsets = [0, 0], sizes = [16, 4], strides = [1, 1]} : vector<16x12xf32> to vector<16x4xf32>
    %20 = vector.shape_cast %19 : vector<16x4xf32> to vector<16x1x4xf32>
    %21 = tpu.concatenate %14, %16, %18, %20 in 2 : vector<16x1x4xf32>, vector<16x1x4xf32>, vector<16x1x4xf32>, vector<16x1x4xf32> -> vector<16x1x16xf32>
    %22 = vector.extract_strided_slice %8 {offsets = [0, 4], sizes = [16, 8], strides = [1, 1]} : vector<16x12xf32> to vector<16x8xf32>
    %23 = vector.shape_cast %22 : vector<16x8xf32> to vector<16x1x8xf32>
    %24 = vector.extract_strided_slice %10 {offsets = [0, 4], sizes = [16, 8], strides = [1, 1]} : vector<16x12xf32> to vector<16x8xf32>
    %25 = vector.shape_cast %24 : vector<16x8xf32> to vector<16x1x8xf32>
    %26 = vector.extract_strided_slice %11 {offsets = [0, 4], sizes = [16, 8], strides = [1, 1]} : vector<16x12xf32> to vector<16x8xf32>
    %27 = vector.shape_cast %26 : vector<16x8xf32> to vector<16x1x8xf32>
    %28 = vector.extract_strided_slice %12 {offsets = [0, 4], sizes = [16, 8], strides = [1, 1]} : vector<16x12xf32> to vector<16x8xf32>
    %29 = vector.shape_cast %28 : vector<16x8xf32> to vector<16x1x8xf32>
    %30 = tpu.concatenate %23, %25, %27, %29 in 2 : vector<16x1x8xf32>, vector<16x1x8xf32>, vector<16x1x8xf32>, vector<16x1x8xf32> -> vector<16x1x32xf32>
    %c0_8 = arith.constant 0 : index
    %c0_9 = arith.constant 0 : index
    %31 = vector.load %arg5[%c0_8, %c0_9] : memref<16x8xf32, #tpu.memory_space<vmem>>, vector<16x8xf32>
    %32 = vector.shape_cast %31 : vector<16x8xf32> to vector<16x1x8x1xf32>
    %33 = tpu.concatenate %21, %30 in 2 : vector<16x1x16xf32>, vector<16x1x32xf32> -> vector<16x1x48xf32>
    %34 = vector.shape_cast %33 : vector<16x1x48xf32> to vector<16x48xf32>
    %c0_10 = arith.constant 0 : index
    %c0_11 = arith.constant 0 : index
    %35 = vector.load %arg6[%c0_10, %c0_11] : memref<48x128xf32, #tpu.memory_space<vmem>>, vector<48x128xf32>
    %cst_12 = arith.constant dense<0.000000e+00> : vector<16x128xf32>
    %36 = tpu.matmul %34, %35, %cst_12 {dimension_numbers = #tpu.dot_dimension_numbers<[1], [0], [0], [1], [0, 0, 1, 1], [], []>, precision = #tpu.contract_precision<fp32>} : vector<16x48xf32>, vector<48x128xf32>, vector<16x128xf32> -> vector<16x128xf32>
    %37 = vector.shape_cast %36 : vector<16x128xf32> to vector<16x1x8x16xf32>
    %38 = vector.broadcast %32 : vector<16x1x8x1xf32> to vector<16x1x8x16xf32>
    %39 = arith.mulf %38, %37 : vector<16x1x8x16xf32>
    %cst_13 = arith.constant dense<0.000000e+00> : vector<16x1x16xf32>
    %40 = vector.multi_reduction <add>, %39, %cst_13 [2] : vector<16x1x8x16xf32> to vector<16x1x16xf32>
    %c0_14 = arith.constant 0 : index
    %c0_15 = arith.constant 0 : index
    %41 = vector.load %arg7[%c0_14, %c0_15] : memref<16x16xf32, #tpu.memory_space<vmem>>, vector<16x16xf32>
    %42 = vector.shape_cast %41 : vector<16x16xf32> to vector<16x1x16xf32>
    %43 = arith.addf %40, %42 : vector<16x1x16xf32>
    %44 = arith.negf %43 : vector<16x1x16xf32>
    %45 = math.exp %44 : vector<16x1x16xf32>
    %cst_16 = arith.constant 1.000000e+00 : f32
    %46 = vector.broadcast %cst_16 : f32 to vector<16x1x16xf32>
    %47 = arith.addf %46, %45 : vector<16x1x16xf32>
    %48 = arith.divf %46, %47 : vector<16x1x16xf32>
    %49 = vector.extract_strided_slice %48 {offsets = [0, 0, 0], sizes = [16, 1, 8], strides = [1, 1, 1]} : vector<16x1x16xf32> to vector<16x1x8xf32>
    %50 = vector.extract_strided_slice %48 {offsets = [0, 0, 8], sizes = [16, 1, 8], strides = [1, 1, 1]} : vector<16x1x16xf32> to vector<16x1x8xf32>
    %51 = arith.mulf %49, %6 : vector<16x1x8xf32>
    %52 = vector.shape_cast %51 : vector<16x1x8xf32> to vector<16x8xf32>
    %cst_17 = arith.constant dense<0.000000e+00> : vector<48x8xf32>
    %53 = tpu.matmul %7, %52, %cst_17 {dimension_numbers = #tpu.dot_dimension_numbers<[1], [0], [0], [1], [0, 0, 1, 1], [], []>, precision = #tpu.contract_precision<fp32>} : vector<48x16xf32>, vector<16x8xf32>, vector<48x8xf32> -> vector<48x8xf32>
    %54 = vector.extract_strided_slice %53 {offsets = [0, 0], sizes = [16, 8], strides = [1, 1]} : vector<48x8xf32> to vector<16x8xf32>
    %55 = vector.extract_strided_slice %53 {offsets = [16, 0], sizes = [16, 8], strides = [1, 1]} : vector<48x8xf32> to vector<16x8xf32>
    %56 = vector.extract_strided_slice %53 {offsets = [32, 0], sizes = [16, 8], strides = [1, 1]} : vector<48x8xf32> to vector<16x8xf32>
    %57 = vector.shape_cast %52 : vector<16x8xf32> to vector<16x1x8xf32>
    %58 = vector.shape_cast %54 : vector<16x8xf32> to vector<16x1x8xf32>
    %59 = vector.shape_cast %55 : vector<16x8xf32> to vector<16x1x8xf32>
    %60 = vector.shape_cast %56 : vector<16x8xf32> to vector<16x1x8xf32>
    %61 = tpu.concatenate %57, %58, %59, %60 in 2 : vector<16x1x8xf32>, vector<16x1x8xf32>, vector<16x1x8xf32>, vector<16x1x8xf32> -> vector<16x1x32xf32>
    %62 = tpu.concatenate %21, %61 in 2 : vector<16x1x16xf32>, vector<16x1x32xf32> -> vector<16x1x48xf32>
    %63 = vector.shape_cast %62 : vector<16x1x48xf32> to vector<16x48xf32>
    %c0_18 = arith.constant 0 : index
    %c0_19 = arith.constant 0 : index
    %64 = vector.load %arg8[%c0_18, %c0_19] : memref<48x64xf32, #tpu.memory_space<vmem>>, vector<48x64xf32>
    %cst_20 = arith.constant dense<0.000000e+00> : vector<16x64xf32>
    %65 = tpu.matmul %63, %64, %cst_20 {dimension_numbers = #tpu.dot_dimension_numbers<[1], [0], [0], [1], [0, 0, 1, 1], [], []>, precision = #tpu.contract_precision<fp32>} : vector<16x48xf32>, vector<48x64xf32>, vector<16x64xf32> -> vector<16x64xf32>
    %66 = vector.shape_cast %65 : vector<16x64xf32> to vector<16x1x8x8xf32>
    %67 = vector.broadcast %32 : vector<16x1x8x1xf32> to vector<16x1x8x8xf32>
    %68 = arith.mulf %67, %66 : vector<16x1x8x8xf32>
    %cst_21 = arith.constant dense<0.000000e+00> : vector<16x1x8xf32>
    %69 = vector.multi_reduction <add>, %68, %cst_21 [2] : vector<16x1x8x8xf32> to vector<16x1x8xf32>
    %c0_22 = arith.constant 0 : index
    %c0_23 = arith.constant 0 : index
    %70 = vector.load %arg9[%c0_22, %c0_23] : memref<16x8xf32, #tpu.memory_space<vmem>>, vector<16x8xf32>
    %71 = vector.shape_cast %70 : vector<16x8xf32> to vector<16x1x8xf32>
    %72 = arith.addf %69, %71 : vector<16x1x8xf32>
    %73 = math.tanh %72 : vector<16x1x8xf32>
    %74 = arith.mulf %50, %6 : vector<16x1x8xf32>
    %cst_24 = arith.constant 1.000000e+00 : f32
    %75 = vector.broadcast %cst_24 : f32 to vector<16x1x8xf32>
    %76 = arith.subf %75, %50 : vector<16x1x8xf32>
    %77 = arith.mulf %76, %73 : vector<16x1x8xf32>
    %78 = arith.addf %74, %77 : vector<16x1x8xf32>
    %79 = vector.shape_cast %78 : vector<16x1x8xf32> to vector<16x8xf32>
    %c0_25 = arith.constant 0 : index
    %c0_26 = arith.constant 0 : index
    %80 = vector.load %arg11[%c0_25, %c0_26] : memref<16x8xf32, #tpu.memory_space<vmem>>, vector<16x8xf32>
    tpu.vector_store %arg11[%c0_25, %c0_26], %79 {strides = array<i32>} : memref<16x8xf32, #tpu.memory_space<vmem>>, vector<16x8xf32>,
    %c0_27 = arith.constant 0 : index
    %c0_28 = arith.constant 0 : index
    %c0_29 = arith.constant 0 : index
    %c0_30 = arith.constant 0 : index
    %81 = vector.load %arg10[%c0_27, %c0_28, %c0_29, %c0_30] : memref<1x1x16x8xf32, #tpu.memory_space<vmem>>, vector<1x1x16x8xf32>
    %82 = vector.shape_cast %81 : vector<1x1x16x8xf32> to vector<16x8xf32>
    %83 = vector.shape_cast %79 : vector<16x8xf32> to vector<1x1x16x8xf32>
    tpu.vector_store %arg10[%c0_27, %c0_28, %c0_29, %c0_30], %83 {strides = array<i32>} : memref<1x1x16x8xf32, #tpu.memory_space<vmem>>, vector<1x1x16x8xf32>,
    return
  }
  func.func @transform_0(%arg0: i32, %arg1: i32) -> (i32, i32, i32, i32) {
    %c0_i32 = arith.constant 0 : i32
    %c0_i32_0 = arith.constant 0 : i32
    %c0_i32_1 = arith.constant 0 : i32
    return %arg0, %arg1, %c0_i32, %c0_i32_0 : i32, i32, i32, i32
  }
  func.func @transform_1(%arg0: i32, %arg1: i32) -> (i32, i32, i32) {
    %c0_i32 = arith.constant 0 : i32
    %c0_i32_0 = arith.constant 0 : i32
    %c0_i32_1 = arith.constant 0 : i32
    return %arg0, %c0_i32, %c0_i32_0 : i32, i32, i32
  }
  func.func @transform_2(%arg0: i32, %arg1: i32) -> (i32, i32) {
    %c0_i32 = arith.constant 0 : i32
    %c0_i32_0 = arith.constant 0 : i32
    %c0_i32_1 = arith.constant 0 : i32
    return %c0_i32, %c0_i32_0 : i32, i32
  }
  func.func @transform_3(%arg0: i32, %arg1: i32) -> (i32, i32) {
    %c0_i32 = arith.constant 0 : i32
    %c0_i32_0 = arith.constant 0 : i32
    %c0_i32_1 = arith.constant 0 : i32
    return %c0_i32, %c0_i32_0 : i32, i32
  }
  func.func @transform_4(%arg0: i32, %arg1: i32) -> (i32, i32) {
    %c0_i32 = arith.constant 0 : i32
    %c0_i32_0 = arith.constant 0 : i32
    %c0_i32_1 = arith.constant 0 : i32
    return %c0_i32, %c0_i32_0 : i32, i32
  }
  func.func @transform_5(%arg0: i32, %arg1: i32) -> (i32, i32) {
    %c0_i32 = arith.constant 0 : i32
    %c0_i32_0 = arith.constant 0 : i32
    %c0_i32_1 = arith.constant 0 : i32
    return %c0_i32, %c0_i32_0 : i32, i32
  }
  func.func @transform_6(%arg0: i32, %arg1: i32) -> (i32, i32) {
    %c0_i32 = arith.constant 0 : i32
    %c0_i32_0 = arith.constant 0 : i32
    %c0_i32_1 = arith.constant 0 : i32
    return %c0_i32, %c0_i32_0 : i32, i32
  }
  func.func @transform_7(%arg0: i32, %arg1: i32) -> (i32, i32) {
    %c0_i32 = arith.constant 0 : i32
    %c0_i32_0 = arith.constant 0 : i32
    %c0_i32_1 = arith.constant 0 : i32
    return %c0_i32, %c0_i32_0 : i32, i32
  }
  func.func @transform_8(%arg0: i32, %arg1: i32) -> (i32, i32, i32, i32) {
    %c0_i32 = arith.constant 0 : i32
    %c0_i32_0 = arith.constant 0 : i32
    %c0_i32_1 = arith.constant 0 : i32
    return %arg0, %arg1, %c0_i32, %c0_i32_0 : i32, i32, i32, i32
  }
}

</mosaic_0001>

<bundles_post_ra>
// kernel: tpu_custom_call.1
= control target key start
LH: loop header
LB: loop body
LE: loop exit
PB: predicated region body
PF: predicated region fallthrough
CT: control target
= control target key end

     0   :  { %s7947_s27 = smov 0   ;;  %s7949_s28 = smov 0   ;;  %s10305_s0 = inlined_call_operand.vmem [shape: f32[2,8,16,4], index: 0, kind: input, shape index: {}]   ;;  %s10306_s1 = inlined_call_operand.vmem [shape: f32[2,16,8], index: 1, kind: input, shape index: {}]   ;;  %s10307_s2 = inlined_call_operand.vmem [shape: f32[48,16], index: 2, kind: input, shape index: {}]   ;;  %s10308_s3 = inlined_call_operand.vmem [shape: f32[16,8], index: 3, kind: input, shape index: {}]   ;;  %s10309_s4 = inlined_call_operand.vmem [shape: f32[48,128], index: 4, kind: input, shape index: {}]   ;;  %s10310_s5 = inlined_call_operand.vmem [shape: f32[16,16], index: 5, kind: input, shape index: {}]   ;;  %s10311_s6 = inlined_call_operand.vmem [shape: f32[48,64], index: 6, kind: input, shape index: {}]   ;;  %s10312_s7 = inlined_call_operand.vmem [shape: f32[16,8], index: 7, kind: input, shape index: {}]   ;;  %s10313_s8 = inlined_call_operand.vmem [shape: f32[2,8,16,8], index: 8, kind: output, shape index: {}]  }
   0x1   :  { %s7951_s29 = smov 0   ;;  %s7953_s30 = smov 0  }
   0x2   :  { %s7955_s9 = smov 0  }
   0x3 LB: > { %s27_s10 = sadd.s32 1, %s7872_s29  ;;  %s30_s11 = sadd.s32 1, %s7876_s30  ;;  %s7880_s9 = sphi %s7955_s9, %s18_s9   ;;  %s7876_s30 = sphi %s7953_s30, %s10671_s30   ;;  %s7872_s29 = sphi %s7951_s29, %s10670_s29   ;;  %s7868_s28 = sphi %s7949_s28, %s10669_s28   ;;  %s7864_s27 = sphi %s7947_s27, %s10668_s27  }
   0x4   : > { %p28_p0 = scmp.ge.s32.totalorder %s27_s10, 8  ;;  %p6849_p1 = scmp.ge.s32.totalorder %s7880_s9, 1 }
   0x5   : > { %p292_p2 = scmp.lt.s32.totalorder %s7880_s9, 17 }
   0x6   : > { %s10673_s10 = smov (%p28_p0, %s27_s10), 0  ;;  %s10675_s11 = smov (!%p28_p0, %s30_s11), %s7876_s30 }
   0x7   : > { %p293_p3 = pnand %p6849_p1, %p292_p2  ;;  %p32_p4 = scmp.ge.s32.totalorder %s10675_s11, 2 }
   0x9   : > { %s10677_s11 = smov (%p32_p4, %s10675_s11), 0  ;;  %296 = sbr.rel (%p293_p3) target bundleno = 2691 (0xa83), region = 52 }
  0x10   : > { %p339_p5 = scmp.lt.s32.totalorder %s7868_s28, 1  ;;  %p341_p6 = scmp.lt.s32.totalorder %s7864_s27, 7 }
  0x11   : > { %p6858_p7 = scmp.ne.s32.totalorder %s7864_s27, 0 }
  0x12   : > { %s10679_s28 = smov (!%p339_p5, %s7868_s28), 1  ;;  %vm368_vm0 = vcmask (!%p6858_p7), 64512  }
  0x13   : > { %s342_s12 = scalar_select %p341_p6, %s7864_s27, 7 }
  0x14   : > { %s6851_s13 = sshll.u32 %s10679_s28, 4  ;;  %365 = sbr.rel (%p6858_p7) target bundleno = 27 (0x1b), region = 56 }
  0x15   : > { %s6850_s14 = sshll.u32 %s342_s12, 1  ;;  %s352_s17 = scalar_lea.vmem %s10306_s1, %s6851_s13 }
  0x16   : > { %s345_s18 = sadd.s32 %s6851_s13, %s6850_s14  ;;  %v366_v0 = vld [vmem:[%s352_s17] sm:$0xff] (!%p6858_p7)  ;;  %v367_v1 = vld [vmem:[%s352_s17 + $0x8] sm:$0xff] (!%p6858_p7) }
  0x17   : > { %s6852_s19 = sshll.u32 %s345_s18, 3  ;;  %369 = vst.msk [vmem:[#allocation2] sm:$0xff] (!%p6858_p7), %vm368_vm0, %v366_v0  ;;  %370 = vst.msk [vmem:[#allocation2 + $0x8] sm:$0xff] (!%p6858_p7), %vm368_vm0, %v367_v1 }
  0x18   : > { %s7983_s22 = scalar_lea.vmem %s10305_s0, %s6852_s19  ;;  %s7988_s25 = scalar_lea.vmem %s10313_s8, %s6852_s19 }
  0x1b PF: > { %s7882_s26 = smov 4   ;;  %v491_v3 = vld [vmem:[%s10307_s2] sm:$0xff]  ;;  %vm506_vm1 = vcmask 130048   ;;  %v492_v11 = vld [vmem:[%s10307_s2 + $0x8] sm:$0xff]  ;;  %v493_v13 = vld [vmem:[%s10307_s2 + $0x10] sm:$0xff]  ;;  %v381_v16 = vlaneseq  ;;  %vm503_vm2 = vcmask 31744  }
  0x1c   : > { %v508_v5 = vsel %vm506_vm1, %v491_v3, 0  ;;  %v511_v12 = vsel %vm506_vm1, %v492_v11, 0  ;;  %v7883_v14 = vmov 1966171168   ;;  %v494_v18 = vld [vmem:[%s10307_s2 + $0x18] sm:$0xff]  ;;  %v514_v19 = vsel %vm506_vm1, %v493_v13, 0 }
  0x1d   : > { %v7995_v6 = vand.u32 4294901760, %v508_v5  ;;  %v379_v15 = vunpack.c.l.s4 %v7883_v14  ;;  %v8016_v17 = vand.u32 4294901760, %v511_v12  ;;  %v8022_v21 = vshrl.u32 %v381_v16, 7  ;;  %v495_v23 = vld [vmem:[%s10307_s2 + $0x20] sm:$0xff]  ;;  %v496_v26 = vld [vmem:[%s10307_s2 + $0x28] sm:$0xff]  ;;  %s7885_s23 = smov 12  }
  0x1e   : > { %v373_v2 = vld [vmem:[#allocation2] sm:$0xff]  ;;  %v374_v4 = vld [vmem:[#allocation2 + $0x8] sm:$0xff]  ;;  %v517_v22 = vsel %vm506_vm1, %v494_v18, 0  ;;  %v8031_v25 = vand.u32 4294901760, %v514_v19  ;;  %v520_v28 = vsel %vm506_vm1, %v495_v23, 0  ;;  %v523_v33 = vsel %vm506_vm1, %v496_v26, 0 }
  0x1f   : > { %497 = vrot.lane.b32.xlu0 %v373_v2, %s7882_s26  ;;  %10442 = vst [vmem:[#allocation3_spill] sm:$0xff] %v7995_v6  ;;  %v7999_v7 = vsub.f32 %v508_v5, %v7995_v6  ;;  %10445 = vst [vmem:[#allocation6_spill] sm:$0xff] %v8016_v17  ;;  %v380_v20 = vunpack.c.0.s8 %v379_v15  ;;  %v8029_v24 = vsub.f32 %v511_v12, %v8016_v17  ;;  %v8036_v27 = vand.u32 4294901760, %v517_v22  ;;  %v371_v30 = vld [vmem:[%s7983_s22] sm:$0xff]  ;;  %v372_v40 = vld [vmem:[%s7983_s22 + $0x8] sm:$0xff]  ;;  %s7884_s22 = smov 124  }
  0x20   : > { %10446 = vst [vmem:[#allocation7_spill] sm:$0xff] %v8022_v21  ;;  %10448 = vst [vmem:[#allocation9_spill] sm:$0xff] %v8031_v25  ;;  %v8047_v32 = vsub.f32 %v514_v19, %v8031_v25  ;;  %v8050_v35 = vand.u32 4294901760, %v520_v28  ;;  %v8058_v41 = vand.u32 4294901760, %v523_v33  ;;  %v8061_v42 = vsub.s32 0, %v8022_v21  ;;  %s7886_s24 = smov 8  }
  0x21   : > { %10443 = vst [vmem:[#allocation4_spill] sm:$0xff] %v7999_v7  ;;  %v8002_v8 = vand.u32 4294901760, %v7999_v7  ;;  %10447 = vst [vmem:[#allocation8_spill] sm:$0xff] %v8029_v24  ;;  %v8040_v29 = vsub.s32 %v380_v20, %v8022_v21  ;;  %v8044_v31 = vand.u32 4294901760, %v8029_v24  ;;  %v8054_v37 = vsub.f32 %v517_v22, %v8036_v27  ;;  %s7888_s28 = smov 16   ;;  %s7889_s13 = smov 112  }
  0x22   : > { %10449 = vst [vmem:[#allocation10_spill] sm:$0xff] %v8036_v27  ;;  %10452 = vst [vmem:[#allocation13_spill] sm:$0xff] %v8047_v32  ;;  %v8066_v44 = vand.u32 4294901760, %v8047_v32  ;;  %v8072_v48 = vsub.f32 %v520_v28, %v8050_v35  ;;  %v8082_v55 = vsub.f32 %v523_v33, %v8058_v41  ;;  %vm1967_vm3 = vcmask 64512   ;;  %s7890_s14 = smov 96   ;;  %s7891_s15 = smov 80  }
  0x23   : > { %499 = vrot.lane.b32.xlu0 %v374_v4, %s7882_s26  ;;  %10444 = vst [vmem:[#allocation5_spill] sm:$0xff] %v8002_v8  ;;  %v595_v9 = vsub.f32 %v7999_v7, %v8002_v8  ;;  %10450 = vst [vmem:[#allocation11_spill] sm:$0xff] %v8040_v29  ;;  %v605_v43 = vsub.f32 %v8029_v24, %v8044_v31  ;;  %v8076_v51 = vand.u32 4294901760, %v8054_v37  ;;  %vm2241_vm4 = vcmask 195584   ;;  %s7892_s16 = smov 64   ;;  %s7893_s17 = smov 48  }
  0x24   : > { %10451 = vst [vmem:[#allocation12_spill] sm:$0xff] %v8044_v31  ;;  %10453 = vst [vmem:[#allocation14_spill] sm:$0xff] %v8050_v35  ;;  %v615_v59 = vsub.f32 %v8047_v32, %v8066_v44  ;;  %v8098_v63 = vand.u32 4294901760, %v8072_v48  ;;  %v8116_v11 = vand.u32 4294901760, %v8082_v55  ;;  %vm1984_vm5 = vcmask 97280   ;;  %s7894_s18 = smov 32  }
  0x25   : > { %v8006_v10 = vand.u32 4294901760, %v595_v9  ;;  %10454 = vst [vmem:[#allocation15_spill] sm:$0xff] %v8054_v37  ;;  %10455 = vst [vmem:[#allocation16_spill] sm:$0xff] %v8058_v41  ;;  %v8089_v58 = vand.u32 4294901760, %v605_v43  ;;  %v625_v3 = vsub.f32 %v8054_v37, %v8076_v51  ;;  %vm2475_vm6 = vcmask 1041409   ;;  %s7899_s12 = smov 104  }
  0x26   : > { %10456 = vst [vmem:[#allocation17_spill] sm:$0xff] %v8061_v42  ;;  %10457 = vst [vmem:[#allocation18_spill] sm:$0xff] %v8066_v44  ;;  %v8126_v15 = vand.u32 4294901760, %v615_v59  ;;  %v635_v20 = vsub.f32 %v8072_v48, %v8098_v63  ;;  %vm2478_vm7 = vcmask 1042434   ;;  %vm2481_vm8 = vcmask 1043459   ;;  %s7900_s27 = smov 88  }
  0x27   : > { %7074 = vmatprep.mubr.f32.mxu0 %v8006_v10  ;;  %10458 = vst [vmem:[#allocation19_spill] sm:$0xff] %v8072_v48  ;;  %10459 = vst [vmem:[#allocation20_spill] sm:$0xff] %v8076_v51  ;;  %v8143_v23 = vand.u32 4294901760, %v625_v3  ;;  %vm2484_vm9 = vcmask 1044484   ;;  %vm2490_vm10 = vcmask 1046534   ;;  %vm2487_vm11 = vcmask 1045509  }
  0x28   : > { %10460 = vst [vmem:[#allocation21_spill] sm:$0xff] %v8082_v55  ;;  %10462 = vst [vmem:[#allocation23_spill] sm:$0xff] %v8089_v58  ;;  %vm2493_vm12 = vcmask 1047559   ;;  %vm2509_vm13 = vcmask 392192  }
  0x29   : > { %10463 = vst [vmem:[#allocation24_spill] sm:$0xff] %v8098_v63  ;;  %10464 = vst [vmem:[#allocation25_spill] sm:$0xff] %v8116_v11 }
  0x2a   : > { %10465 = vst [vmem:[#allocation26_spill] sm:$0xff] %v8126_v15  ;;  %10466 = vst [vmem:[#allocation27_spill] sm:$0xff] %v8143_v23 }
  0x91   : > { %v498_v34 = vpop.permute.xlu0 %497 }
  0x92   : > { %v504_v36 = vsel %vm503_vm2, %v371_v30, %v498_v34  ;;  %v645_v30 = vsub.f32 %v8082_v55, %v8116_v11 }
  0x93   : > { %v526_v38 = vand.u32 4294901760, %v504_v36  ;;  %v1208_v39 = vrot.slane %v504_v36, %v8040_v29  ;;  %v1201_v49 = vcombine.high %v504_v36, %v504_v36 }
  0x95   : > { %v1216_v45 = vcombine.high %v1208_v39, %v1208_v39  ;;  %v8069_v46 = vrot.slane %v1208_v39, %v8040_v29  ;;  %v500_v47 = vpop.permute.xlu0 %499  ;;  %v8078_v52 = vsub.f32 %v504_v36, %v526_v38  ;;  %v1215_v0 = vrot.slane %v1201_v49, %v8040_v29 }
  0x96   : > { %v505_v50 = vsel %vm503_vm2, %v372_v40, %v500_v47  ;;  %v8156_v39 = vand.u32 4294901760, %v635_v20  ;;  %v8168_v49 = vand.u32 4294901760, %v645_v30 }
  0x97   : > { %v529_v53 = vand.u32 4294901760, %v505_v50  ;;  %v1257_v54 = vrot.slane %v505_v50, %v8040_v29  ;;  %v2004_v56 = vrot.slane %v8069_v46, %v8061_v42  ;;  %v8087_v57 = vrot.slane %v1216_v45, %v8040_v29 }
  0x98   : > { %v655_v5 = vand.u32 4294901760, %v8078_v52  ;;  %v1250_v12 = vcombine.high %v505_v50, %v505_v50  ;;  %v8124_v14 = vcombine.high %v8069_v46, %v8069_v46  ;;  %v8140_v22 = vrot.slane %v1215_v0, %v8040_v29  ;;  %10467 = vst [vmem:[#allocation28_spill] sm:$0xff] %v8156_v39  ;;  %10469 = vst [vmem:[#allocation30_spill] sm:$0xff] %v8168_v49 }
  0x99   : > { %10461 = vst [vmem:[#allocation22_spill] sm:$0xff] %v8087_v57  ;;  %v8093_v60 = vpack.c.bf16 %v529_v53, %v526_v38  ;;  %v8095_v61 = vsub.f32 %v505_v50, %v529_v53  ;;  %v1265_v62 = vcombine.high %v1257_v54, %v1257_v54  ;;  %v8102_v1 = vrot.slane %v1257_v54, %v8040_v29 }
  0x9a   : > { %2065 = vrot.lane.b32.xlu0 %v2004_v56, %s7884_s22  ;;  %v2008_v2 = vrot.slane %v8087_v57, %v8061_v42  ;;  %v656_v18 = vsub.f32 %v8078_v52, %v655_v5  ;;  %v1264_v33 = vrot.slane %v1250_v12, %v8040_v29  ;;  %v2012_v34 = vrot.slane %v8124_v14, %v8061_v42 }
  0x9b   : > { %7407 = vmatprep.subr.bf16.mxu0 %v8093_v60  ;;  %v8111_v4 = vrot.slane %v1265_v62, %v8040_v29  ;;  %v662_v9 = vand.u32 4294901760, %v8095_v61  ;;  %v2036_v13 = vrot.slane %v8102_v1, %v8061_v42  ;;  %v8154_v36 = vcombine.high %v8102_v1, %v8102_v1 }
  0x9c   : > { %2067 = vrot.lane.b32.xlu1 %v2008_v2, %s7884_s22  ;;  %7409 = vmatpush3.bf16.msra.mxu0 %v8093_v60  ;;  %v657_v26 = vand.u32 4294901760, %v656_v18  ;;  %v2020_v40 = vrot.slane %v8140_v22, %v8061_v42  ;;  %v8163_v43 = vcombine.high %v8087_v57, %v8087_v57  ;;  %v1217_v45 = vcombine.high %v1215_v0, %v1215_v0 }
  0x9d   : > { %v2040_v16 = vrot.slane %v8111_v4, %v8061_v42  ;;  %v663_v19 = vsub.f32 %v8095_v61, %v662_v9  ;;  %v7414_v47 = vpack.c.bf16 %v8095_v61, %v8078_v52  ;;  %v1266_v50 = vcombine.high %v1264_v33, %v1264_v33 }
  0x9e   : > { %2081 = vrot.lane.b32.xlu0 %v2036_v13, %s7884_s22  ;;  %10468 = vst [vmem:[#allocation29_spill] sm:$0xff] %v8163_v43  ;;  %v2044_v53 = vrot.slane %v8154_v36, %v8061_v42  ;;  %v8174_v54 = vrot.slane %v1264_v33, %v8040_v29  ;;  %v2016_v56 = vrot.slane %v8163_v43, %v8061_v42 }
  0x9f   : > { %7075 = vmatmul.mubr.f32.vlgmr.msra.gmra.mrb[0].mxu0 %v8089_v58  ;;  %v664_v28 = vand.u32 4294901760, %v663_v19  ;;  %v8182_v59 = vcombine.high %v8111_v4, %v8111_v4  ;;  %v8190_v0 = vrot.slane %v1266_v50, %v8040_v29  ;;  %v8193_v2 = vrot.slane %v1217_v45, %v8040_v29 }
  0xa0   : > { %2083 = vrot.lane.b32.xlu1 %v2040_v16, %s7884_s22  ;;  %7077 = vmatprep.mubr.f32.mxu0 %v8126_v15  ;;  %v2052_v62 = vrot.slane %v8174_v54, %v8061_v42  ;;  %v8213_v18 = vcombine.high %v8140_v22, %v8140_v22  ;;  %v7422_v33 = vpack.c.bf16 %v662_v9, %v655_v5 }
  0xa1   : > { %v7410_v38 = vpack.c.bf16 %v664_v28, %v657_v26  ;;  %10470 = vst [vmem:[#allocation31_spill] sm:$0xff] %v8190_v0  ;;  %10471 = vst [vmem:[#allocation32_spill] sm:$0xff] %v8193_v2  ;;  %v2048_v3 = vrot.slane %v8182_v59, %v8061_v42  ;;  %v2056_v12 = vrot.slane %v8190_v0, %v8061_v42 }
  0xa2   : > { %2069 = vrot.lane.b32.xlu0 %v2012_v34, %s7884_s22  ;;  %v8204_v13 = vcombine.high %v8193_v2, %v8193_v2  ;;  %v2024_v16 = vrot.slane %v8193_v2, %v8061_v42  ;;  %10473 = vst [vmem:[#allocation34_spill] sm:$0xff] %v8213_v18  ;;  %v2028_v20 = vrot.slane %v8213_v18, %v8061_v42 }
  0xa3   : > { %7078 = vmatmul.mubr.f32.gmra.mrb[2].mxu0 %v8143_v23  ;;  %7411 = vmatprep.subr.bf16.mxu0 %v7410_v38  ;;  %v8225_v26 = vcombine.high %v8174_v54, %v8174_v54  ;;  %v8234_v30 = vcombine.high %v8190_v0, %v8190_v0 }
  0xa4   : > { %2073 = vrot.lane.b32.xlu1 %v2020_v40, %s7884_s22  ;;  %7413 = vmatpush3.bf16.msra.mxu0 %v7410_v38  ;;  %10472 = vst [vmem:[#allocation33_spill] sm:$0xff] %v8204_v13  ;;  %v2032_v19 = vrot.slane %v8204_v13, %v8061_v42 }
  0xa5   : > { %7415 = vmatprep.subr.bf16.mxu0 %v7414_v47  ;;  %7080 = vmatprep.mubr.f32.mxu0 %v8156_v39  ;;  %10474 = vst [vmem:[#allocation35_spill] sm:$0xff] %v8225_v26  ;;  %v2060_v28 = vrot.slane %v8225_v26, %v8061_v42  ;;  %10475 = vst [vmem:[#allocation36_spill] sm:$0xff] %v8234_v30  ;;  %v2064_v34 = vrot.slane %v8234_v30, %v8061_v42 }
  0xa6   : > { %2085 = vrot.lane.b32.xlu0 %v2044_v53, %s7884_s22 }
  0xa7   : > { %7081 = vmatmul.mubr.f32.gmra.mrb[4].mxu0 %v8168_v49 }
  0xa8   : > { %2071 = vrot.lane.b32.xlu1 %v2016_v56, %s7884_s22  ;;  %7087 = vmatprep.mubr.f32.mxu0 %v7995_v6 }
  0xaa   : > { %2089 = vrot.lane.b32.xlu0 %v2052_v62, %s7884_s22 }
  0xab   : > { %7088 = vmatmul.mubr.f32.vlgmr.msra.gmra.mrb[0].mxu0 %v8016_v17 }
  0xac   : > { %2087 = vrot.lane.b32.xlu1 %v2048_v3, %s7884_s22  ;;  %7417 = vmatpush3.bf16.msra.mxu0 %v7414_v47 }
  0xad   : > { %7419 = vmatprep.subr.bf16.mxu0 %v8093_v60  ;;  %7090 = vmatprep.mubr.f32.mxu0 %v8031_v25 }
  0xae   : > { %2091 = vrot.lane.b32.xlu0 %v2056_v12, %s7884_s22 }
  0xaf   : > { %7091 = vmatmul.mubr.f32.gmra.mrb[2].mxu0 %v8036_v27 }
  0xb0   : > { %2075 = vrot.lane.b32.xlu1 %v2024_v16, %s7884_s22  ;;  %7093 = vmatprep.mubr.f32.mxu0 %v8050_v35 }
  0xb2   : > { %2079 = vrot.lane.b32.xlu0 %v2032_v19, %s7884_s22 }
  0xb3   : > { %7094 = vmatmul.mubr.f32.gmra.mrb[4].mxu0 %v8058_v41 }
  0xb4   : > { %2077 = vrot.lane.b32.xlu1 %v2028_v20, %s7884_s22  ;;  %7100 = vmatprep.mubr.f32.mxu0 %v7999_v7 }
  0xb7   : > { %7101 = vmatmul.mubr.f32.vlgmr.msra.gmra.mrb[0].mxu0 %v8029_v24 }
  0xb8   : > { %2093 = vrot.lane.b32.xlu1 %v2060_v28, %s7884_s22  ;;  %7421 = vmatpush3.bf16.msra.mxu0 %v8093_v60 }
  0xb9   : > { %7423 = vmatprep.subr.bf16.mxu0 %v7422_v33  ;;  %7103 = vmatprep.mubr.f32.mxu0 %v8047_v32 }
  0xbb   : > { %7104 = vmatmul.mubr.f32.gmra.mrb[2].mxu0 %v8054_v37 }
  0xbc   : > { %2095 = vrot.lane.b32.xlu1 %v2064_v34, %s7884_s22  ;;  %7106 = vmatprep.mubr.f32.mxu0 %v8072_v48 }
  0xbf   : > { %7107 = vmatmul.mubr.f32.gmra.mrb[4].mxu0 %v8082_v55 }
  0xc0   : > { %7113 = vmatprep.mubr.f32.mxu0 %v8002_v8 }
  0xc3   : > { %7114 = vmatmul.mubr.f32.vlgmr.msra.gmra.mrb[0].mxu0 %v8044_v31 }
  0xc4   : > { %7425 = vmatpush3.bf16.msra.mxu0 %v7422_v33  ;;  %7116 = vmatprep.mubr.f32.mxu0 %v8066_v44 }
  0xc5   : > { %7427 = vmatprep.subr.bf16.mxu0 %v8093_v60 }
  0xc7   : > { %7117 = vmatmul.mubr.f32.gmra.mrb[2].mxu0 %v8076_v51 }
  0xc8   : > { %7119 = vmatprep.mubr.f32.mxu0 %v8098_v63 }
  0xcb   : > { %7120 = vmatmul.mubr.f32.gmra.mrb[4].mxu0 %v8116_v11 }
  0xcc   : > { %7126 = vmatprep.mubr.f32.mxu0 %v7995_v6 }
  0xcf   : > { %7127 = vmatmul.mubr.f32.vlgmr.msra.gmra.mrb[0].mxu0 %v8016_v17 }
  0xd0   : > { %7429 = vmatpush3.bf16.msra.mxu0 %v8093_v60  ;;  %7129 = vmatprep.mubr.f32.mxu0 %v8031_v25 }
  0xd3   : > { %7130 = vmatmul.mubr.f32.gmra.mrb[2].mxu0 %v8036_v27 }
  0xd4   : > { %7132 = vmatprep.mubr.f32.mxu0 %v8050_v35 }
  0xd7   : > { %7133 = vmatmul.mubr.f32.gmra.mrb[4].mxu0 %v8058_v41 }
  0xd8   : > { %7139 = vmatprep.mubr.f32.mxu0 %v7995_v6 }
  0xdb   : > { %7140 = vmatmul.mubr.f32.vlgmr.msra.gmra.mrb[0].mxu0 %v8016_v17 }
  0xdc   : > { %7142 = vmatprep.mubr.f32.mxu0 %v8031_v25 }
  0xdf   : > { %7143 = vmatmul.mubr.f32.gmra.mrb[2].mxu0 %v8036_v27 }
  0xe0   : > { %7145 = vmatprep.mubr.f32.mxu0 %v8050_v35 }
  0xe3   : > { %7146 = vmatmul.mubr.f32.gmra.mrb[4].mxu0 %v8058_v41 }
  0xe4   : > { %7242 = vmatprep.mubr.f32.mxu0 %v8006_v10 }
 0x1ae   : > { %v7141_v52 = vpop.f32.mrb[0].mxu0 }
 0x1af   : > { %v1366_v60 = vcombine.high %v7141_v52, %v7141_v52  ;;  %v1373_v61 = vrot.slane %v7141_v52, %v8040_v29  ;;  %v1165_v5 = vpop.f32.mrb[1].mxu0 }
 0x1b0   : > { %v1324_v9 = vrot.slane %v1165_v5, %v8040_v29  ;;  %v1317_v50 = vcombine.high %v1165_v5, %v1165_v5 }
 0x1b1   : > { %v1380_v38 = vrot.slane %v1366_v60, %v8040_v29  ;;  %v1389_v40 = vrot.slane %v1373_v61, %v8040_v29  ;;  %v1381_v10 = vcombine.high %v1373_v61, %v1373_v61 }
 0x1b2   : > { %v7144_v45 = vpop.f32.mrb[2].mxu0  ;;  %v1340_v53 = vrot.slane %v1324_v9, %v8040_v29  ;;  %v1331_v16 = vrot.slane %v1317_v50, %v8040_v29  ;;  %v1332_v61 = vcombine.high %v1324_v9, %v1324_v9 }
 0x1b3   : > { %v1396_v47 = vrot.slane %v1380_v38, %v8040_v29  ;;  %v8277_v56 = vpop.f32.mrb[3].mxu0  ;;  %v1650_v62 = vrot.slane %v1389_v40, %v8061_v42  ;;  %v1403_v28 = vrot.slane %v1381_v10, %v8040_v29  ;;  %v1411_v60 = vcombine.high %v1389_v40, %v1389_v40 }
 0x1b4   : > { %v1362_v19 = vcombine.high %v1340_v53, %v1340_v53  ;;  %v1618_v33 = vrot.slane %v1340_v53, %v8061_v42  ;;  %v1347_v34 = vrot.slane %v1331_v16, %v8040_v29  ;;  %v1473_v50 = vrot.slane %v7144_v45, %v8040_v29 }
 0x1b5   : > { %v1666_v12 = vrot.slane %v1396_v47, %v8061_v42  ;;  %1695 = vrot.lane.b32.xlu1 %v1650_v62, %s7882_s26  ;;  %v1654_v5 = vrot.slane %v1403_v28, %v8061_v42  ;;  %v1354_v53 = vrot.slane %v1332_v61, %v8040_v29  ;;  %v1658_v10 = vrot.slane %v1411_v60, %v8061_v42 }
 0x1b6   : > { %v8280_v3 = vpop.f32.mrb[4].mxu0  ;;  %v1626_v52 = vrot.slane %v1362_v19, %v8061_v42  ;;  %v1634_v62 = vrot.slane %v1347_v34, %v8061_v42  ;;  %v1382_v19 = vcombine.high %v1380_v38, %v1380_v38  ;;  %v1333_v38 = vcombine.high %v1331_v16, %v1331_v16 }
 0x1b7   : > { %v8284_v20 = vpop.f32.mrb[5].mxu0  ;;  %1703 = vrot.lane.b32.xlu0 %v1666_v12, %s7882_s26  ;;  %v1413_v12 = vcombine.high %v1403_v28, %v1403_v28  ;;  %v1622_v40 = vrot.slane %v1354_v53, %v8061_v42  ;;  %v1412_v28 = vcombine.high %v1396_v47, %v1396_v47  ;;  %v1424_v61 = vrot.slane %v8277_v56, %v8040_v29 }
 0x1b8   : > { %v1466_v47 = vcombine.high %v7144_v45, %v7144_v45  ;;  %v1517_v31 = vcombine.high %v8284_v20, %v8284_v20 }
 0x1b9   : > { %1679 = vrot.lane.b32.xlu1 %v1618_v33, %s7882_s26  ;;  %v1489_v33 = vrot.slane %v1473_v50, %v8040_v29  ;;  %v1662_v9 = vrot.slane %v1413_v12, %v8061_v42  ;;  %v1674_v60 = vrot.slane %v1412_v28, %v8061_v42  ;;  %v1364_v12 = vcombine.high %v1354_v53, %v1354_v53 }
 0x1ba   : > { %v1480_v16 = vrot.slane %v1466_v47, %v8040_v29  ;;  %v1481_v28 = vcombine.high %v1473_v50, %v1473_v50 }
 0x1bb   : > { %1683 = vrot.lane.b32.xlu0 %v1626_v52, %s7882_s26  ;;  %v1762_v52 = vrot.slane %v1489_v33, %v8061_v42  ;;  %v1511_v47 = vcombine.high %v1489_v33, %v1489_v33 }
 0x1bc   : > { %v1496_v45 = vrot.slane %v1480_v16, %v8040_v29 }
 0x1bd   : > { %1697 = vrot.lane.b32.xlu1 %v1654_v5, %s7882_s26  ;;  %v1410_v5 = vrot.slane %v1382_v19, %v8040_v29  ;;  %v1440_v19 = vrot.slane %v1424_v61, %v8040_v29 }
 0x1bf   : > { %1687 = vrot.lane.b32.xlu0 %v1634_v62, %s7882_s26  ;;  %v1670_v62 = vrot.slane %v1410_v5, %v8061_v42  ;;  %v1462_v50 = vcombine.high %v1440_v19, %v1440_v19 }
 0x1c1   : > { %1699 = vrot.lane.b32.xlu1 %v1658_v10, %s7882_s26  ;;  %v1361_v10 = vrot.slane %v1333_v38, %v8040_v29  ;;  %v1417_v38 = vcombine.high %v8277_v56, %v8277_v56 }
 0x1c3   : > { %1701 = vrot.lane.b32.xlu0 %v1662_v9, %s7882_s26  ;;  %v1630_v9 = vrot.slane %v1364_v12, %v8061_v42  ;;  %v1638_v53 = vrot.slane %v1361_v10, %v8061_v42  ;;  %v1778_v12 = vrot.slane %v1496_v45, %v8061_v42 }
 0x1c5   : > { %1681 = vrot.lane.b32.xlu1 %v1622_v40, %s7882_s26  ;;  %v1363_v40 = vcombine.high %v1347_v34, %v1347_v34  ;;  %v1431_v34 = vrot.slane %v1417_v38, %v8040_v29 }
 0x1c7   : > { %2129 = vrot.lane.b32.xlu0 %v1762_v52, %s7885_s23  ;;  %v8339_v56 = vrot.slane %v1431_v34, %v8040_v29 }
 0x1c9   : > { %1707 = vrot.lane.b32.xlu1 %v1674_v60, %s7882_s26  ;;  %v1730_v60 = vrot.slane %v1440_v19, %v8061_v42  ;;  %v1746_v33 = vrot.slane %v8339_v56, %v8061_v42  ;;  %v1414_v19 = vcombine.high %v1410_v5, %v1410_v5  ;;  %v1573_v5 = vrot.slane %v8280_v3, %v8040_v29 }
 0x1cb   : > { %1705 = vrot.lane.b32.xlu0 %v1670_v62, %s7882_s26  ;;  %v1503_v62 = vrot.slane %v1481_v28, %v8040_v29  ;;  %v1482_v28 = vcombine.high %v1480_v16, %v1480_v16  ;;  %v1678_v38 = vrot.slane %v1414_v19, %v8061_v42  ;;  %v1365_v19 = vcombine.high %v1361_v10, %v1361_v10 }
 0x1cc   : > { %v1581_v8 = vcombine.high %v1573_v5, %v1573_v5 }
 0x1cd   : > { %1807 = vrot.lane.b32.xlu1 %v1762_v52, %s7886_s24  ;;  %v1642_v52 = vrot.slane %v1363_v40, %v8061_v42  ;;  %v1770_v40 = vrot.slane %v1511_v47, %v8061_v42  ;;  %v1432_v47 = vcombine.high %v1424_v61, %v1424_v61  ;;  %v1589_v61 = vrot.slane %v1573_v5, %v8040_v29 }
 0x1cf   : > { %1685 = vrot.lane.b32.xlu0 %v1630_v9, %s7882_s26  ;;  %v1766_v9 = vrot.slane %v1503_v62, %v8061_v42 }
 0x1d1   : > { %1689 = vrot.lane.b32.xlu1 %v1638_v53, %s7882_s26  ;;  %v1738_v53 = vrot.slane %v1462_v50, %v8061_v42  ;;  %v8354_v50 = vrot.slane %v1482_v28, %v8040_v29  ;;  %v1433_v28 = vcombine.high %v1431_v34, %v1431_v34  ;;  %v1566_v34 = vcombine.high %v8280_v3, %v8280_v3 }
 0x1d3   : > { %2113 = vrot.lane.b32.xlu0 %v1730_v60, %s7885_s23  ;;  %v8362_v16 = vrot.slane %v8354_v50, %v8061_v42  ;;  %v8384_v10 = vrot.slane %v1433_v28, %v8040_v29  ;;  %v1514_v32 = vcombine.high %v8354_v50, %v8354_v50 }
 0x1d5   : > { %1691 = vrot.lane.b32.xlu1 %v1642_v52, %s7882_s26  ;;  %v1465_v50 = vcombine.high %v8384_v10, %v8384_v10 }
 0x1d7   : > { %1791 = vrot.lane.b32.xlu0 %v1730_v60, %s7886_s24  ;;  %v1513_v60 = vcombine.high %v1503_v62, %v1503_v62  ;;  %v1512_v62 = vcombine.high %v1496_v45, %v1496_v45  ;;  %v8376_v45 = vpop.permute.xlu1 %2067  ;;  %v1758_v27 = vrot.slane %v1465_v50, %v8061_v42 }
 0x1d9   : > { %1815 = vrot.lane.b32.xlu1 %v1778_v12, %s7886_s24  ;;  %v1774_v52 = vrot.slane %v1513_v60, %v8061_v42  ;;  %v1874_v60 = vrot.slane %v1589_v61, %v8061_v42 }
 0x1db   : > { %2131 = vrot.lane.b32.xlu0 %v1766_v9, %s7885_s23 }
 0x1dd   : > { %2117 = vrot.lane.b32.xlu1 %v1738_v53, %s7885_s23 }
 0x1df   : > { %2133 = vrot.lane.b32.xlu0 %v1770_v40, %s7885_s23 }
 0x1e1   : > { %2121 = vrot.lane.b32.xlu1 %v1746_v33, %s7885_s23 }
 0x1e3   : > { %2137 = vrot.lane.b32.xlu0 %v1778_v12, %s7885_s23  ;;  %v1454_v12 = vrot.slane %v1432_v47, %v8040_v29 }
 0x1e5   : > { %1795 = vrot.lane.b32.xlu1 %v1738_v53, %s7886_s24  ;;  %v8370_v53 = vrot.slane %v1512_v62, %v8061_v42  ;;  %v8386_v62 = vpop.permute.xlu1 %2083 }
 0x1e7   : > { %1709 = vrot.lane.b32.xlu0 %v1678_v38, %s7882_s26  ;;  %v1464_v38 = vcombine.high %v1454_v12, %v1454_v12 }
 0x1e9   : > { %2135 = vrot.lane.b32.xlu1 %v1774_v52, %s7885_s23  ;;  %v1742_v47 = vrot.slane %v1464_v38, %v8061_v42  ;;  %v8398_v28 = vpop.permute.xlu1 %2073  ;;  %v1580_v38 = vrot.slane %v1566_v34, %v8040_v29  ;;  %v1611_v34 = vcombine.high %v1589_v61, %v1589_v61 }
 0x1eb   : > { %1809 = vrot.lane.b32.xlu0 %v1766_v9, %s7886_s24  ;;  %v1734_v9 = vrot.slane %v1454_v12, %v8061_v42  ;;  %v1524_v12 = vrot.slane %v8284_v20, %v8040_v29  ;;  %v8407_v3 = vrot.slane %v1580_v38, %v8040_v29  ;;  %v1882_v61 = vrot.slane %v1611_v34, %v8061_v42 }
 0x1ec   : > { %v1582_v7 = vcombine.high %v1580_v38, %v1580_v38 }
 0x1ed   : > { %2139 = vrot.lane.b32.xlu1 %v8362_v16, %s7885_s23  ;;  %v8410_v63 = vpop.permute.xlu1 %2071  ;;  %v1532_v51 = vcombine.high %v1524_v12, %v1524_v12 }
 0x1ef   : > { %1811 = vrot.lane.b32.xlu0 %v1770_v40, %s7886_s24  ;;  %v1646_v40 = vrot.slane %v1365_v19, %v8061_v42  ;;  %v1750_v19 = vrot.slane %v8384_v10, %v8061_v42 }
 0x1f1   : > { %2141 = vrot.lane.b32.xlu1 %v8370_v53, %s7885_s23  ;;  %v8425_v44 = vpop.permute.xlu1 %2087 }
 0x1f3   : > { %2115 = vrot.lane.b32.xlu0 %v1734_v9, %s7885_s23 }
 0x1f5   : > { %1919 = vrot.lane.b32.xlu1 %v1874_v60, %s7885_s23  ;;  %v8442_v48 = vpop.permute.xlu1 %2075 }
 0x1f7   : > { %1693 = vrot.lane.b32.xlu0 %v1646_v40, %s7882_s26  ;;  %v1540_v40 = vrot.slane %v1524_v12, %v8040_v29  ;;  %s7887_s26 = smov 20  }
 0x1f9   : > { %2119 = vrot.lane.b32.xlu1 %v1742_v47, %s7885_s23  ;;  %v1842_v11 = vrot.slane %v1540_v40, %v8061_v42 }
 0x1fb   : > { %1793 = vrot.lane.b32.xlu0 %v1734_v9, %s7886_s24  ;;  %v8402_v9 = vpop.permute.xlu0 %2065 }
 0x1fd   : > { %2123 = vrot.lane.b32.xlu1 %v1750_v19, %s7885_s23 }
 0x1ff   : > { %1799 = vrot.lane.b32.xlu0 %v1746_v33, %s7886_s24  ;;  %v8413_v33 = vpop.permute.xlu0 %2081 }
 0x201   : > { %1797 = vrot.lane.b32.xlu1 %v1742_v47, %s7886_s24  ;;  %v8418_v47 = vrot.slane %v8407_v3, %v8061_v42 }
 0x203   : > { %2177 = vrot.lane.b32.xlu0 %v1874_v60, %s7887_s26  ;;  %v1463_v60 = vcombine.high %v8339_v56, %v8339_v56  ;;  %v8431_v12 = vpop.permute.xlu0 %2069  ;;  %v1562_v56 = vcombine.high %v1540_v40, %v1540_v40 }
 0x205   : > { %1903 = vrot.lane.b32.xlu1 %v1842_v11, %s7885_s23  ;;  %v8434_v55 = vrot.slane %v1463_v60, %v8061_v42  ;;  %v1850_v60 = vrot.slane %v1562_v56, %v8061_v42 }
 0x207   : > { %1813 = vrot.lane.b32.xlu0 %v1774_v52, %s7886_s24  ;;  %v1554_v52 = vrot.slane %v1532_v51, %v8040_v29  ;;  %v1603_v51 = vrot.slane %v1581_v8, %v8040_v29  ;;  %v8445_v5 = vpop.permute.xlu0 %2085 }
 0x209   : > { %2185 = vrot.lane.b32.xlu1 %v8418_v47, %s7887_s26  ;;  %v1846_v20 = vrot.slane %v1554_v52, %v8061_v42  ;;  %v1878_v37 = vrot.slane %v1603_v51, %v8061_v42  ;;  %v1613_v41 = vcombine.high %v1603_v51, %v1603_v51 }
 0x20b   : > { %2161 = vrot.lane.b32.xlu0 %v1842_v11, %s7887_s26  ;;  %v1531_v11 = vrot.slane %v1517_v31, %v8040_v29  ;;  %v8453_v31 = vpop.permute.xlu1 %2077  ;;  %v8456_v40 = vpop.permute.xlu0 %2089 }
 0x20d   : > { %1923 = vrot.lane.b32.xlu1 %v1882_v61, %s7885_s23  ;;  %v1547_v34 = vrot.slane %v1531_v11, %v8040_v29  ;;  %v1533_v38 = vcombine.high %v1531_v11, %v1531_v11 }
 0x20f   : > { %2125 = vrot.lane.b32.xlu0 %v8434_v55, %s7885_s23  ;;  %v1858_v8 = vrot.slane %v1547_v34, %v8061_v42  ;;  %v8465_v56 = vpop.permute.xlu1 %2093  ;;  %v8468_v24 = vpop.permute.xlu0 %2091  ;;  %v1561_v11 = vrot.slane %v1533_v38, %v8040_v29 }
 0x211   : > { %2163 = vrot.lane.b32.xlu1 %v1846_v20, %s7887_s26 }
 0x213   : > { %1801 = vrot.lane.b32.xlu0 %v1750_v19, %s7886_s24  ;;  %v8463_v19 = vrot.slane %v1514_v32, %v8061_v42  ;;  %v8476_v32 = vpop.permute.xlu1 %2095  ;;  %v8480_v35 = vpop.permute.xlu0 %2079 }
 0x215   : > { %2165 = vrot.lane.b32.xlu1 %v1850_v60, %s7887_s26 }
 0x217   : > { %2179 = vrot.lane.b32.xlu0 %v1878_v37, %s7887_s26 }
 0x219   : > { %2169 = vrot.lane.b32.xlu1 %v1858_v8, %s7887_s26 }
 0x21b   : > { %2181 = vrot.lane.b32.xlu0 %v1882_v61, %s7887_s26  ;;  %v1886_v61 = vrot.slane %v1613_v41, %v8061_v42  ;;  %v1612_v41 = vcombine.high %v8407_v3, %v8407_v3 }
 0x21d   : > { %1905 = vrot.lane.b32.xlu1 %v1846_v20, %s7885_s23  ;;  %v1610_v20 = vrot.slane %v1582_v7, %v8040_v29 }
 0x21f   : > { %2143 = vrot.lane.b32.xlu0 %v8463_v19, %s7885_s23  ;;  %v1894_v51 = vrot.slane %v1610_v20, %v8061_v42  ;;  %v1614_v25 = vcombine.high %v1610_v20, %v1610_v20  ;;  %v1563_v20 = vcombine.high %v1547_v34, %v1547_v34 }
 0x221   : > { %1907 = vrot.lane.b32.xlu1 %v1850_v60, %s7885_s23  ;;  %v1902_v6 = vrot.slane %v1614_v25, %v8061_v42  ;;  %v1866_v23 = vrot.slane %v1563_v20, %v8061_v42 }
 0x223   : > { %1921 = vrot.lane.b32.xlu0 %v1878_v37, %s7885_s23  ;;  %v1564_v37 = vcombine.high %v1554_v52, %v1554_v52  ;;  %v1898_v52 = vrot.slane %v1612_v41, %v8061_v42 }
 0x225   : > { %2183 = vrot.lane.b32.xlu1 %v1886_v61, %s7887_s26  ;;  %v1854_v50 = vrot.slane %v1564_v37, %v8061_v42  ;;  %v1862_v37 = vrot.slane %v1561_v11, %v8061_v42 }
 0x227   : > { %2127 = vrot.lane.b32.xlu0 %v1758_v27, %s7885_s23  ;;  %v8485_v10 = vpop.permute.xlu1 %1695 }
 0x229   : > { %v8488_v60 = vpop.permute.xlu0 %1703  ;;  %2187 = vrot.lane.b32.xlu1 %v1894_v51, %s7887_s26 }
 0x22b   : > { %1911 = vrot.lane.b32.xlu0 %v1858_v8, %s7885_s23  ;;  %v8494_v7 = vpop.permute.xlu1 %1679  ;;  %v1565_v8 = vcombine.high %v1561_v11, %v1561_v11 }
 0x22d   : > { %v8498_v17 = vpop.permute.xlu0 %1683  ;;  %2167 = vrot.lane.b32.xlu1 %v1854_v50, %s7887_s26  ;;  %v1870_v41 = vrot.slane %v1565_v8, %v8061_v42 }
 0x22f   : > { %2189 = vrot.lane.b32.xlu0 %v1898_v52, %s7887_s26  ;;  %v8503_v3 = vpop.permute.xlu1 %1697 }
 0x231   : > { %v8506_v49 = vpop.permute.xlu0 %1687  ;;  %2191 = vrot.lane.b32.xlu1 %v1902_v6, %s7887_s26 }
 0x233   : > { %2171 = vrot.lane.b32.xlu0 %v1862_v37, %s7887_s26  ;;  %v8511_v38 = vpop.permute.xlu1 %1699 }
 0x235   : > { %v8514_v39 = vpop.permute.xlu0 %1701  ;;  %2175 = vrot.lane.b32.xlu1 %v1870_v41, %s7887_s26 }
 0x237   : > { %2173 = vrot.lane.b32.xlu0 %v1866_v23, %s7887_s26  ;;  %v8519_v25 = vpop.permute.xlu1 %1681 }
 0x239   : > { %v2130_v11 = vpop.permute.xlu0 %2129  ;;  %1817 = vrot.lane.b32.xlu1 %v8362_v16, %s7886_s24 }
 0x23b   : > { %1925 = vrot.lane.b32.xlu0 %v1886_v61, %s7885_s23  ;;  %v8524_v34 = vpop.permute.xlu1 %1707 }
 0x23d   : > { %v8526_v15 = vpop.permute.xlu0 %1705  ;;  %1927 = vrot.lane.b32.xlu1 %v8418_v47, %s7885_s23 }
 0x23f   : > { %1803 = vrot.lane.b32.xlu0 %v8434_v55, %s7886_s24  ;;  %v8532_v8 = vpop.permute.xlu1 %1807 }
 0x240   : > { %10476 = vst [vmem:[#allocation37_spill] sm:$0xff] %v8532_v8 }
 0x241   : > { %v8534_v20 = vpop.permute.xlu0 %1685  ;;  %1805 = vrot.lane.b32.xlu1 %v1758_v27, %s7886_s24 }
 0x243   : > { %1909 = vrot.lane.b32.xlu0 %v1854_v50, %s7885_s23  ;;  %v8538_v16 = vpop.permute.xlu1 %1689 }
 0x245   : > { %v2114_v61 = vpop.permute.xlu0 %2113  ;;  %1915 = vrot.lane.b32.xlu1 %v1866_v23, %s7885_s23 }
 0x247   : > { %1913 = vrot.lane.b32.xlu0 %v1862_v37, %s7885_s23  ;;  %v8542_v58 = vpop.permute.xlu1 %1691 }
 0x249   : > { %v8544_v47 = vpop.permute.xlu0 %1791  ;;  %1821 = vrot.lane.b32.xlu1 %v8463_v19, %s7886_s24 }
 0x24a   : > { %10477 = vst [vmem:[#allocation38_spill] sm:$0xff] %v8544_v47 }
 0x24b   : > { %1819 = vrot.lane.b32.xlu0 %v8370_v53, %s7886_s24  ;;  %v8550_v27 = vpop.permute.xlu1 %1815 }
 0x24c   : > { %10478 = vst [vmem:[#allocation39_spill] sm:$0xff] %v8550_v27 }
 0x24d   : > { %v2132_v55 = vpop.permute.xlu0 %2131  ;;  %1931 = vrot.lane.b32.xlu1 %v1898_v52, %s7885_s23 }
 0x24f   : > { %1929 = vrot.lane.b32.xlu0 %v1894_v51, %s7885_s23  ;;  %v2118_v23 = vpop.permute.xlu1 %2117 }
 0x251   : > { %v2134_v50 = vpop.permute.xlu0 %2133 }
 0x253   : > { %1933 = vrot.lane.b32.xlu0 %v1902_v6, %s7885_s23  ;;  %v2122_v37 = vpop.permute.xlu1 %2121 }
 0x255   : > { %v2138_v29 = vpop.permute.xlu0 %2137 }
 0x257   : > { %1917 = vrot.lane.b32.xlu0 %v1870_v41, %s7885_s23  ;;  %v8556_v13 = vpop.permute.xlu1 %1795  ;;  %s7897_s23 = smov 24  }
 0x258   : > { %10479 = vst [vmem:[#allocation40_spill] sm:$0xff] %v8556_v13 }
 0x259   : > { %v8558_v19 = vpop.permute.xlu0 %1709 }
 0x25b   : > { %v8560_v53 = vpop.permute.xlu1 %2135 }
 0x25d   : > { %v8562_v30 = vpop.permute.xlu0 %1809 }
 0x25e   : > { %10480 = vst [vmem:[#allocation41_spill] sm:$0xff] %v8562_v30 }
 0x25f   : > { %v8564_v27 = vpop.permute.xlu1 %2139 }
 0x261   : > { %v8566_v52 = vpop.permute.xlu0 %1811 }
 0x262   : > { %10481 = vst [vmem:[#allocation42_spill] sm:$0xff] %v8566_v52  ;;  %v2217_v52 = vsel %vm1967_vm3, %v8413_v33, %v8485_v10  ;;  %v2209_v33 = vsel %vm1967_vm3, %v8402_v9, %v8494_v7 }
 0x263   : > { %v8568_v51 = vpop.permute.xlu1 %2141 }
 0x265   : > { %v2116_v47 = vpop.permute.xlu0 %2115 }
 0x267   : > { %v8570_v6 = vpop.permute.xlu1 %1919 }
 0x268   : > { %10482 = vst [vmem:[#allocation43_spill] sm:$0xff] %v8570_v6  ;;  %v2233_v6 = vsel %vm506_vm1, %v2217_v52, %v2130_v11 }
 0x269   : > { %v8572_v18 = vpop.permute.xlu0 %1693 }
 0x26b   : > { %v8574_v41 = vpop.permute.xlu1 %2119 }
 0x26d   : > { %v8576_v13 = vpop.permute.xlu0 %1793 }
 0x26e   : > { %10483 = vst [vmem:[#allocation44_spill] sm:$0xff] %v8576_v13 }
 0x26f   : > { %v8578_v2 = vpop.permute.xlu1 %2123 }
 0x271   : > { %v8580_v43 = vpop.permute.xlu0 %1799 }
 0x272   : > { %10484 = vst [vmem:[#allocation45_spill] sm:$0xff] %v8580_v43  ;;  %v2221_v43 = vsel %vm1967_vm3, %v8456_v40, %v8488_v60 }
 0x273   : > { %v8585_v30 = vpop.permute.xlu1 %1797  ;;  %v2237_v11 = vsel %vm506_vm1, %v2221_v43, %v2138_v29  ;;  %v2211_v29 = vsel %vm1967_vm3, %v8431_v12, %v8498_v17  ;;  %v2218_v43 = vsel %vm1967_vm3, %v8386_v62, %v8503_v3  ;;  %v2213_v12 = vsel %vm1967_vm3, %v8398_v28, %v8506_v49 }
 0x274   : > { %10485 = vst [vmem:[#allocation46_spill] sm:$0xff] %v8585_v30  ;;  %v2227_v9 = vsel %vm506_vm1, %v2211_v29, %v2118_v23  ;;  %v2219_v62 = vsel %vm1967_vm3, %v8445_v5, %v8511_v38  ;;  %v2229_v23 = vsel %vm506_vm1, %v2213_v12, %v2122_v37  ;;  %v2210_v28 = vsel %vm1967_vm3, %v8376_v45, %v8519_v25 }
 0x275   : > { %v2178_v8 = vpop.permute.xlu0 %2177  ;;  %v2226_v5 = vsel %vm506_vm1, %v2210_v28, %v2116_v47  ;;  %v2216_v28 = vsel %vm1967_vm3, %v8480_v35, %v8572_v18  ;;  %v2453_v35 = vld [vmem:[%s10309_s4 + $0x8] sm:$0xff] }
 0x276   : > { %v2250_v0 = vsel %vm2241_vm4, %v2233_v6, %v2178_v8  ;;  %v2225_v8 = vsel %vm506_vm1, %v2209_v33, %v2114_v61  ;;  %v2234_v33 = vsel %vm506_vm1, %v2218_v43, %v2132_v55 }
 0x277   : > { %2404 = vrot.lane.b32.xlu1 %v2250_v0, %s7888_s28  ;;  %v8590_v13 = vpop.permute.xlu1 %1903 }
 0x278   : > { %10486 = vst [vmem:[#allocation47_spill] sm:$0xff] %v8590_v13 }
 0x279   : > { %v8592_v26 = vpop.permute.xlu0 %1813 }
 0x27a   : > { %10487 = vst [vmem:[#allocation48_spill] sm:$0xff] %v8592_v26 }
 0x27b   : > { %v2186_v52 = vpop.permute.xlu1 %2185 }
 0x27c   : > { %v2254_v6 = vsel %vm2241_vm4, %v2237_v11, %v2186_v52 }
 0x27d   : > { %v2162_v0 = vpop.permute.xlu0 %2161  ;;  %2412 = vrot.lane.b32.xlu0 %v2254_v6, %s7888_s28 }
 0x27e   : > { %v2242_v13 = vsel %vm2241_vm4, %v2225_v8, %v2162_v0  ;;  %v2235_v8 = vsel %vm506_vm1, %v2219_v62, %v2134_v50 }
 0x27f   : > { %2388 = vrot.lane.b32.xlu1 %v2242_v13, %s7888_s28  ;;  %v8606_v26 = vpop.permute.xlu1 %1923 }
 0x281   : > { %v2126_v40 = vpop.permute.xlu0 %2125 }
 0x283   : > { %v2164_v30 = vpop.permute.xlu1 %2163 }
 0x284   : > { %v2243_v50 = vsel %vm2241_vm4, %v2226_v5, %v2164_v30  ;;  %v2222_v30 = vsel %vm1967_vm3, %v8468_v24, %v8526_v15 }
 0x285   : > { %v8608_v57 = vpop.permute.xlu0 %1801 }
 0x287   : > { %v2166_v61 = vpop.permute.xlu1 %2165 }
 0x288   : > { %v2244_v13 = vsel %vm2241_vm4, %v2227_v9, %v2166_v61 }
 0x289   : > { %v2180_v11 = vpop.permute.xlu0 %2179  ;;  %2392 = vrot.lane.b32.xlu0 %v2244_v13, %s7888_s28 }
 0x28a   : > { %v2251_v52 = vsel %vm2241_vm4, %v2234_v33, %v2180_v11  ;;  %v2220_v33 = vsel %vm1967_vm3, %v8425_v44, %v8514_v39 }
 0x28b   : > { %2406 = vrot.lane.b32.xlu1 %v2251_v52, %s7888_s28  ;;  %v2170_v55 = vpop.permute.xlu1 %2169  ;;  %v2236_v45 = vsel %vm506_vm1, %v2220_v33, %v8560_v53  ;;  %v2238_v52 = vsel %vm506_vm1, %v2222_v30, %v8564_v27  ;;  %v2212_v53 = vsel %vm1967_vm3, %v8410_v63, %v8534_v20  ;;  %v2214_v27 = vsel %vm1967_vm3, %v8442_v48, %v8538_v16  ;;  %v2455_v30 = vld [vmem:[%s10309_s4 + $0x18] sm:$0xff] }
 0x28c   : > { %v2246_v6 = vsel %vm2241_vm4, %v2229_v23, %v2170_v55  ;;  %v2228_v23 = vsel %vm506_vm1, %v2212_v53, %v8574_v41  ;;  %v2215_v41 = vsel %vm1967_vm3, %v8453_v31, %v8542_v58  ;;  %v2452_v31 = vld [vmem:[%s10309_s4] sm:$0xff]  ;;  %v2524_v53 = vand.u32 4294901760, %v2455_v30 }
 0x28d   : > { %v2182_v0 = vpop.permute.xlu0 %2181  ;;  %2396 = vrot.lane.b32.xlu0 %v2246_v6, %s7888_s28  ;;  %v2231_v48 = vsel %vm506_vm1, %v2215_v41, %v2126_v40  ;;  %v2454_v40 = vld [vmem:[%s10309_s4 + $0x10] sm:$0xff] }
 0x28e   : > { %v2252_v29 = vsel %vm2241_vm4, %v2235_v8, %v2182_v0  ;;  %v2230_v0 = vsel %vm506_vm1, %v2214_v27, %v8578_v2  ;;  %v2223_v2 = vsel %vm1967_vm3, %v8465_v56, %v8524_v34  ;;  %v2224_v56 = vsel %vm1967_vm3, %v8476_v32, %v8558_v19 }
 0x28f   : > { %2408 = vrot.lane.b32.xlu1 %v2252_v29, %s7888_s28  ;;  %v8637_v43 = vpop.permute.xlu1 %1905 }
 0x291   : > { %v2144_v37 = vpop.permute.xlu0 %2143 }
 0x292   : > { %v2240_v32 = vsel %vm506_vm1, %v2224_v56, %v2144_v37 }
 0x293   : > { %2390 = vrot.lane.b32.xlu1 %v2243_v50, %s7888_s28  ;;  %v8642_v9 = vpop.permute.xlu1 %1907 }
 0x295   : > { %v8644_v61 = vpop.permute.xlu0 %1921 }
 0x297   : > { %v2184_v13 = vpop.permute.xlu1 %2183 }
 0x298   : > { %v2253_v11 = vsel %vm2241_vm4, %v2236_v45, %v2184_v13 }
 0x299   : > { %v2128_v47 = vpop.permute.xlu0 %2127  ;;  %2410 = vrot.lane.b32.xlu0 %v2253_v11, %s7888_s28  ;;  %v2515_v11 = vand.u32 4294901760, %v2452_v31 }
 0x29a   : > { %v2232_v50 = vsel %vm506_vm1, %v2216_v28, %v2128_v47  ;;  %v2518_v47 = vand.u32 4294901760, %v2453_v35 }
 0x29b   : > { %v2188_v12 = vpop.permute.xlu1 %2187  ;;  %v2607_v41 = vsub.f32 %v2452_v31, %v2515_v11 }
 0x29c   : > { %v2255_v62 = vsel %vm2241_vm4, %v2238_v52, %v2188_v12  ;;  %v2521_v52 = vand.u32 4294901760, %v2454_v40  ;;  %v2456_v12 = vld [vmem:[%s10309_s4 + $0x20] sm:$0xff]  ;;  %v8717_v27 = vpack.c.bf16 %v2518_v47, %v2515_v11  ;;  %v2614_v28 = vsub.f32 %v2453_v35, %v2518_v47 }
 0x29d   : > { %v8659_v44 = vpop.permute.xlu0 %1911  ;;  %2414 = vrot.lane.b32.xlu1 %v2255_v62, %s7888_s28  ;;  %v2239_v62 = vsel %vm506_vm1, %v2223_v2, %v8568_v51  ;;  %v2608_v51 = vand.u32 4294901760, %v2607_v41 }
 0x29e   : > { %7431 = vmatprep.subr.bf16.mxu1 %v8717_v27  ;;  %v2615_v37 = vand.u32 4294901760, %v2614_v28 }
 0x29f   : > { %v2168_v55 = vpop.permute.xlu1 %2167  ;;  %7433 = vmatpush3.bf16.msra.mxu1 %v8717_v27 }
 0x2a0   : > { %v2245_v24 = vsel %vm2241_vm4, %v2228_v23, %v2168_v55  ;;  %v2457_v23 = vld [vmem:[%s10309_s4 + $0x28] sm:$0xff] }
 0x2a1   : > { %v2190_v8 = vpop.permute.xlu0 %2189  ;;  %2394 = vrot.lane.b32.xlu0 %v2245_v24, %s7888_s28 }
 0x2a2   : > { %v2256_v55 = vsel %vm2241_vm4, %v2239_v62, %v2190_v8 }
 0x2a3   : > { %v2192_v6 = vpop.permute.xlu1 %2191 }
 0x2a4   : > { %v2257_v24 = vsel %vm2241_vm4, %v2240_v32, %v2192_v6  ;;  %v2609_v6 = vsub.f32 %v2607_v41, %v2608_v51 }
 0x2a5   : > { %v2172_v29 = vpop.permute.xlu0 %2171 }
 0x2a6   : > { %v2247_v63 = vsel %vm2241_vm4, %v2230_v0, %v2172_v29  ;;  %v2527_v0 = vand.u32 4294901760, %v2456_v12  ;;  %v8719_v29 = vpack.c.bf16 %v2524_v53, %v2521_v52 }
 0x2a7   : > { %2398 = vrot.lane.b32.xlu1 %v2247_v63, %s7888_s28  ;;  %v2176_v5 = vpop.permute.xlu1 %2175  ;;  %v2530_v63 = vand.u32 4294901760, %v2457_v23 }
 0x2a8   : > { %v2249_v45 = vsel %vm2241_vm4, %v2232_v50, %v2176_v5  ;;  %10488 = vst [vmem:[#allocation49_spill] sm:$0xff] %v8719_v29  ;;  %7435 = vmatprep.subr.bf16.mxu1 %v8719_v29  ;;  %v2616_v5 = vsub.f32 %v2614_v28, %v2615_v37  ;;  %v2628_v50 = vsub.f32 %v2455_v30, %v2524_v53 }
 0x2a9   : > { %v2174_v33 = vpop.permute.xlu0 %2173  ;;  %v8726_v8 = vpack.c.bf16 %v2530_v63, %v2527_v0  ;;  %7437 = vmatpush3.bf16.msra.mxu1 %v8719_v29  ;;  %v2635_v11 = vsub.f32 %v2456_v12, %v2527_v0  ;;  %v2642_v47 = vsub.f32 %v2457_v23, %v2530_v63  ;;  %v8746_v63 = vpack.c.bf16 %v2615_v37, %v2608_v51  ;;  %v8771_v37 = vld [vmem:[%s10308_s3 + $0x8] sm:$0xff] }
 0x2aa   : > { %v2248_v13 = vsel %vm2241_vm4, %v2231_v48, %v2174_v33  ;;  %v2621_v48 = vsub.f32 %v2454_v40, %v2521_v52  ;;  %v2610_v33 = vand.u32 4294901760, %v2609_v6  ;;  %v2617_v2 = vand.u32 4294901760, %v2616_v5  ;;  %10493 = vst [vmem:[#allocation54_spill] sm:$0xff] %v8771_v37 }
 0x2ab   : > { %2400 = vrot.lane.b32.xlu0 %v2248_v13, %s7888_s28  ;;  %2402 = vrot.lane.b32.xlu1 %v2249_v45, %s7888_s28  ;;  %10489 = vst [vmem:[#allocation50_spill] sm:$0xff] %v8726_v8  ;;  %v2629_v13 = vand.u32 4294901760, %v2628_v50  ;;  %v2636_v40 = vand.u32 4294901760, %v2635_v11  ;;  %v2643_v30 = vand.u32 4294901760, %v2642_v47  ;;  %v8736_v5 = vpack.c.bf16 %v2614_v28, %v2607_v41  ;;  %10490 = vst [vmem:[#allocation51_spill] sm:$0xff] %v8746_v63 }
 0x2ac   : > { %v2622_v45 = vand.u32 4294901760, %v2621_v48  ;;  %7439 = vmatprep.subr.bf16.mxu1 %v8726_v8  ;;  %v8730_v31 = vpack.c.bf16 %v2617_v2, %v2610_v33  ;;  %v8738_v33 = vpack.c.bf16 %v2628_v50, %v2621_v48  ;;  %v8742_v23 = vpack.c.bf16 %v2642_v47, %v2635_v11 }
 0x2ad   : > { %v2630_v56 = vsub.f32 %v2628_v50, %v2629_v13  ;;  %7441 = vmatpush3.bf16.msra.mxu1 %v8726_v8  ;;  %v2637_v53 = vsub.f32 %v2635_v11, %v2636_v40  ;;  %v8744_v0 = vpop.permute.xlu0 %1925 }
 0x2ae   : > { %v2623_v35 = vsub.f32 %v2621_v48, %v2622_v45  ;;  %7443 = vmatprep.subr.bf16.mxu1 %v8730_v31  ;;  %v8748_v2 = vpack.c.bf16 %v2629_v13, %v2622_v45  ;;  %v2269_v45 = vsub.s32 1, %v8022_v21  ;;  %v8777_v13 = vld [vmem:[%s10308_s3] sm:$0xff] }
 0x2af   : > { %2416 = vrot.lane.b32.xlu0 %v2256_v55, %s7888_s28  ;;  %2418 = vrot.lane.b32.xlu1 %v2257_v24, %s7888_s28  ;;  %v2631_v32 = vand.u32 4294901760, %v2630_v56  ;;  %v2644_v55 = vsub.f32 %v2642_v47, %v2643_v30  ;;  %v2638_v24 = vand.u32 4294901760, %v2637_v53  ;;  %10494 = vst [vmem:[#allocation55_spill] sm:$0xff] %v8777_v13  ;;  %v2276_v47 = vsub.s32 2, %v8022_v21 }
 0x2b0   : > { %v2624_v62 = vand.u32 4294901760, %v2623_v35  ;;  %10491 = vst [vmem:[#allocation52_spill] sm:$0xff] %v8748_v2  ;;  %v8750_v35 = vpop.permute.xlu1 %1817  ;;  %v2263_v63 = vrot.slane %v8777_v13, %v8061_v42 }
 0x2b1   : > { %v2645_v6 = vand.u32 4294901760, %v2644_v55  ;;  %v8752_v56 = vpop.permute.xlu0 %1803  ;;  %v2333_v55 = vrot.slane %v8771_v37, %v2276_v47 }
 0x2b2   : > { %v8734_v52 = vpack.c.bf16 %v2631_v32, %v2624_v62  ;;  %v8754_v62 = vpack.c.bf16 %v2643_v30, %v2636_v40  ;;  %v2326_v40 = vrot.slane %v8771_v37, %v2269_v45  ;;  %v2270_v30 = vrot.slane %v8777_v13, %v2269_v45 }
 0x2b3   : > { %v8740_v12 = vpack.c.bf16 %v2645_v6, %v2638_v24  ;;  %v2277_v24 = vrot.slane %v8777_v13, %v2276_v47  ;;  %v2283_v6 = vsub.s32 3, %v8022_v21  ;;  %v2319_v47 = vrot.slane %v8771_v37, %v8061_v42 }
 0x2b4   : > { %10492 = vst [vmem:[#allocation53_spill] sm:$0xff] %v8754_v62  ;;  %v8756_v41 = vpop.permute.xlu1 %1927  ;;  %2328 = vbcast.lane.b32.xlu1 %v2326_v40, 256  ;;  %2272 = vbcast.lane.b32.xlu0 %v2270_v30, 256  ;;  %v1960_v42 = vsel %vm503_vm2, %v8111_v4, %v8503_v3  ;;  %v10499_v3 = vld [vmem:[#allocation29_spill] sm:$0xff] }
 0x2b5   : > { %v8758_v28 = vpop.permute.xlu0 %1909  ;;  %v2284_v2 = vrot.slane %v8777_v13, %v2283_v6  ;;  %v2340_v40 = vrot.slane %v8771_v37, %v2283_v6  ;;  %v1951_v6 = vsel %vm503_vm2, %v8069_v46, %v8494_v7  ;;  %v1962_v46 = vsel %vm503_vm2, %v8182_v59, %v8514_v39  ;;  %v10498_v7 = vld [vmem:[#allocation37_spill] sm:$0xff]  ;;  %v10500_v59 = vld [vmem:[#allocation32_spill] sm:$0xff]  ;;  %v10504_v37 = vld [vmem:[#allocation39_spill] sm:$0xff] }
 0x2b6   : > { %v1954_v39 = vsel %vm503_vm2, %v10499_v3, %v8534_v20  ;;  %v10505_v3 = vld [vmem:[#allocation40_spill] sm:$0xff] }
 0x2b8   : > { %v8760_v48 = vpop.permute.xlu1 %1805  ;;  %2335 = vbcast.lane.b32.xlu1 %v2333_v55, 256  ;;  %2279 = vbcast.lane.b32.xlu0 %v2277_v24, 256 }
 0x2b9   : > { %v8762_v50 = vpop.permute.xlu0 %1913 }
 0x2bc   : > { %v8764_v11 = vpop.permute.xlu1 %1915  ;;  %2286 = vbcast.lane.b32.xlu1 %v2284_v2, 256  ;;  %2265 = vbcast.lane.b32.xlu0 %v2263_v63, 256  ;;  %v1959_v2 = vsel %vm503_vm2, %v8102_v1, %v8485_v10  ;;  %v1963_v63 = vsel %vm503_vm2, %v8174_v54, %v8488_v60  ;;  %v1955_v1 = vsel %vm503_vm2, %v8140_v22, %v8506_v49  ;;  %v10495_v10 = vld [vmem:[#allocation22_spill] sm:$0xff]  ;;  %v10497_v60 = vld [vmem:[#allocation31_spill] sm:$0xff] }
 0x2bd   : > { %v8766_v51 = vpop.permute.xlu0 %1819  ;;  %v1961_v54 = vsel %vm503_vm2, %v8154_v36, %v8511_v38  ;;  %v1964_v22 = vsel %vm503_vm2, %v10497_v60, %v8526_v15  ;;  %v1976_v36 = vsel %vm1967_vm3, %v1959_v2, %v10498_v7  ;;  %v1956_v38 = vsel %vm503_vm2, %v10500_v59, %v8538_v16  ;;  %v10503_v15 = vld [vmem:[#allocation38_spill] sm:$0xff] }
 0x2be   : > { %v1968_v60 = vsel %vm1967_vm3, %v1951_v6, %v10503_v15  ;;  %v1980_v2 = vsel %vm1967_vm3, %v1963_v63, %v10504_v37  ;;  %v10508_v37 = vld [vmem:[#allocation42_spill] sm:$0xff]  ;;  %v10511_v15 = vld [vmem:[#allocation45_spill] sm:$0xff] }
 0x2bf   : > { %v1978_v63 = vsel %vm1967_vm3, %v1961_v54, %v10508_v37 }
 0x2c0   : > { %v8780_v32 = vpop.permute.xlu1 %1821  ;;  %2342 = vbcast.lane.b32.xlu1 %v2340_v40, 256  ;;  %2321 = vbcast.lane.b32.xlu0 %v2319_v47, 256  ;;  %v1953_v47 = vsel %vm503_vm2, %v8124_v14, %v8498_v17  ;;  %v1952_v17 = vsel %vm503_vm2, %v10495_v10, %v8519_v25  ;;  %v10496_v14 = vld [vmem:[#allocation35_spill] sm:$0xff]  ;;  %v10501_v25 = vld [vmem:[#allocation44_spill] sm:$0xff] }
 0x2c1   : > { %v8784_v53 = vpop.permute.xlu0 %1929  ;;  %v1965_v4 = vsel %vm503_vm2, %v10496_v14, %v8524_v34  ;;  %v1969_v10 = vsel %vm1967_vm3, %v1952_v17, %v10501_v25  ;;  %v10502_v34 = vld [vmem:[#allocation34_spill] sm:$0xff]  ;;  %v1970_v16 = vsel %vm1967_vm3, %v1953_v47, %v10505_v3  ;;  %v10506_v17 = vld [vmem:[#allocation36_spill] sm:$0xff]  ;;  %v10510_v47 = vld [vmem:[#allocation33_spill] sm:$0xff] }
 0x2c2   : > { %v1957_v14 = vsel %vm503_vm2, %v10502_v34, %v8542_v58  ;;  %v8859_v20 = vsel %vm1984_vm5, %v1969_v10, %v8637_v43  ;;  %v8866_v59 = vsel %vm503_vm2, %v10506_v17, %v8558_v19  ;;  %v10507_v58 = vld [vmem:[#allocation41_spill] sm:$0xff]  ;;  %v10509_v43 = vld [vmem:[#allocation43_spill] sm:$0xff]  ;;  %v1958_v34 = vsel %vm503_vm2, %v10510_v47, %v8572_v18  ;;  %v10512_v3 = vld [vmem:[#allocation46_spill] sm:$0xff] }
 0x2c3   : > { %v1977_v25 = vsel %vm1967_vm3, %v1960_v42, %v10507_v58  ;;  %v8876_v10 = vsel %vm1984_vm5, %v1976_v36, %v10509_v43  ;;  %v1972_v19 = vsel %vm1967_vm3, %v1955_v1, %v10511_v15  ;;  %v1971_v42 = vsel %vm1967_vm3, %v1954_v39, %v10512_v3  ;;  %v10513_v17 = vld [vmem:[#allocation47_spill] sm:$0xff]  ;;  %v10514_v58 = vld [vmem:[#allocation48_spill] sm:$0xff] }
 0x2c4   : > { %v8789_v62 = vpop.permute.xlu1 %1931  ;;  %v1979_v54 = vsel %vm1967_vm3, %v1962_v46, %v10514_v58  ;;  %v8893_v36 = vsel %vm1984_vm5, %v1978_v63, %v8606_v26  ;;  %v8897_v18 = vsel %vm1984_vm5, %v1971_v42, %v8758_v28  ;;  %v1973_v39 = vsel %vm1967_vm3, %v1956_v38, %v8608_v57 }
 0x2c5   : > { %v8794_v45 = vpop.permute.xlu0 %1933  ;;  %10515 = vst [vmem:[#allocation22_spill] sm:$0xff] %v8897_v18  ;;  %v8909_v63 = vsel %vm1984_vm5, %v1977_v25, %v8644_v61  ;;  %v8913_v28 = vsel %vm1984_vm5, %v1972_v19, %v8659_v44  ;;  %v8921_v38 = vsel %vm1984_vm5, %v1979_v54, %v8744_v0  ;;  %v8929_v44 = vsel %vm1984_vm5, %v1980_v2, %v8756_v41 }
 0x2c6   : > { %v1974_v0 = vsel %vm1967_vm3, %v1957_v14, %v8752_v56  ;;  %v1975_v2 = vsel %vm1967_vm3, %v1958_v34, %v8760_v48  ;;  %v1982_v14 = vsel %vm1967_vm3, %v1965_v4, %v8766_v51 }
 0x2c9   : > { %v8801_v30 = vpop.permute.xlu0 %1917 }
 0x2ca   : > { %v8963_v15 = vsel %vm1984_vm5, %v1975_v2, %v8801_v30 }
 0x2cb   : > { %10517 = vst [vmem:[#allocation31_spill] sm:$0xff] %v8963_v15 }
 0x2e9   : > { %v8796_v8 = vpop.permute.xlu1 %2404 }
 0x2ef   : > { %v8803_v24 = vpop.permute.xlu0 %2412 }
 0x2f1   : > { %v2389_v55 = vpop.permute.xlu1 %2388 }
 0x2fb   : > { %v2393_v13 = vpop.permute.xlu0 %2392 }
 0x2fd   : > { %v2407_v21 = vpop.permute.xlu1 %2406 }
 0x2ff   : > { %v8814_v40 = vpop.permute.xlu0 %2396 }
 0x301   : > { %v2409_v29 = vpop.permute.xlu1 %2408 }
 0x305   : > { %v2391_v49 = vpop.permute.xlu1 %2390 }
 0x306   : > { %v2437_v6 = vsel %vm506_vm1, %v8859_v20, %v2391_v49  ;;  %v8887_v49 = vsel %vm1984_vm5, %v1968_v60, %v10513_v17  ;;  %v8903_v60 = vsel %vm1984_vm5, %v1970_v16, %v8642_v9  ;;  %v1981_v9 = vsel %vm1967_vm3, %v1964_v22, %v8750_v35 }
 0x307   : > { %v2474_v1 = vrot.slane %v2437_v6, 7  ;;  %v2438_v57 = vsel %vm506_vm1, %v8903_v60, %v2393_v13  ;;  %v2436_v61 = vsel %vm506_vm1, %v8887_v49, %v2389_v55  ;;  %v2445_v16 = vsel %vm506_vm1, %v8909_v63, %v2407_v21 }
 0x308   : > { %v2446_v13 = vsel %vm506_vm1, %v8893_v36, %v2409_v29  ;;  %v8938_v55 = vsel %vm1984_vm5, %v1973_v39, %v8762_v50  ;;  %v2477_v21 = vrot.slane %v2438_v57, 6  ;;  %v2495_v29 = vrot.slane %v2445_v16, 7 }
 0x309   : > { %v2476_v35 = vsel %vm2475_vm6, %v2474_v1, %v2436_v61  ;;  %v2440_v6 = vsel %vm506_vm1, %v8913_v28, %v8814_v40  ;;  %v8951_v50 = vsel %vm1984_vm5, %v1974_v0, %v8764_v11  ;;  %v8958_v48 = vsel %vm1984_vm5, %v1981_v9, %v8784_v53 }
 0x30a   : > { %10516 = vst [vmem:[#allocation35_spill] sm:$0xff] %v8951_v50  ;;  %v2479_v43 = vsel %vm2478_vm7, %v2477_v21, %v2476_v35  ;;  %v2444_v11 = vsel %vm506_vm1, %v8876_v10, %v8796_v8  ;;  %v2483_v51 = vrot.slane %v2440_v6, 4  ;;  %v2448_v53 = vsel %vm506_vm1, %v8929_v44, %v8803_v24 }
 0x30b   : > { %v2411_v7 = vpop.permute.xlu0 %2410  ;;  %v2496_v42 = vsel %vm2475_vm6, %v2495_v29, %v2444_v11  ;;  %v2501_v9 = vrot.slane %v2448_v53, 4 }
 0x30c   : > { %v2447_v25 = vsel %vm506_vm1, %v8921_v38, %v2411_v7  ;;  %v2497_v7 = vrot.slane %v2446_v13, 6 }
 0x30d   : > { %v2499_v47 = vrot.slane %v2447_v25, 5 }
 0x30e   : > { %v2498_v8 = vsel %vm2478_vm7, %v2497_v7, %v2496_v42  ;;  %v10527_v42 = vld [vmem:[#allocation55_spill] sm:$0xff] }
 0x30f   : > { %v2415_v46 = vpop.permute.xlu1 %2414  ;;  %v2500_v24 = vsel %vm2481_vm8, %v2499_v47, %v2498_v8 }
 0x310   : > { %v2449_v4 = vsel %vm506_vm1, %v8958_v48, %v2415_v46 }
 0x311   : > { %v2503_v39 = vrot.slane %v2449_v4, 3 }
 0x313   : > { %v2395_v37 = vpop.permute.xlu0 %2394 }
 0x314   : > { %v2439_v26 = vsel %vm506_vm1, %v8897_v18, %v2395_v37  ;;  %v1983_v37 = vsel %vm1967_vm3, %v8866_v59, %v8780_v32 }
 0x315   : > { %v2480_v22 = vrot.slane %v2439_v26, 5  ;;  %v8987_v26 = vsel %vm1984_vm5, %v1982_v14, %v8789_v62  ;;  %v8991_v57 = vsel %vm1984_vm5, %v1983_v37, %v8794_v45  ;;  %v2502_v62 = vsel %vm2484_vm9, %v2501_v9, %v2500_v24 }
 0x316   : > { %10518 = vst [vmem:[#allocation37_spill] sm:$0xff] %v8987_v26  ;;  %10519 = vst [vmem:[#allocation29_spill] sm:$0xff] %v8991_v57  ;;  %v2504_v21 = vsel %vm2487_vm11, %v2503_v39, %v2502_v62 }
 0x317   : > { %v2482_v40 = vsel %vm2481_vm8, %v2480_v22, %v2479_v43 }
 0x318   : > { %v2485_v58 = vsel %vm2484_vm9, %v2483_v51, %v2482_v40 }
 0x319   : > { %v2399_v41 = vpop.permute.xlu1 %2398 }
 0x31a   : > { %v2441_v56 = vsel %vm506_vm1, %v8938_v55, %v2399_v41 }
 0x31b   : > { %v2486_v34 = vrot.slane %v2441_v56, 3 }
 0x31d   : > { %v2401_v19 = vpop.permute.xlu0 %2400  ;;  %v2403_v3 = vpop.permute.xlu1 %2402  ;;  %v2488_v46 = vsel %vm2487_vm11, %v2486_v34, %v2485_v58 }
 0x31e   : > { %v2442_v30 = vsel %vm506_vm1, %v8951_v50, %v2401_v19  ;;  %v2443_v17 = vsel %vm506_vm1, %v8963_v15, %v2403_v3  ;;  %v10526_v19 = vld [vmem:[#allocation54_spill] sm:$0xff] }
 0x31f   : > { %v2489_v54 = vrot.slane %v2442_v30, 2  ;;  %v2492_v1 = vrot.slane %v2443_v17, 1 }
 0x321   : > { %v2491_v61 = vsel %vm2490_vm10, %v2489_v54, %v2488_v46  ;;  %v2417_v16 = vpop.permute.xlu0 %2416  ;;  %v2419_v13 = vpop.permute.xlu1 %2418 }
 0x322   : > { %v2494_v32 = vsel %vm2493_vm12, %v2492_v1, %v2491_v61  ;;  %v2450_v59 = vsel %vm506_vm1, %v8987_v26, %v2417_v16  ;;  %v2451_v35 = vsel %vm506_vm1, %v8991_v57, %v2419_v13 }
 0x323   : > { %v2505_v22 = vrot.slane %v2450_v59, 2  ;;  %v2507_v0 = vrot.slane %v2451_v35, 1  ;;  %v2510_v45 = vsel %vm2509_vm13, %v2494_v32, 0 }
 0x324   : > { %v2585_v25 = vand.u32 4294901760, %v2510_v45 }
 0x325   : > { %v2506_v41 = vsel %vm2490_vm10, %v2505_v22, %v2504_v21  ;;  %v3513_v21 = vld [vmem:[%s10310_s5 + $0x8] sm:$0xff] }
 0x326   : > { %v2508_v2 = vsel %vm2493_vm12, %v2507_v0, %v2506_v41  ;;  %v2586_v29 = vsub.f32 %v2510_v45, %v2585_v25  ;;  %v9072_v46 = vpop.permute.xlu1 %2328  ;;  %v9074_v9 = vpop.permute.xlu0 %2272  ;;  %v7895_v41 = vmov 1983009808  }
 0x327   : > { %v2512_v6 = vsel %vm2509_vm13, %v2508_v2, 0  ;;  %10528 = vst [vmem:[#allocation32_spill] sm:$0xff] %v9072_v46  ;;  %10529 = vst [vmem:[#allocation44_spill] sm:$0xff] %v9074_v9  ;;  %v3115_v2 = vunpack.c.l.s4 %v7895_v41 }
 0x328   : > { %v2595_v56 = vand.u32 4294901760, %v2512_v6  ;;  %v2587_v14 = vand.u32 4294901760, %v2586_v29 }
 0x32a   : > { %v2596_v7 = vsub.f32 %v2512_v6, %v2595_v56  ;;  %v2588_v43 = vsub.f32 %v2586_v29, %v2587_v14  ;;  %v9076_v61 = vpop.permute.xlu1 %2335  ;;  %v9078_v16 = vpop.permute.xlu0 %2279  ;;  %v7896_v6 = vmov 1934713408  }
 0x32b   : > { %10530 = vst [vmem:[#allocation34_spill] sm:$0xff] %v9076_v61  ;;  %10531 = vst [vmem:[#allocation38_spill] sm:$0xff] %v9078_v16 }
 0x32c   : > { %v2589_v47 = vand.u32 4294901760, %v2588_v43  ;;  %v2597_v40 = vand.u32 4294901760, %v2596_v7 }
 0x32e   : > { %7160 = vmatprep.mubr.f32.mxu1 %v2589_v47  ;;  %v2598_v34 = vsub.f32 %v2596_v7, %v2597_v40  ;;  %v9080_v13 = vpop.permute.xlu1 %2286  ;;  %v9082_v32 = vpop.permute.xlu0 %2265 }
 0x32f   : > { %10532 = vst [vmem:[#allocation39_spill] sm:$0xff] %v9080_v13  ;;  %10533 = vst [vmem:[#allocation40_spill] sm:$0xff] %v9082_v32 }
 0x330   : > { %v2599_v11 = vand.u32 4294901760, %v2598_v34 }
 0x332   : > { %7161 = vmatmul.mubr.f32.vlgmr.msra.gmra.mrb[0].mxu1 %v2599_v11  ;;  %v9084_v59 = vpop.permute.xlu1 %2342  ;;  %v9086_v35 = vpop.permute.xlu0 %2321 }
 0x333   : > { %7445 = vmatpush3.bf16.msra.mxu1 %v8730_v31  ;;  %7175 = vmatprep.mubr.f32.mxu1 %v2585_v25  ;;  %v10520_v31 = vld [vmem:[#allocation49_spill] sm:$0xff]  ;;  %10534 = vst [vmem:[#allocation36_spill] sm:$0xff] %v9084_v59  ;;  %10535 = vst [vmem:[#allocation41_spill] sm:$0xff] %v9086_v35 }
 0x334   : > { %7447 = vmatprep.subr.bf16.mxu1 %v8734_v52 }
 0x337   : > { %7449 = vmatpush3.bf16.msra.mxu1 %v8734_v52  ;;  %v10521_v52 = vld [vmem:[#allocation50_spill] sm:$0xff] }
 0x338   : > { %7451 = vmatprep.subr.bf16.mxu1 %v8740_v12 }
 0x33b   : > { %7453 = vmatpush3.bf16.msra.mxu1 %v8740_v12  ;;  %v10524_v12 = vld [vmem:[#allocation53_spill] sm:$0xff] }
 0x33c   : > { %7455 = vmatprep.subr.bf16.mxu1 %v8736_v5 }
 0x33e   : > { %7176 = vmatmul.mubr.f32.vlgmr.msra.gmra.mrb[0].mxu1 %v2595_v56 }
 0x33f   : > { %7457 = vmatpush3.bf16.msra.mxu1 %v8736_v5  ;;  %7190 = vmatprep.mubr.f32.mxu1 %v2586_v29  ;;  %v10522_v5 = vld [vmem:[#allocation51_spill] sm:$0xff] }
 0x340   : > { %7459 = vmatprep.subr.bf16.mxu1 %v8738_v33 }
 0x343   : > { %7461 = vmatpush3.bf16.msra.mxu1 %v8738_v33  ;;  %v10523_v33 = vld [vmem:[#allocation52_spill] sm:$0xff] }
 0x344   : > { %7463 = vmatprep.subr.bf16.mxu1 %v8742_v23 }
 0x347   : > { %7465 = vmatpush3.bf16.msra.mxu1 %v8742_v23 }
 0x348   : > { %7467 = vmatprep.subr.bf16.mxu1 %v8717_v27 }
 0x34a   : > { %7191 = vmatmul.mubr.f32.vlgmr.msra.gmra.mrb[0].mxu1 %v2596_v7  ;;  %v10536_v7 = vld [vmem:[#allocation11_spill] sm:$0xff] }
 0x34b   : > { %7469 = vmatpush3.bf16.msra.mxu1 %v8717_v27  ;;  %7205 = vmatprep.mubr.f32.mxu1 %v2587_v14  ;;  %v3572_v43 = vrot.slane %v3513_v21, %v10536_v7 }
 0x34c   : > { %7471 = vmatprep.subr.bf16.mxu1 %v10520_v31 }
 0x34f   : > { %7473 = vmatpush3.bf16.msra.mxu1 %v10520_v31 }
 0x350   : > { %7475 = vmatprep.subr.bf16.mxu1 %v10521_v52 }
 0x353   : > { %7477 = vmatpush3.bf16.msra.mxu1 %v10521_v52 }
 0x354   : > { %7479 = vmatprep.subr.bf16.mxu1 %v10522_v5 }
 0x356   : > { %7206 = vmatmul.mubr.f32.vlgmr.msra.gmra.mrb[0].mxu1 %v2597_v40  ;;  %v3116_v40 = vunpack.c.0.s8 %v3115_v2 }
 0x357   : > { %7481 = vmatpush3.bf16.msra.mxu1 %v10522_v5  ;;  %7220 = vmatprep.mubr.f32.mxu1 %v2585_v25  ;;  %v3565_v5 = vcombine.high %v3513_v21, %v3513_v21 }
 0x358   : > { %7483 = vmatprep.subr.bf16.mxu1 %v10523_v33 }
 0x35b   : > { %7485 = vmatpush3.bf16.msra.mxu1 %v10523_v33 }
 0x35c   : > { %7487 = vmatprep.subr.bf16.mxu1 %v10524_v12 }
 0x35f   : > { %7489 = vmatpush3.bf16.msra.mxu1 %v10524_v12 }
 0x360   : > { %7491 = vmatprep.subr.bf16.mxu1 %v8717_v27 }
 0x362   : > { %7221 = vmatmul.mubr.f32.vlgmr.msra.gmra.mrb[0].mxu1 %v2595_v56 }
 0x363   : > { %7493 = vmatpush3.bf16.msra.mxu1 %v8717_v27  ;;  %7235 = vmatprep.mubr.f32.mxu1 %v2585_v25  ;;  %v10525_v27 = vld [vmem:[#allocation7_spill] sm:$0xff]  ;;  %v3512_v25 = vld [vmem:[%s10310_s5] sm:$0xff] }
 0x364   : > { %7495 = vmatprep.subr.bf16.mxu1 %v10520_v31  ;;  %v2290_v4 = vsub.s32 4, %v10525_v27  ;;  %v2297_v53 = vsub.s32 5, %v10525_v27  ;;  %v2304_v8 = vsub.s32 6, %v10525_v27  ;;  %v2311_v1 = vsub.s32 7, %v10525_v27 }
 0x365   : > { %v3523_v47 = vrot.slane %v3512_v25, %v10536_v7  ;;  %v3516_v12 = vcombine.high %v3512_v25, %v3512_v25 }
 0x366   : > { %v2347_v3 = vrot.slane %v10526_v19, %v2290_v4  ;;  %v2291_v30 = vrot.slane %v10527_v42, %v2290_v4  ;;  %v2354_v17 = vrot.slane %v10526_v19, %v2297_v53  ;;  %v2298_v58 = vrot.slane %v10527_v42, %v2297_v53 }
 0x367   : > { %7497 = vmatpush3.bf16.msra.mxu1 %v10520_v31  ;;  %v2361_v54 = vrot.slane %v10526_v19, %v2304_v8  ;;  %v2305_v37 = vrot.slane %v10527_v42, %v2304_v8  ;;  %v2368_v24 = vrot.slane %v10526_v19, %v2311_v1  ;;  %v2312_v39 = vrot.slane %v10527_v42, %v2311_v1 }
 0x368   : > { %7499 = vmatprep.subr.bf16.mxu1 %v10521_v52  ;;  %v3531_v33 = vcombine.high %v3523_v47, %v3523_v47  ;;  %v9101_v4 = vsub.s32 %v3116_v40, %v10525_v27  ;;  %v9104_v42 = vrot.slane %v3572_v43, %v10536_v7  ;;  %v9126_v25 = vrot.slane %v3516_v12, %v10536_v7 }
 0x36a   : > { %10537 = vst [vmem:[#allocation42_spill] sm:$0xff] %v9101_v4 }
 0x36b   : > { %7501 = vmatpush3.bf16.msra.mxu1 %v10521_v52  ;;  %v3580_v52 = vcombine.high %v3572_v43, %v3572_v43 }
 0x36e   : > { %7236 = vmatmul.mubr.f32.vlgmr.msra.gmra.mrb[0].mxu1 %v2595_v56  ;;  %v3179_v56 = vunpack.c.l.s4 %v7896_v6 }
 0x370   : > { %v3180_v11 = vunpack.c.0.s8 %v3179_v56 }
 0x441   : > { %v9034_v23 = vpop.f32.mrb[0].mxu1 }
 0x442   : > { %3072 = vrot.lane.b32.xlu1 %v9034_v23, %s7889_s13  ;;  %v9038_v51 = vpop.f32.mrb[1].mxu1 }
 0x443   : > { %3070 = vrot.lane.b32.xlu0 %v9038_v51, %s7889_s13 }
 0x446   : > { %3078 = vrot.lane.b32.xlu1 %v9034_v23, %s7890_s14 }
 0x447   : > { %3076 = vrot.lane.b32.xlu0 %v9038_v51, %s7890_s14 }
 0x44a   : > { %3084 = vrot.lane.b32.xlu1 %v9034_v23, %s7891_s15 }
 0x44b   : > { %3082 = vrot.lane.b32.xlu0 %v9038_v51, %s7891_s15 }
 0x44e   : > { %3090 = vrot.lane.b32.xlu1 %v9034_v23, %s7892_s16 }
 0x44f   : > { %3088 = vrot.lane.b32.xlu0 %v9038_v51, %s7892_s16 }
 0x452   : > { %3096 = vrot.lane.b32.xlu1 %v9034_v23, %s7893_s17 }
 0x453   : > { %3094 = vrot.lane.b32.xlu0 %v9038_v51, %s7893_s17 }
 0x456   : > { %3102 = vrot.lane.b32.xlu1 %v9034_v23, %s7894_s18 }
 0x457   : > { %3100 = vrot.lane.b32.xlu0 %v9038_v51, %s7894_s18 }
 0x45a   : > { %3108 = vrot.lane.b32.xlu1 %v9034_v23, %s7888_s28 }
 0x45b   : > { %3106 = vrot.lane.b32.xlu0 %v9038_v51, %s7888_s28 }
 0x45e   : > { %2349 = vbcast.lane.b32.xlu1 %v2347_v3, 256 }
 0x45f   : > { %2293 = vbcast.lane.b32.xlu0 %v2291_v30, 256  ;;  %v9107_v30 = vsub.s32 %v3180_v11, %v10525_v27 }
 0x461   : > { %10538 = vst [vmem:[#allocation43_spill] sm:$0xff] %v9107_v30 }
 0x462   : > { %2356 = vbcast.lane.b32.xlu1 %v2354_v17, 256 }
 0x463   : > { %2300 = vbcast.lane.b32.xlu0 %v2298_v58, 256  ;;  %v9110_v58 = vrot.slane %v3580_v52, %v10536_v7 }
 0x466   : > { %2363 = vbcast.lane.b32.xlu1 %v2361_v54, 256  ;;  %v9113_v54 = vrot.slane %v3523_v47, %v10536_v7 }
 0x467   : > { %2307 = vbcast.lane.b32.xlu0 %v2305_v37, 256 }
 0x46a   : > { %2370 = vbcast.lane.b32.xlu1 %v2368_v24, 256  ;;  %v9118_v24 = vrot.slane %v3565_v5, %v10536_v7 }
 0x46b   : > { %2314 = vbcast.lane.b32.xlu0 %v2312_v39, 256  ;;  %v9121_v39 = vrot.slane %v3531_v33, %v10536_v7 }
 0x4b4   : > { %v3073_v62 = vpop.permute.xlu1 %3072 }
 0x4b5   : > { %v3071_v22 = vpop.permute.xlu0 %3070 }
 0x4b8   : > { %v3079_v0 = vpop.permute.xlu1 %3078 }
 0x4b9   : > { %v3077_v45 = vpop.permute.xlu0 %3076  ;;  %v3248_v1 = vcombine.low %v9034_v23, %v3079_v0  ;;  %v3249_v37 = vcombine.high %v9034_v23, %v3079_v0  ;;  %v9134_v0 = vrot.slane %v9118_v24, %v10536_v7 }
 0x4ba   : > { %v3112_v27 = vcombine.low %v9038_v51, %v3077_v45 }
 0x4bb   : > { %v9149_v43 = vrot.slane %v3249_v37, %v9101_v4 }
 0x4bc   : > { %v3085_v29 = vpop.permute.xlu1 %3084  ;;  %v3120_v11 = vrot.slane %v3112_v27, %v9101_v4 }
 0x4bd   : > { %v3083_v14 = vpop.permute.xlu0 %3082  ;;  %v3264_v19 = vcombine.low %v3073_v62, %v3085_v29  ;;  %v3265_v3 = vcombine.high %v3073_v62, %v3085_v29  ;;  %v3113_v62 = vcombine.high %v9038_v51, %v3077_v45  ;;  %v9143_v45 = vrot.slane %v9126_v25, %v10536_v7 }
 0x4be   : > { %v3128_v17 = vcombine.low %v3071_v22, %v3083_v14  ;;  %v3129_v21 = vcombine.high %v3071_v22, %v3083_v14  ;;  %v3256_v14 = vrot.slane %v3248_v1, %v9101_v4 }
 0x4bf   : > { %v3272_v41 = vrot.slane %v3264_v19, %v9101_v4  ;;  %v9130_v2 = vrot.slane %v3265_v3, %v9101_v4  ;;  %v9157_v52 = vrot.slane %v3113_v62, %v9101_v4 }
 0x4c0   : > { %v9096_v34 = vpop.permute.xlu1 %3090  ;;  %v3136_v6 = vrot.slane %v3128_v17, %v9101_v4  ;;  %v9160_v5 = vrot.slane %v3129_v21, %v9101_v4 }
 0x4c1   : > { %v9098_v31 = vpop.permute.xlu0 %3088  ;;  %v3312_v12 = vcombine.low %v3256_v14, %v3272_v41  ;;  %v3313_v19 = vcombine.high %v3256_v14, %v3272_v41 }
 0x4c2   : > { %v3176_v27 = vcombine.low %v3120_v11, %v3136_v6  ;;  %v3177_v41 = vcombine.high %v3120_v11, %v3136_v6 }
 0x4c4   : > { %v3097_v53 = vpop.permute.xlu1 %3096 }
 0x4c5   : > { %v3095_v8 = vpop.permute.xlu0 %3094 }
 0x4c8   : > { %v3103_v23 = vpop.permute.xlu1 %3102 }
 0x4c9   : > { %v3101_v51 = vpop.permute.xlu0 %3100  ;;  %v3280_v33 = vcombine.low %v9096_v34, %v3103_v23  ;;  %v3281_v21 = vcombine.high %v9096_v34, %v3103_v23 }
 0x4ca   : > { %v3144_v17 = vcombine.low %v9098_v31, %v3101_v51  ;;  %v3145_v56 = vcombine.high %v9098_v31, %v3101_v51  ;;  %v3320_v31 = vrot.slane %v3312_v12, %v9107_v30 }
 0x4cb   : > { %v3288_v3 = vrot.slane %v3280_v33, %v9101_v4  ;;  %v9185_v51 = vrot.slane %v3281_v21, %v9101_v4  ;;  %v3184_v33 = vrot.slane %v3176_v27, %v9107_v30 }
 0x4cc   : > { %v3109_v1 = vpop.permute.xlu1 %3108  ;;  %v3152_v37 = vrot.slane %v3144_v17, %v9101_v4 }
 0x4cd   : > { %v3296_v40 = vcombine.low %v3097_v53, %v3109_v1  ;;  %v3297_v62 = vcombine.high %v3097_v53, %v3109_v1  ;;  %v3107_v47 = vpop.permute.xlu0 %3106 }
 0x4ce   : > { %v3160_v22 = vcombine.low %v3095_v8, %v3107_v47  ;;  %v3161_v29 = vcombine.high %v3095_v8, %v3107_v47  ;;  %v3327_v8 = vrot.slane %v3313_v19, %v9107_v30  ;;  %v9188_v47 = vrot.slane %v3145_v56, %v9101_v4 }
 0x4cf   : > { %v3304_v57 = vrot.slane %v3296_v40, %v9101_v4  ;;  %v9176_v26 = vrot.slane %v3297_v62, %v9101_v4 }
 0x4d0   : > { %v3168_v53 = vrot.slane %v3160_v22, %v9101_v4  ;;  %v9180_v34 = vrot.slane %v3161_v29, %v9101_v4  ;;  %v3191_v22 = vrot.slane %v3177_v41, %v9107_v30 }
 0x4d1   : > { %v3344_v23 = vcombine.low %v3288_v3, %v3304_v57  ;;  %v3345_v6 = vcombine.high %v3288_v3, %v3304_v57  ;;  %v3360_v19 = vcombine.low %v9185_v51, %v9176_v26 }
 0x4d2   : > { %v3208_v40 = vcombine.low %v3152_v37, %v3168_v53  ;;  %v3209_v11 = vcombine.high %v3152_v37, %v3168_v53 }
 0x4d3   : > { %v3352_v29 = vrot.slane %v3344_v23, %v9107_v30  ;;  %v3359_v12 = vrot.slane %v3345_v6, %v9107_v30  ;;  %v3368_v50 = vrot.slane %v3360_v19, %v9107_v30 }
 0x4d4   : > { %v3216_v57 = vrot.slane %v3208_v40, %v9107_v30  ;;  %v3223_v3 = vrot.slane %v3209_v11, %v9107_v30 }
 0x4d5   : > { %v3376_v17 = vcombine.low %v3320_v31, %v3352_v29  ;;  %v3377_v1 = vcombine.high %v3320_v31, %v3352_v29  ;;  %v3378_v37 = vcombine.low %v3327_v8, %v3359_v12  ;;  %v3379_v27 = vcombine.high %v3327_v8, %v3359_v12 }
 0x4d6   : > { %v3240_v62 = vcombine.low %v3184_v33, %v3216_v57  ;;  %v3241_v21 = vcombine.high %v3184_v33, %v3216_v57  ;;  %v3242_v41 = vcombine.low %v3191_v22, %v3223_v3  ;;  %v3243_v53 = vcombine.high %v3191_v22, %v3223_v3 }
 0x4d7   : > { %v3392_v23 = vmul.f32 %v3376_v17, %v9086_v35  ;;  %v3393_v6 = vmul.f32 %v3377_v1, %v9072_v46  ;;  %v3394_v14 = vmul.f32 %v3378_v37, %v9076_v61  ;;  %v3395_v40 = vmul.f32 %v3379_v27, %v9084_v59 }
 0x4d8   : > { %v3384_v11 = vmul.f32 %v3240_v62, %v9082_v32  ;;  %v3385_v56 = vmul.f32 %v3241_v21, %v9074_v9  ;;  %v3386_v31 = vmul.f32 %v3242_v41, %v9078_v16  ;;  %v3387_v8 = vmul.f32 %v3243_v53, %v9080_v13 }
 0x4d9   : > { %v3456_v33 = vsel %vm506_vm1, %v3392_v23, 0.0  ;;  %v3463_v22 = vsel %vm506_vm1, %v3393_v6, 0.0  ;;  %v3470_v29 = vsel %vm506_vm1, %v3394_v14, 0.0  ;;  %v3477_v12 = vsel %vm506_vm1, %v3395_v40, 0.0 }
 0x4da   : > { %v3457_v57 = vrot.slane %v3456_v33, 4  ;;  %v3464_v3 = vrot.slane %v3463_v22, 4  ;;  %v3471_v17 = vrot.slane %v3470_v29, 4  ;;  %v3478_v1 = vrot.slane %v3477_v12, 4 }
 0x4db   : > { %v3400_v37 = vsel %vm506_vm1, %v3384_v11, 0.0  ;;  %v3407_v27 = vsel %vm506_vm1, %v3385_v56, 0.0  ;;  %v3414_v62 = vsel %vm506_vm1, %v3386_v31, 0.0  ;;  %v3421_v21 = vsel %vm506_vm1, %v3387_v8, 0.0 }
 0x4dc   : > { %v3458_v41 = vadd.f32 %v3457_v57, %v3456_v33  ;;  %v3465_v53 = vadd.f32 %v3464_v3, %v3463_v22  ;;  %v3472_v23 = vadd.f32 %v3471_v17, %v3470_v29  ;;  %v3479_v6 = vadd.f32 %v3478_v1, %v3477_v12  ;;  %v9216_v57 = vpop.permute.xlu1 %2349 }
 0x4dd   : > { %v3401_v13 = vrot.slane %v3400_v37, 4  ;;  %v3408_v14 = vrot.slane %v3407_v27, 4  ;;  %v3415_v16 = vrot.slane %v3414_v62, 4  ;;  %v3422_v40 = vrot.slane %v3421_v21, 4  ;;  %10539 = vst [vmem:[#allocation33_spill] sm:$0xff] %v9216_v57 }
 0x4de   : > { %v3459_v9 = vrot.slane %v3458_v41, 2  ;;  %v3466_v32 = vrot.slane %v3465_v53, 2  ;;  %v3473_v59 = vrot.slane %v3472_v23, 2  ;;  %v3480_v61 = vrot.slane %v3479_v6, 2 }
 0x4df   : > { %v3402_v46 = vadd.f32 %v3401_v13, %v3400_v37  ;;  %v3409_v11 = vadd.f32 %v3408_v14, %v3407_v27  ;;  %v3416_v35 = vadd.f32 %v3415_v16, %v3414_v62  ;;  %v3423_v56 = vadd.f32 %v3422_v40, %v3421_v21 }
 0x4e0   : > { %v3460_v4 = vadd.f32 %v3459_v9, %v3458_v41  ;;  %v3467_v31 = vadd.f32 %v3466_v32, %v3465_v53  ;;  %v3474_v15 = vadd.f32 %v3473_v59, %v3472_v23  ;;  %v3481_v8 = vadd.f32 %v3480_v61, %v3479_v6 }
 0x4e1   : > { %v3403_v33 = vrot.slane %v3402_v46, 2  ;;  %v3410_v22 = vrot.slane %v3409_v11, 2  ;;  %v3417_v29 = vrot.slane %v3416_v35, 2  ;;  %v3424_v12 = vrot.slane %v3423_v56, 2 }
 0x4e2   : > { %v3461_v3 = vrot.slane %v3460_v4, 1  ;;  %v3468_v17 = vrot.slane %v3467_v31, 1  ;;  %v3475_v1 = vrot.slane %v3474_v15, 1  ;;  %v3482_v32 = vrot.slane %v3481_v8, 1 }
 0x4e3   : > { %v3404_v18 = vadd.f32 %v3403_v33, %v3402_v46  ;;  %v3411_v13 = vadd.f32 %v3410_v22, %v3409_v11  ;;  %v3418_v37 = vadd.f32 %v3417_v29, %v3416_v35  ;;  %v3425_v16 = vadd.f32 %v3424_v12, %v3423_v56  ;;  %v9238_v56 = vpop.permute.xlu0 %2293 }
 0x4e4   : > { %v3462_v27 = vadd.f32 %v3461_v3, %v3460_v4  ;;  %v3469_v9 = vadd.f32 %v3468_v17, %v3467_v31  ;;  %v10540_v61 = vcombine.low %v9149_v43, %v9130_v2  ;;  %v3193_v62 = vcombine.high %v9157_v52, %v9160_v5  ;;  %10543 = vst [vmem:[#allocation45_spill] sm:$0xff] %v9238_v56  ;;  %v9240_v31 = vpop.permute.xlu1 %2356 }
 0x4e5   : > { %v3476_v21 = vadd.f32 %v3475_v1, %v3474_v15  ;;  %v3412_v41 = vrot.slane %v3411_v13, 1  ;;  %v10541_v46 = vcombine.low %v9188_v47, %v9180_v34  ;;  %v3361_v35 = vcombine.high %v9185_v51, %v9176_v26  ;;  %10544 = vst [vmem:[#allocation46_spill] sm:$0xff] %v9240_v31 }
 0x4e6   : > { %v3336_v59 = vrot.slane %v10540_v61, %v9107_v30  ;;  %v3225_v4 = vcombine.high %v9188_v47, %v9180_v34  ;;  %v3405_v53 = vrot.slane %v3404_v18, 1  ;;  %v3419_v6 = vrot.slane %v3418_v37, 1 }
 0x4e7   : > { %v3232_v19 = vrot.slane %v10541_v46, %v9107_v30  ;;  %v3426_v14 = vrot.slane %v3425_v16, 1  ;;  %v3638_v40 = vadd.f32 %v9104_v42, %v3462_v27  ;;  %v10542_v15 = vcombine.low %v9157_v52, %v9160_v5 }
 0x4e8   : > { %v3380_v23 = vcombine.low %v3336_v59, %v3368_v50  ;;  %v3483_v33 = vadd.f32 %v3482_v32, %v3481_v8  ;;  %v3639_v26 = vadd.f32 %v9110_v58, %v3469_v9  ;;  %v3532_v34 = vcombine.high %v9126_v25, %v9126_v25 }
 0x4e9   : > { %v3200_v11 = vrot.slane %v10542_v15, %v9107_v30  ;;  %v10545_v51 = vcombine.high %v9149_v43, %v9130_v2  ;;  %v3413_v22 = vadd.f32 %v3412_v41, %v3411_v13  ;;  %v10546_v52 = vcombine.high %v9104_v42, %v9104_v42 }
 0x4ea   : > { %v3396_v29 = vmul.f32 %v3380_v23, %v9216_v57  ;;  %v3406_v8 = vadd.f32 %v3405_v53, %v3404_v18  ;;  %v9256_v3 = vrot.slane %v3361_v35, %v9107_v30  ;;  %v9259_v17 = vrot.slane %v3193_v62, %v9107_v30  ;;  %v9270_v35 = vpop.permute.xlu0 %2300  ;;  %v10589_v57 = vld [vmem:[#allocation26_spill] sm:$0xff] }
 0x4eb   : > { %v9249_v47 = vrot.slane %v10545_v51, %v9107_v30  ;;  %v3640_v5 = vadd.f32 %v10546_v52, %v3476_v21  ;;  %v3244_v12 = vcombine.low %v3200_v11, %v3232_v19  ;;  %v9262_v1 = vrot.slane %v3225_v4, %v9107_v30  ;;  %10548 = vst [vmem:[#allocation47_spill] sm:$0xff] %v9270_v35 }
 0x4ec   : > { %v3420_v2 = vadd.f32 %v3419_v6, %v3418_v37  ;;  %v3427_v43 = vadd.f32 %v3426_v14, %v3425_v16  ;;  %v6867_v13 = vmul.f32 -1.442695, %v3638_v40  ;;  %v3484_v27 = vsel %vm506_vm1, %v3396_v29, 0.0  ;;  %v9272_v37 = vpop.permute.xlu1 %2363 }
 0x4ed   : > { %v10547_v42 = vcombine.high %v9110_v58, %v9110_v58  ;;  %v6868_v32 = vmul.f32 -1.442695, %v3639_v26  ;;  %v3485_v18 = vrot.slane %v3484_v27, 4  ;;  %v3388_v61 = vmul.f32 %v3244_v12, %v9238_v56  ;;  %10549 = vst [vmem:[#allocation48_spill] sm:$0xff] %v9272_v37 }
 0x4ee   : > { %v6869_v21 = vmul.f32 -1.442695, %v3640_v5  ;;  %v3631_v62 = vadd.f32 %v9121_v39, %v3413_v22  ;;  %v3381_v41 = vcombine.high %v3336_v59, %v3368_v50  ;;  %v3245_v46 = vcombine.high %v3200_v11, %v3232_v19 }
 0x4ef   : > { %v3641_v9 = vadd.f32 %v10547_v42, %v3483_v33  ;;  %v3486_v16 = vadd.f32 %v3485_v18, %v3484_v27  ;;  %v3630_v4 = vadd.f32 %v9113_v54, %v3406_v8  ;;  %v3428_v53 = vsel %vm506_vm1, %v3388_v61, 0.0 }
 0x4f0   : > { %v3382_v58 = vcombine.low %v9249_v47, %v9256_v3  ;;  %7744 = vpow2.f32 %v6867_v13  ;;  %v3429_v23 = vrot.slane %v3428_v53, 4  ;;  %v3397_v6 = vmul.f32 %v3381_v41, %v9240_v31  ;;  %v9290_v13 = vpop.permute.xlu0 %2307 }
 0x4f1   : > { %v3389_v14 = vmul.f32 %v3245_v46, %v9270_v35  ;;  %v6870_v50 = vmul.f32 -1.442695, %v3641_v9  ;;  %v3487_v59 = vrot.slane %v3486_v16, 2  ;;  %v10550_v19 = vcombine.high %v9113_v54, %v9113_v54  ;;  %10552 = vst [vmem:[#allocation49_spill] sm:$0xff] %v9290_v13 }
 0x4f2   : > { %v3398_v15 = vmul.f32 %v3382_v58, %v9272_v37  ;;  %v6860_v11 = vmul.f32 -1.442695, %v3631_v62  ;;  %v3430_v33 = vadd.f32 %v3429_v23, %v3428_v53  ;;  %v3491_v26 = vsel %vm506_vm1, %v3397_v6, 0.0 }
 0x4f3   : > { %v3632_v40 = vadd.f32 %v10550_v19, %v3420_v2  ;;  %v3435_v51 = vsel %vm506_vm1, %v3389_v14, 0.0  ;;  %v3488_v22 = vadd.f32 %v3487_v59, %v3486_v16  ;;  %v3492_v52 = vrot.slane %v3491_v26, 4 }
 0x4f4   : > { %v3436_v5 = vrot.slane %v3435_v51, 4  ;;  %v3498_v29 = vsel %vm506_vm1, %v3398_v15, 0.0  ;;  %7746 = vpow2.f32 %v6868_v32  ;;  %v3431_v12 = vrot.slane %v3430_v33, 2 }
 0x4f5   : > { %v10551_v8 = vcombine.high %v9121_v39, %v9121_v39  ;;  %v3499_v2 = vrot.slane %v3498_v29, 4  ;;  %v3489_v27 = vrot.slane %v3488_v22, 1  ;;  %v3493_v42 = vadd.f32 %v3492_v52, %v3491_v26  ;;  %v9312_v52 = vpop.permute.xlu1 %2370 }
 0x4f6   : > { %v3437_v9 = vadd.f32 %v3436_v5, %v3435_v51  ;;  %v3246_v18 = vcombine.low %v9259_v17, %v9262_v1  ;;  %7748 = vpow2.f32 %v6860_v11  ;;  %v6861_v61 = vmul.f32 -1.442695, %v3632_v40  ;;  %10554 = vst [vmem:[#allocation50_spill] sm:$0xff] %v9312_v52 }
 0x4f7   : > { %v3633_v54 = vadd.f32 %v10551_v8, %v3427_v43  ;;  %v3432_v62 = vadd.f32 %v3431_v12, %v3430_v33  ;;  %v3500_v41 = vadd.f32 %v3499_v2, %v3498_v29  ;;  %v3490_v46 = vadd.f32 %v3489_v27, %v3488_v22 }
 0x4f8   : > { %v3494_v32 = vrot.slane %v3493_v42, 2  ;;  %v3438_v16 = vrot.slane %v3437_v9, 2  ;;  %v3390_v53 = vmul.f32 %v3246_v18, %v9290_v13  ;;  %7750 = vpow2.f32 %v6869_v21 }
 0x4f9   : > { %v6859_v39 = vmul.f32 -1.442695, %v3630_v4  ;;  %v3433_v43 = vrot.slane %v3432_v62, 1  ;;  %v10553_v58 = vcombine.high %v9118_v24, %v9118_v24  ;;  %v3642_v6 = vadd.f32 %v9134_v0, %v3490_v46 }
 0x4fa   : > { %v6862_v14 = vmul.f32 -1.442695, %v3633_v54  ;;  %v3495_v59 = vadd.f32 %v3494_v32, %v3493_v42  ;;  %v3501_v19 = vrot.slane %v3500_v41, 2  ;;  %v7745_v40 = vpop.eup %7744  ;;  %7752 = vpow2.f32 %v6861_v61 }
 0x4fb   : > { %v9299_v23 = vrot.slane %v10553_v58, %v10536_v7  ;;  %v3434_v15 = vadd.f32 %v3433_v43, %v3432_v62  ;;  %v9306_v21 = vrot.slane %v3532_v34, %v10536_v7  ;;  %v3439_v4 = vadd.f32 %v3438_v16, %v3437_v9 }
 0x4fc   : > { %7754 = vpow2.f32 %v6870_v50  ;;  %v6871_v11 = vmul.f32 -1.442695, %v3642_v6  ;;  %v3496_v24 = vrot.slane %v3495_v59, 1  ;;  %v3442_v33 = vsel %vm506_vm1, %v3390_v53, 0.0  ;;  %v9316_v50 = vpop.permute.xlu0 %2314 }
 0x4fd   : > { %7756 = vpow2.f32 %v6859_v39  ;;  %v3634_v26 = vadd.f32 %v9143_v45, %v3434_v15  ;;  %v3440_v51 = vrot.slane %v3439_v4, 1  ;;  %v3611_v22 = vcombine.high %v9134_v0, %v9134_v0  ;;  %10555 = vst [vmem:[#allocation51_spill] sm:$0xff] %v9316_v50 }
 0x4fe   : > { %7758 = vpow2.f32 %v6862_v14  ;;  %v3497_v5 = vadd.f32 %v3496_v24, %v3495_v59  ;;  %v3502_v25 = vadd.f32 %v3501_v19, %v3500_v41  ;;  %v3383_v34 = vcombine.high %v9249_v47, %v9256_v3  ;;  %v7747_v29 = vpop.eup %7746 }
 0x4ff   : > { %v6863_v12 = vmul.f32 -1.442695, %v3634_v26  ;;  %v3441_v8 = vadd.f32 %v3440_v51, %v3439_v4  ;;  %v3443_v54 = vrot.slane %v3442_v33, 4  ;;  %v3247_v2 = vcombine.high %v9259_v17, %v9262_v1 }
 0x500   : > { %7760 = vpow2.f32 %v6871_v11  ;;  %v3643_v0 = vadd.f32 %v9299_v23, %v3497_v5  ;;  %v3503_v27 = vrot.slane %v3502_v25, 1  ;;  %v3399_v42 = vmul.f32 %v3383_v34, %v9312_v52  ;;  %v7749_v9 = vpop.eup %7748 }
 0x501   : > { %7762 = vpow2.f32 %v6863_v12  ;;  %v3635_v18 = vadd.f32 %v9306_v21, %v3441_v8  ;;  %v3444_v47 = vadd.f32 %v3443_v54, %v3442_v33  ;;  %v3391_v3 = vmul.f32 %v3247_v2, %v9316_v50  ;;  %v7841_v2 = vld [vmem:[#allocation2 + $0x8] sm:$0xff] }
 0x502   : > { %v3703_v61 = vadd.f32 1.0, %v7747_v29  ;;  %v6872_v62 = vmul.f32 -1.442695, %v3643_v0  ;;  %v3504_v41 = vadd.f32 %v3503_v27, %v3502_v25  ;;  %v3505_v46 = vsel %vm506_vm1, %v3399_v42, 0.0  ;;  %v7751_v32 = vpop.eup %7750  ;;  %v9328_v25 = vld [vmem:[#allocation2] sm:$0xff] }
 0x503   : > { %v6864_v17 = vmul.f32 -1.442695, %v3635_v18  ;;  %v3445_v1 = vrot.slane %v3444_v47, 2  ;;  %v3506_v16 = vrot.slane %v3505_v46, 4  ;;  %v3449_v53 = vsel %vm506_vm1, %v3391_v3, 0.0 }
 0x504   : > { %v3644_v39 = vadd.f32 %v3611_v22, %v3504_v41  ;;  %v3562_v43 = vcombine.high %v9143_v45, %v9143_v45  ;;  %v3450_v58 = vrot.slane %v3449_v53, 4  ;;  %v7753_v6 = vpop.eup %7752  ;;  %v3695_v14 = vadd.f32 1.0, %v7749_v9 }
 0x505   : > { %7764 = vpow2.f32 %v6872_v62  ;;  %v3446_v59 = vadd.f32 %v3445_v1, %v3444_v47  ;;  %v3507_v19 = vadd.f32 %v3506_v16, %v3505_v46  ;;  %v3702_v4 = vadd.f32 1.0, %v7745_v40 }
 0x506   : > { %v7755_v15 = vpop.eup %7754  ;;  %7766 = vpow2.f32 %v6864_v17  ;;  %v6873_v11 = vmul.f32 -1.442695, %v3644_v39  ;;  %v3451_v24 = vadd.f32 %v3450_v58, %v3449_v53  ;;  %v3704_v26 = vadd.f32 1.0, %v7751_v32 }
 0x507   : > { %v7757_v33 = vpop.eup %7756  ;;  %7768 = vrcp.f32 %v3703_v61  ;;  %v3447_v51 = vrot.slane %v3446_v59, 1  ;;  %v3508_v5 = vrot.slane %v3507_v19, 2  ;;  %v384_v45 = vrot.slane %v9328_v25, %v10536_v7 }
 0x508   : > { %v7759_v22 = vpop.eup %7758  ;;  %v3696_v34 = vadd.f32 1.0, %v7753_v6  ;;  %7770 = vpow2.f32 %v6873_v11  ;;  %v3452_v29 = vrot.slane %v3451_v24, 2  ;;  %v3705_v12 = vadd.f32 1.0, %v7755_v15 }
 0x509   : > { %7772 = vrcp.f32 %v3695_v14  ;;  %v3448_v40 = vadd.f32 %v3447_v51, %v3446_v59  ;;  %v3509_v8 = vadd.f32 %v3508_v5, %v3507_v19  ;;  %v433_v0 = vrot.slane %v7841_v2, %v10536_v7 }
 0x50a   : > { %v7761_v54 = vpop.eup %7760  ;;  %7774 = vrcp.f32 %v3702_v4  ;;  %v3694_v27 = vadd.f32 1.0, %v7757_v33  ;;  %v3453_v42 = vadd.f32 %v3452_v29, %v3451_v24  ;;  %v3613_v47 = vcombine.high %v9299_v23, %v9299_v23 }
 0x50b   : > { %v7763_v9 = vpop.eup %7762  ;;  %7776 = vrcp.f32 %v3704_v26  ;;  %v3636_v18 = vadd.f32 %v3562_v43, %v3448_v40  ;;  %v3510_v3 = vrot.slane %v3509_v8, 1  ;;  %v3697_v61 = vadd.f32 1.0, %v7759_v22 }
 0x50c   : > { %7778 = vrcp.f32 %v3696_v34  ;;  %v3564_v62 = vcombine.high %v9306_v21, %v9306_v21  ;;  %v3454_v41 = vrot.slane %v3453_v42, 1  ;;  %v3706_v46 = vadd.f32 1.0, %v7761_v54 }
 0x50d   : > { %7780 = vrcp.f32 %v3705_v12  ;;  %v6865_v32 = vmul.f32 -1.442695, %v3636_v18  ;;  %v3511_v17 = vadd.f32 %v3510_v3, %v3509_v8  ;;  %v3698_v1 = vadd.f32 1.0, %v7763_v9 }
 0x50e   : > { %7782 = vrcp.f32 %v3694_v27  ;;  %v3455_v16 = vadd.f32 %v3454_v41, %v3453_v42  ;;  %v441_v39 = vcombine.high %v433_v0, %v433_v0  ;;  %v392_v23 = vcombine.high %v384_v45, %v384_v45 }
 0x50f   : > { %v7765_v53 = vpop.eup %7764  ;;  %7784 = vpow2.f32 %v6865_v32  ;;  %v3645_v43 = vadd.f32 %v3613_v47, %v3511_v17  ;;  %v9338_v6 = vrot.slane %v433_v0, %v10536_v7  ;;  %v9343_v59 = vrot.slane %v384_v45, %v10536_v7 }
 0x510   : > { %v7767_v58 = vpop.eup %7766  ;;  %7786 = vrcp.f32 %v3697_v61  ;;  %v3637_v14 = vadd.f32 %v3564_v62, %v3455_v16  ;;  %v377_v4 = vcombine.high %v9328_v25, %v9328_v25  ;;  %v3707_v11 = vadd.f32 1.0, %v7765_v53 }
 0x511   : > { %10556 = vst [vmem:[#allocation52_spill] sm:$0xff] %v9338_v6  ;;  %v9340_v21 = vpop.eup %7768  ;;  %10558 = vst [vmem:[#allocation7_spill] sm:$0xff] %v9343_v59  ;;  %7788 = vrcp.f32 %v3706_v46  ;;  %v6874_v19 = vmul.f32 -1.442695, %v3645_v43  ;;  %v426_v26 = vcombine.high %v7841_v2, %v7841_v2  ;;  %v9350_v51 = vrot.slane %v441_v39, %v10536_v7 }
 0x512   : > { %10557 = vst [vmem:[#allocation53_spill] sm:$0xff] %v9340_v21  ;;  %v7771_v15 = vpop.eup %7770  ;;  %7790 = vrcp.f32 %v3698_v1  ;;  %v6866_v24 = vmul.f32 -1.442695, %v3637_v14  ;;  %v3699_v5 = vadd.f32 1.0, %v7767_v58  ;;  %v9355_v45 = vrot.slane %v392_v23, %v10536_v7 }
 0x513   : > { %v9347_v33 = vpop.eup %7772  ;;  %10560 = vst [vmem:[#allocation55_spill] sm:$0xff] %v9350_v51  ;;  %7792 = vpow2.f32 %v6874_v19  ;;  %v9359_v34 = vcombine.high %v9338_v6, %v9338_v6  ;;  %v9365_v29 = vcombine.high %v9343_v59, %v9343_v59  ;;  %v3708_v12 = vadd.f32 1.0, %v7771_v15 }
 0x514   : > { %10559 = vst [vmem:[#allocation54_spill] sm:$0xff] %v9347_v33  ;;  %v9352_v22 = vpop.eup %7774  ;;  %10562 = vst [vmem:[#allocation57_spill] sm:$0xff] %v9355_v45  ;;  %7794 = vpow2.f32 %v6866_v24  ;;  %v9369_v40 = vmul.f32 %v9340_v21, %v9350_v51  ;;  %v9375_v54 = vmul.f32 %v9347_v33, %v9355_v45  ;;  %v391_v0 = vrot.slane %v377_v4, %v10536_v7 }
 0x515   : > { %10561 = vst [vmem:[#allocation56_spill] sm:$0xff] %v9352_v22  ;;  %10563 = vst [vmem:[#allocation58_spill] sm:$0xff] %v9359_v34  ;;  %v9361_v25 = vpop.eup %7776  ;;  %7796 = vrcp.f32 %v3707_v11  ;;  %v440_v27 = vrot.slane %v426_v26, %v10536_v7  ;;  %v9389_v47 = vcombine.high %v9350_v51, %v9350_v51  ;;  %v9400_v41 = vcombine.high %v9355_v45, %v9355_v45 }
 0x516   : > { %10564 = vst [vmem:[#allocation59_spill] sm:$0xff] %v9361_v25  ;;  %10565 = vst [vmem:[#allocation60_spill] sm:$0xff] %v9365_v29  ;;  %v9371_v8 = vpop.eup %7778  ;;  %7798 = vrcp.f32 %v3699_v5  ;;  %v9385_v9 = vmul.f32 %v9361_v25, %v9359_v34  ;;  %v3788_v61 = vrot.slane %v9369_v40, 7  ;;  %v3774_v32 = vrot.slane %v9375_v54, 7 }
 0x517   : > { %10566 = vst [vmem:[#allocation61_spill] sm:$0xff] %v9371_v8  ;;  %v9377_v2 = vpop.eup %7780  ;;  %10569 = vst [vmem:[#allocation64_spill] sm:$0xff] %v9389_v47  ;;  %7800 = vrcp.f32 %v3708_v12  ;;  %v9393_v3 = vmul.f32 %v9371_v8, %v9365_v29  ;;  %v393_v1 = vcombine.high %v391_v0, %v391_v0  ;;  %v442_v16 = vcombine.high %v440_v27, %v440_v27 }
 0x518   : > { %10567 = vst [vmem:[#allocation62_spill] sm:$0xff] %v9377_v2  ;;  %v9381_v42 = vpop.eup %7782  ;;  %10571 = vst [vmem:[#allocation66_spill] sm:$0xff] %v9400_v41  ;;  %v9407_v53 = vmul.f32 %v9352_v22, %v9338_v6  ;;  %v9412_v43 = vrot.slane %v440_v27, %v10536_v7  ;;  %v3790_v23 = vrot.slane %v9385_v9, 6  ;;  %v9420_v19 = vrot.slane %v391_v0, %v10536_v7 }
 0x519   : > { %10568 = vst [vmem:[#allocation63_spill] sm:$0xff] %v9381_v42  ;;  %v7785_v18 = vpop.eup %7784  ;;  %v9416_v58 = vmul.f32 %v9381_v42, %v9343_v59  ;;  %v9424_v15 = vmul.f32 %v9377_v2, %v9389_v47  ;;  %v3776_v4 = vrot.slane %v9393_v3, 6  ;;  %v9436_v0 = vrot.slane %v442_v16, %v10536_v7 }
 0x51a   : > { %v9396_v62 = vpop.eup %7786  ;;  %v3700_v46 = vadd.f32 1.0, %v7785_v18  ;;  %10574 = vst [vmem:[#allocation69_spill] sm:$0xff] %v9412_v43  ;;  %10575 = vst [vmem:[#allocation70_spill] sm:$0xff] %v9420_v19  ;;  %v3789_v11 = vsel %vm2475_vm6, %v3788_v61, %v9407_v53 }
 0x51b   : > { %10570 = vst [vmem:[#allocation65_spill] sm:$0xff] %v9396_v62  ;;  %v9403_v17 = vpop.eup %7788  ;;  %v9431_v5 = vmul.f32 %v9396_v62, %v9400_v41  ;;  %v3775_v12 = vsel %vm2475_vm6, %v3774_v32, %v9416_v58  ;;  %10576 = vst [vmem:[#allocation71_spill] sm:$0xff] %v9436_v0 }
 0x51c   : > { %10572 = vst [vmem:[#allocation67_spill] sm:$0xff] %v9403_v17  ;;  %v9409_v39 = vpop.eup %7790  ;;  %7802 = vrcp.f32 %v3700_v46  ;;  %v9441_v46 = vrot.slane %v393_v1, %v10536_v7  ;;  %v9445_v61 = vmul.f32 %v9403_v17, %v9412_v43  ;;  %v3777_v16 = vsel %vm2478_vm7, %v3776_v4, %v3775_v12 }
 0x51d   : > { %10573 = vst [vmem:[#allocation68_spill] sm:$0xff] %v9409_v39  ;;  %v7793_v14 = vpop.eup %7792  ;;  %v9452_v32 = vmul.f32 %v9409_v39, %v9420_v19  ;;  %v9458_v1 = vcombine.high %v9412_v43, %v9412_v43 }
 0x51e   : > { %v7795_v24 = vpop.eup %7794  ;;  %v3709_v26 = vadd.f32 1.0, %v7793_v14  ;;  %10578 = vst [vmem:[#allocation73_spill] sm:$0xff] %v9441_v46  ;;  %v3791_v14 = vsel %vm2478_vm7, %v3790_v23, %v3789_v11  ;;  %v9465_v23 = vcombine.high %v9420_v19, %v9420_v19  ;;  %v3794_v39 = vrot.slane %v9445_v61, 4 }
 0x51f   : > { %v3701_v27 = vadd.f32 1.0, %v7795_v24  ;;  %v9438_v18 = vpop.eup %7796  ;;  %v3792_v24 = vrot.slane %v9424_v15, 5  ;;  %10580 = vst [vmem:[#allocation75_spill] sm:$0xff] %v9458_v1  ;;  %v3780_v8 = vrot.slane %v9452_v32, 4 }
 0x520   : > { %10577 = vst [vmem:[#allocation72_spill] sm:$0xff] %v9438_v18  ;;  %7804 = vrcp.f32 %v3709_v26  ;;  %v9448_v62 = vpop.eup %7798  ;;  %v3778_v26 = vrot.slane %v9431_v5, 5  ;;  %10582 = vst [vmem:[#allocation77_spill] sm:$0xff] %v9465_v23  ;;  %v9469_v11 = vmul.f32 %v9438_v18, %v9436_v0 }
 0x521   : > { %10579 = vst [vmem:[#allocation74_spill] sm:$0xff] %v9448_v62  ;;  %7806 = vrcp.f32 %v3701_v27  ;;  %v9461_v42 = vpop.eup %7800  ;;  %v3793_v4 = vsel %vm2481_vm8, %v3792_v24, %v3791_v14  ;;  %v9474_v12 = vmul.f32 %v9448_v62, %v9441_v46  ;;  %v9488_v14 = vcombine.high %v9436_v0, %v9436_v0 }
 0x522   : > { %10581 = vst [vmem:[#allocation76_spill] sm:$0xff] %v9461_v42  ;;  %v3779_v27 = vsel %vm2481_vm8, %v3778_v26, %v3777_v16  ;;  %v9483_v22 = vmul.f32 %v9461_v42, %v9458_v1  ;;  %v3795_v18 = vsel %vm2484_vm9, %v3794_v39, %v3793_v4  ;;  %v3796_v26 = vrot.slane %v9469_v11, 3 }
 0x523   : > { %10584 = vst [vmem:[#allocation79_spill] sm:$0xff] %v9488_v14  ;;  %v3781_v16 = vsel %vm2484_vm9, %v3780_v8, %v3779_v27  ;;  %v9498_v62 = vcombine.high %v9441_v46, %v9441_v46  ;;  %v3782_v42 = vrot.slane %v9474_v12, 3 }
 0x524   : > { %v3797_v39 = vsel %vm2487_vm11, %v3796_v26, %v3795_v18  ;;  %v3798_v2 = vrot.slane %v9483_v22, 2 }
 0x525   : > { %10585 = vst [vmem:[#allocation80_spill] sm:$0xff] %v9498_v62  ;;  %v3783_v17 = vsel %vm2487_vm11, %v3782_v42, %v3781_v16 }
 0x526   : > { %v9479_v33 = vpop.eup %7802  ;;  %v3799_v18 = vsel %vm2490_vm10, %v3798_v2, %v3797_v39 }
 0x527   : > { %10583 = vst [vmem:[#allocation78_spill] sm:$0xff] %v9479_v33  ;;  %v9492_v24 = vmul.f32 %v9479_v33, %v9465_v23 }
 0x529   : > { %v3784_v27 = vrot.slane %v9492_v24, 2 }
 0x52a   : > { %v9502_v4 = vpop.eup %7804 }
 0x52b   : > { %10586 = vst [vmem:[#allocation81_spill] sm:$0xff] %v9502_v4  ;;  %v9506_v33 = vpop.eup %7806  ;;  %v9510_v8 = vmul.f32 %v9502_v4, %v9488_v14  ;;  %v3785_v26 = vsel %vm2490_vm10, %v3784_v27, %v3783_v17  ;;  %v10588_v27 = vld [vmem:[#allocation23_spill] sm:$0xff] }
 0x52c   : > { %10587 = vst [vmem:[#allocation82_spill] sm:$0xff] %v9506_v33  ;;  %v9515_v25 = vmul.f32 %v9506_v33, %v9498_v62 }
 0x52d   : > { %v3800_v42 = vrot.slane %v9510_v8, 1 }
 0x52e   : > { %v3786_v16 = vrot.slane %v9515_v25, 1 }
 0x52f   : > { %v3801_v21 = vsel %vm2493_vm12, %v3800_v42, %v3799_v18  ;;  %v10590_v42 = vld [vmem:[#allocation27_spill] sm:$0xff] }
 0x530   : > { %v3787_v50 = vsel %vm2493_vm12, %v3786_v16, %v3785_v26  ;;  %v3808_v4 = vand.u32 4294901760, %v3801_v21  ;;  %v10595_v16 = vld [vmem:[#allocation9_spill] sm:$0xff] }
 0x531   : > { %v3805_v13 = vand.u32 4294901760, %v3787_v50 }
 0x532   : > { %v3940_v35 = vsub.f32 %v3801_v21, %v3808_v4  ;;  %v10591_v21 = vld [vmem:[#allocation28_spill] sm:$0xff] }
 0x533   : > { %v7502_v56 = vpack.c.bf16 %v3808_v4, %v3805_v13  ;;  %v3933_v52 = vsub.f32 %v3787_v50, %v3805_v13  ;;  %v10592_v13 = vld [vmem:[#allocation30_spill] sm:$0xff]  ;;  %v10593_v50 = vld [vmem:[#allocation3_spill] sm:$0xff] }
 0x534   : > { %v3941_v37 = vand.u32 4294901760, %v3940_v35  ;;  %v10594_v4 = vld [vmem:[#allocation6_spill] sm:$0xff] }
 0x535   : > { %7503 = vmatprep.subr.bf16.mxu0 %v7502_v56  ;;  %v3934_v33 = vand.u32 4294901760, %v3933_v52  ;;  %v7510_v26 = vpack.c.bf16 %v3940_v35, %v3933_v52 }
 0x536   : > { %7505 = vmatpush3.bf16.msra.mxu0 %v7502_v56  ;;  %v3942_v2 = vsub.f32 %v3940_v35, %v3941_v37  ;;  %v10599_v35 = vld [vmem:[#allocation4_spill] sm:$0xff] }
 0x537   : > { %v3935_v39 = vsub.f32 %v3933_v52, %v3934_v33  ;;  %v10600_v52 = vld [vmem:[#allocation8_spill] sm:$0xff] }
 0x538   : > { %v3943_v17 = vand.u32 4294901760, %v3942_v2  ;;  %v10598_v2 = vld [vmem:[#allocation16_spill] sm:$0xff] }
 0x539   : > { %7243 = vmatmul.mubr.f32.vlgmr.msra.gmra.mrb[6].mxu0 %v10588_v27  ;;  %v3936_v31 = vand.u32 4294901760, %v3935_v39  ;;  %v7518_v39 = vpack.c.bf16 %v3941_v37, %v3934_v33  ;;  %v10602_v27 = vld [vmem:[#allocation15_spill] sm:$0xff]  ;;  %v10609_v37 = vld [vmem:[#allocation24_spill] sm:$0xff]  ;;  %v10610_v33 = vld [vmem:[#allocation25_spill] sm:$0xff] }
 0x53a   : > { %7245 = vmatprep.mubr.f32.mxu0 %v10589_v57  ;;  %v10596_v57 = vld [vmem:[#allocation10_spill] sm:$0xff] }
 0x53b   : > { %v7506_v18 = vpack.c.bf16 %v3943_v17, %v3936_v31  ;;  %v10597_v31 = vld [vmem:[#allocation14_spill] sm:$0xff]  ;;  %v10601_v17 = vld [vmem:[#allocation13_spill] sm:$0xff] }
 0x53d   : > { %7246 = vmatmul.mubr.f32.gmra.mrb[8].mxu0 %v10590_v42  ;;  %7507 = vmatprep.subr.bf16.mxu0 %v7506_v18  ;;  %v10604_v42 = vld [vmem:[#allocation21_spill] sm:$0xff] }
 0x53e   : > { %7509 = vmatpush3.bf16.msra.mxu0 %v7506_v18  ;;  %7248 = vmatprep.mubr.f32.mxu0 %v10591_v21  ;;  %v10603_v18 = vld [vmem:[#allocation19_spill] sm:$0xff]  ;;  %v10606_v21 = vld [vmem:[#allocation12_spill] sm:$0xff] }
 0x53f   : > { %7511 = vmatprep.subr.bf16.mxu0 %v7510_v26 }
 0x541   : > { %7249 = vmatmul.mubr.f32.gmra.mrb[10].mxu0 %v10592_v13  ;;  %v10607_v13 = vld [vmem:[#allocation18_spill] sm:$0xff] }
 0x542   : > { %7255 = vmatprep.mubr.f32.mxu0 %v10593_v50 }
 0x545   : > { %7256 = vmatmul.mubr.f32.vlgmr.msra.gmra.mrb[6].mxu0 %v10594_v4 }
 0x546   : > { %7513 = vmatpush3.bf16.msra.mxu0 %v7510_v26  ;;  %7258 = vmatprep.mubr.f32.mxu0 %v10595_v16  ;;  %v10605_v26 = vld [vmem:[#allocation5_spill] sm:$0xff] }
 0x547   : > { %7515 = vmatprep.subr.bf16.mxu0 %v7502_v56 }
 0x549   : > { %7259 = vmatmul.mubr.f32.gmra.mrb[8].mxu0 %v10596_v57 }
 0x54a   : > { %7261 = vmatprep.mubr.f32.mxu0 %v10597_v31 }
 0x54d   : > { %7262 = vmatmul.mubr.f32.gmra.mrb[10].mxu0 %v10598_v2 }
 0x54e   : > { %7268 = vmatprep.mubr.f32.mxu0 %v10599_v35  ;;  %v10608_v35 = vld [vmem:[#allocation20_spill] sm:$0xff] }
 0x551   : > { %7269 = vmatmul.mubr.f32.vlgmr.msra.gmra.mrb[6].mxu0 %v10600_v52 }
 0x552   : > { %7517 = vmatpush3.bf16.msra.mxu0 %v7502_v56  ;;  %7271 = vmatprep.mubr.f32.mxu0 %v10601_v17 }
 0x553   : > { %7519 = vmatprep.subr.bf16.mxu0 %v7518_v39 }
 0x555   : > { %7272 = vmatmul.mubr.f32.gmra.mrb[8].mxu0 %v10602_v27 }
 0x556   : > { %7274 = vmatprep.mubr.f32.mxu0 %v10603_v18 }
 0x559   : > { %7275 = vmatmul.mubr.f32.gmra.mrb[10].mxu0 %v10604_v42  ;;  %v10611_v42 = vld [vmem:[#allocation17_spill] sm:$0xff] }
 0x55a   : > { %7281 = vmatprep.mubr.f32.mxu0 %v10605_v26 }
 0x55d   : > { %7282 = vmatmul.mubr.f32.vlgmr.msra.gmra.mrb[6].mxu0 %v10606_v21 }
 0x55e   : > { %7521 = vmatpush3.bf16.msra.mxu0 %v7518_v39  ;;  %7284 = vmatprep.mubr.f32.mxu0 %v10607_v13 }
 0x55f   : > { %7523 = vmatprep.subr.bf16.mxu0 %v7502_v56 }
 0x561   : > { %7285 = vmatmul.mubr.f32.gmra.mrb[8].mxu0 %v10608_v35 }
 0x562   : > { %7287 = vmatprep.mubr.f32.mxu0 %v10609_v37 }
 0x565   : > { %7288 = vmatmul.mubr.f32.gmra.mrb[10].mxu0 %v10610_v33 }
 0x566   : > { %7294 = vmatprep.mubr.f32.mxu0 %v10593_v50 }
 0x569   : > { %7295 = vmatmul.mubr.f32.vlgmr.msra.gmra.mrb[6].mxu0 %v10594_v4 }
 0x56a   : > { %7525 = vmatpush3.bf16.msra.mxu0 %v7502_v56  ;;  %7297 = vmatprep.mubr.f32.mxu0 %v10595_v16 }
 0x56d   : > { %7298 = vmatmul.mubr.f32.gmra.mrb[8].mxu0 %v10596_v57 }
 0x56e   : > { %7300 = vmatprep.mubr.f32.mxu0 %v10597_v31 }
 0x571   : > { %7301 = vmatmul.mubr.f32.gmra.mrb[10].mxu0 %v10598_v2 }
 0x572   : > { %7307 = vmatprep.mubr.f32.mxu0 %v10593_v50 }
 0x575   : > { %7308 = vmatmul.mubr.f32.vlgmr.msra.gmra.mrb[6].mxu0 %v10594_v4 }
 0x576   : > { %7310 = vmatprep.mubr.f32.mxu0 %v10595_v16 }
 0x579   : > { %7311 = vmatmul.mubr.f32.gmra.mrb[8].mxu0 %v10596_v57 }
 0x57a   : > { %7313 = vmatprep.mubr.f32.mxu0 %v10597_v31 }
 0x57d   : > { %7314 = vmatmul.mubr.f32.gmra.mrb[10].mxu0 %v10598_v2 }
 0x648   : > { %v7309_v56 = vpop.f32.mrb[6].mxu0 }
 0x649   : > { %v4536_v52 = vrot.slane %v7309_v56, %v10536_v7  ;;  %v4444_v39 = vpop.f32.mrb[7].mxu0  ;;  %v4529_v16 = vcombine.high %v7309_v56, %v7309_v56 }
 0x64a   : > { %v4487_v17 = vrot.slane %v4444_v39, %v10536_v7  ;;  %v4480_v62 = vcombine.high %v4444_v39, %v4444_v39 }
 0x64b   : > { %v4552_v27 = vrot.slane %v4536_v52, %v10536_v7  ;;  %v4543_v21 = vrot.slane %v4529_v16, %v10536_v7  ;;  %v4544_v13 = vcombine.high %v4536_v52, %v4536_v52 }
 0x64c   : > { %v4503_v50 = vrot.slane %v4487_v17, %v10536_v7  ;;  %v7312_v18 = vpop.f32.mrb[8].mxu0  ;;  %v4495_v14 = vcombine.high %v4487_v17, %v4487_v17 }
 0x64d   : > { %v9562_v4 = vpop.f32.mrb[9].mxu0  ;;  %v4813_v57 = vrot.slane %v4552_v27, %v10611_v42  ;;  %v4559_v35 = vrot.slane %v4543_v21, %v10536_v7  ;;  %v4566_v37 = vrot.slane %v4544_v13, %v10536_v7  ;;  %v4636_v56 = vrot.slane %v7312_v18, %v10536_v7 }
 0x64e   : > { %v4781_v31 = vrot.slane %v4503_v50, %v10611_v42  ;;  %v4525_v33 = vcombine.high %v4503_v50, %v4503_v50  ;;  %v4545_v16 = vcombine.high %v4543_v21, %v4543_v21  ;;  %v4494_v50 = vrot.slane %v4480_v62, %v10536_v7 }
 0x64f   : > { %4858 = vrot.lane.b32.xlu1 %v4813_v57, %s7886_s24  ;;  %v4829_v30 = vrot.slane %v4559_v35, %v10611_v42  ;;  %v4574_v57 = vcombine.high %v4552_v27, %v4552_v27  ;;  %v4817_v23 = vrot.slane %v4566_v37, %v10611_v42  ;;  %v4517_v13 = vrot.slane %v4495_v14, %v10536_v7 }
 0x650   : > { %v9567_v2 = vpop.f32.mrb[10].mxu0  ;;  %4842 = vrot.lane.b32.xlu0 %v4781_v31, %s7886_s24  ;;  %v4652_v31 = vrot.slane %v4636_v56, %v10536_v7  ;;  %v4789_v52 = vrot.slane %v4525_v33, %v10611_v42  ;;  %v4573_v39 = vrot.slane %v4545_v16, %v10536_v7  ;;  %v4510_v27 = vrot.slane %v4494_v50, %v10536_v7 }
 0x651   : > { %v9569_v26 = vpop.f32.mrb[11].mxu0  ;;  %v4527_v21 = vcombine.high %v4517_v13, %v4517_v13  ;;  %v4587_v62 = vrot.slane %v9562_v4, %v10536_v7  ;;  %v4576_v33 = vcombine.high %v4566_v37, %v4566_v37  ;;  %v4629_v16 = vcombine.high %v7312_v18, %v7312_v18 }
 0x652   : > { %v4925_v17 = vrot.slane %v4652_v31, %v10611_v42  ;;  %v4833_v14 = vrot.slane %v4573_v39, %v10611_v42  ;;  %v4674_v46 = vcombine.high %v4652_v31, %v4652_v31  ;;  %v4644_v31 = vcombine.high %v4636_v56, %v4636_v56 }
 0x653   : > { %4866 = vrot.lane.b32.xlu1 %v4829_v30, %s7886_s24  ;;  %v4821_v30 = vrot.slane %v4574_v57, %v10611_v42  ;;  %v4797_v57 = vrot.slane %v4510_v27, %v10611_v42  ;;  %v4825_v1 = vrot.slane %v4576_v33, %v10611_v42  ;;  %v4580_v33 = vcombine.high %v9562_v4, %v9562_v4 }
 0x654   : > { %4860 = vrot.lane.b32.xlu0 %v4817_v23, %s7886_s24  ;;  %v4785_v23 = vrot.slane %v4517_v13, %v10611_v42  ;;  %v4575_v13 = vcombine.high %v4559_v35, %v4559_v35  ;;  %v4933_v35 = vrot.slane %v4674_v46, %v10611_v42  ;;  %v4666_v46 = vrot.slane %v4644_v31, %v10536_v7 }
 0x655   : > { %v4736_v31 = vrot.slane %v9567_v2, %v10536_v7 }
 0x657   : > { %4846 = vrot.lane.b32.xlu1 %v4789_v52, %s7886_s24  ;;  %v4603_v52 = vrot.slane %v4587_v62, %v10536_v7 }
 0x658   : > { %4862 = vrot.lane.b32.xlu0 %v4821_v30, %s7886_s24  ;;  %v4793_v30 = vrot.slane %v4527_v21, %v10611_v42  ;;  %v4837_v21 = vrot.slane %v4575_v13, %v10611_v42  ;;  %v4594_v13 = vrot.slane %v4580_v33, %v10536_v7 }
 0x659   : > { %v4893_v37 = vrot.slane %v4603_v52, %v10611_v42 }
 0x65b   : > { %4970 = vrot.lane.b32.xlu1 %v4925_v17, %s7888_s28  ;;  %v4496_v17 = vcombine.high %v4494_v50, %v4494_v50  ;;  %v4526_v50 = vcombine.high %v4510_v27, %v4510_v27 }
 0x65c   : > { %4844 = vrot.lane.b32.xlu0 %v4785_v23, %s7886_s24  ;;  %v4643_v23 = vrot.slane %v4629_v16, %v10536_v7 }
 0x65d   : > { %v4524_v18 = vrot.slane %v4496_v17, %v10536_v7  ;;  %v4805_v27 = vrot.slane %v4526_v50, %v10611_v42  ;;  %v4625_v17 = vcombine.high %v4603_v52, %v4603_v52 }
 0x65f   : > { %4868 = vrot.lane.b32.xlu1 %v4833_v14, %s7886_s24  ;;  %v4659_v14 = vrot.slane %v4643_v23, %v10536_v7  ;;  %v4901_v33 = vrot.slane %v4625_v17, %v10611_v42  ;;  %v4687_v17 = vrot.slane %v9569_v26, %v10536_v7 }
 0x660   : > { %4850 = vrot.lane.b32.xlu0 %v4797_v57, %s7886_s24  ;;  %v4595_v57 = vcombine.high %v4587_v62, %v4587_v62  ;;  %v4929_v62 = vrot.slane %v4666_v46, %v10611_v42 }
 0x661   : > { %v4941_v16 = vrot.slane %v4659_v14, %v10611_v42 }
 0x662   : > { %v4617_v56 = vrot.slane %v4595_v57, %v10536_v7 }
 0x663   : > { %4848 = vrot.lane.b32.xlu1 %v4793_v30, %s7886_s24  ;;  %v4577_v30 = vcombine.high %v4573_v39, %v4573_v39  ;;  %v4610_v39 = vrot.slane %v4594_v13, %v10536_v7 }
 0x664   : > { %4864 = vrot.lane.b32.xlu0 %v4825_v1, %s7886_s24  ;;  %v4801_v1 = vrot.slane %v4524_v18, %v10611_v42 }
 0x665   : > { %v4841_v4 = vrot.slane %v4577_v30, %v10611_v42  ;;  %v4909_v50 = vrot.slane %v4610_v39, %v10611_v42  ;;  %v4596_v30 = vcombine.high %v4594_v13, %v4594_v13 }
 0x667   : > { %4954 = vrot.lane.b32.xlu1 %v4893_v37, %s7888_s28  ;;  %v4897_v37 = vrot.slane %v4617_v56, %v10611_v42 }
 0x668   : > { %4870 = vrot.lane.b32.xlu0 %v4837_v21, %s7886_s24  ;;  %v4645_v21 = vcombine.high %v4643_v23, %v4643_v23 }
 0x66a   : > { %v4673_v52 = vrot.slane %v4645_v21, %v10536_v7 }
 0x66b   : > { %4974 = vrot.lane.b32.xlu1 %v4933_v35, %s7888_s28  ;;  %v4676_v35 = vcombine.high %v4666_v46, %v4666_v46  ;;  %v4627_v46 = vcombine.high %v4617_v56, %v4617_v56 }
 0x66c   : > { %4852 = vrot.lane.b32.xlu0 %v4801_v1, %s7886_s24  ;;  %v4528_v1 = vcombine.high %v4524_v18, %v4524_v18  ;;  %v4729_v18 = vcombine.high %v9567_v2, %v9567_v2  ;;  %v4703_v2 = vrot.slane %v4687_v17, %v10536_v7 }
 0x66d   : > { %v4937_v57 = vrot.slane %v4676_v35, %v10611_v42  ;;  %v4905_v56 = vrot.slane %v4627_v46, %v10611_v42 }
 0x66e   : > { %v4809_v23 = vrot.slane %v4528_v1, %v10611_v42  ;;  %v4743_v13 = vrot.slane %v4729_v18, %v10536_v7  ;;  %v5005_v1 = vrot.slane %v4703_v2, %v10611_v42 }
 0x66f   : > { %4978 = vrot.lane.b32.xlu1 %v4941_v16, %s7888_s28  ;;  %v4752_v16 = vrot.slane %v4736_v31, %v10536_v7 }
 0x670   : > { %4854 = vrot.lane.b32.xlu0 %v4805_v27, %s7886_s24  ;;  %v4945_v27 = vrot.slane %v4673_v52, %v10611_v42  ;;  %v4759_v21 = vrot.slane %v4743_v13, %v10536_v7 }
 0x673   : > { %4872 = vrot.lane.b32.xlu1 %v4841_v4, %s7886_s24  ;;  %v4675_v4 = vcombine.high %v4659_v14, %v4659_v14 }
 0x674   : > { %4972 = vrot.lane.b32.xlu0 %v4929_v62, %s7888_s28  ;;  %v5037_v62 = vrot.slane %v4752_v16, %v10611_v42 }
 0x675   : > { %v4949_v14 = vrot.slane %v4675_v4, %v10611_v42  ;;  %v4774_v4 = vcombine.high %v4752_v16, %v4752_v16 }
 0x677   : > { %4956 = vrot.lane.b32.xlu1 %v4897_v37, %s7888_s28  ;;  %v4624_v37 = vrot.slane %v4596_v30, %v10536_v7  ;;  %v4677_v30 = vcombine.high %v4673_v52, %v4673_v52 }
 0x678   : > { %4962 = vrot.lane.b32.xlu0 %v4909_v50, %s7888_s28  ;;  %v4626_v50 = vcombine.high %v4610_v39, %v4610_v39 }
 0x679   : > { %v4913_v35 = vrot.slane %v4624_v37, %v10611_v42 }
 0x67a   : > { %v4917_v18 = vrot.slane %v4626_v50, %v10611_v42  ;;  %v5045_v50 = vrot.slane %v4774_v4, %v10611_v42 }
 0x67b   : > { %4958 = vrot.lane.b32.xlu1 %v4901_v33, %s7888_s28  ;;  %v4744_v33 = vcombine.high %v4736_v31, %v4736_v31  ;;  %v4725_v31 = vcombine.high %v4703_v2, %v4703_v2 }
 0x67c   : > { %4976 = vrot.lane.b32.xlu0 %v4937_v57, %s7888_s28  ;;  %v4680_v57 = vcombine.high %v9569_v26, %v9569_v26 }
 0x67d   : > { %v4766_v46 = vrot.slane %v4744_v33, %v10536_v7 }
 0x67e   : > { %v4694_v39 = vrot.slane %v4680_v57, %v10536_v7 }
 0x67f   : > { %4856 = vrot.lane.b32.xlu1 %v4809_v23, %s7886_s24  ;;  %v5053_v23 = vrot.slane %v4759_v21, %v10611_v42  ;;  %v5041_v26 = vrot.slane %v4766_v46, %v10611_v42 }
 0x680   : > { %4980 = vrot.lane.b32.xlu0 %v4945_v27, %s7888_s28  ;;  %v4953_v27 = vrot.slane %v4677_v30, %v10611_v42  ;;  %v4710_v52 = vrot.slane %v4694_v39, %v10536_v7  ;;  %v4696_v33 = vcombine.high %v4694_v39, %v4694_v39 }
 0x682   : > { %v5021_v16 = vrot.slane %v4710_v52, %v10611_v42 }
 0x683   : > { %5082 = vrot.lane.b32.xlu1 %v5037_v62, %s7897_s23  ;;  %v4695_v62 = vcombine.high %v4687_v17, %v4687_v17  ;;  %v4628_v17 = vcombine.high %v4624_v37, %v4624_v37 }
 0x684   : > { %4960 = vrot.lane.b32.xlu0 %v4905_v56, %s7888_s28  ;;  %v5013_v56 = vrot.slane %v4725_v31, %v10611_v42 }
 0x685   : > { %v4921_v57 = vrot.slane %v4628_v17, %v10611_v42 }
 0x687   : > { %4982 = vrot.lane.b32.xlu1 %v4949_v14, %s7888_s28  ;;  %v4745_v14 = vcombine.high %v4743_v13, %v4743_v13  ;;  %v4776_v13 = vcombine.high %v4766_v46, %v4766_v46  ;;  %v4726_v46 = vcombine.high %v4710_v52, %v4710_v52 }
 0x688   : > { %4964 = vrot.lane.b32.xlu0 %v4913_v35, %s7888_s28  ;;  %v4717_v35 = vrot.slane %v4695_v62, %v10536_v7 }
 0x689   : > { %v4773_v2 = vrot.slane %v4745_v14, %v10536_v7 }
 0x68a   : > { %v4727_v37 = vcombine.high %v4717_v35, %v4717_v35 }
 0x68b   : > { %5066 = vrot.lane.b32.xlu1 %v5005_v1, %s7897_s23  ;;  %v5009_v1 = vrot.slane %v4717_v35, %v10611_v42  ;;  %v5057_v30 = vrot.slane %v4773_v2, %v10611_v42  ;;  %v4777_v62 = vcombine.high %v4773_v2, %v4773_v2 }
 0x68c   : > { %5090 = vrot.lane.b32.xlu0 %v5053_v23, %s7897_s23  ;;  %v4724_v23 = vrot.slane %v4696_v33, %v10536_v7 }
 0x68d   : > { %v5065_v14 = vrot.slane %v4777_v62, %v10611_v42 }
 0x68e   : > { %v4728_v39 = vcombine.high %v4724_v23, %v4724_v23  ;;  %v5025_v31 = vrot.slane %v4724_v23, %v10611_v42 }
 0x68f   : > { %4966 = vrot.lane.b32.xlu1 %v4917_v18, %s7888_s28  ;;  %v5049_v18 = vrot.slane %v4776_v13, %v10611_v42 }
 0x690   : > { %4984 = vrot.lane.b32.xlu0 %v4953_v27, %s7888_s28  ;;  %v5017_v27 = vrot.slane %v4727_v37, %v10611_v42  ;;  %v5033_v4 = vrot.slane %v4728_v39, %v10611_v42 }
 0x693   : > { %5084 = vrot.lane.b32.xlu1 %v5041_v26, %s7897_s23  ;;  %v4775_v26 = vcombine.high %v4759_v21, %v4759_v21 }
 0x694   : > { %5070 = vrot.lane.b32.xlu0 %v5013_v56, %s7897_s23  ;;  %v5029_v56 = vrot.slane %v4726_v46, %v10611_v42 }
 0x695   : > { %v5061_v52 = vrot.slane %v4775_v26, %v10611_v42 }
 0x697   : > { %5086 = vrot.lane.b32.xlu1 %v5045_v50, %s7897_s23 }
 0x698   : > { %5074 = vrot.lane.b32.xlu0 %v5021_v16, %s7897_s23 }
 0x69b   : > { %5068 = vrot.lane.b32.xlu1 %v5009_v1, %s7897_s23 }
 0x69c   : > { %4968 = vrot.lane.b32.xlu0 %v4921_v57, %s7888_s28 }
 0x69f   : > { %5092 = vrot.lane.b32.xlu1 %v5057_v30, %s7897_s23 }
 0x6a0   : > { %5088 = vrot.lane.b32.xlu0 %v5049_v18, %s7897_s23 }
 0x6a3   : > { %5076 = vrot.lane.b32.xlu1 %v5025_v31, %s7897_s23 }
 0x6a4   : > { %5072 = vrot.lane.b32.xlu0 %v5017_v27, %s7897_s23 }
 0x6a7   : > { %5080 = vrot.lane.b32.xlu1 %v5033_v4, %s7897_s23 }
 0x6a8   : > { %5078 = vrot.lane.b32.xlu0 %v5029_v56, %s7897_s23 }
 0x6ab   : > { %5096 = vrot.lane.b32.xlu1 %v5065_v14, %s7897_s23 }
 0x6ac   : > { %5094 = vrot.lane.b32.xlu0 %v5061_v52, %s7897_s23 }
 0x6c1   : > { %v4859_v35 = vpop.permute.xlu1 %4858 }
 0x6c2   : > { %v4843_v50 = vpop.permute.xlu0 %4842  ;;  %v5122_v0 = vsel %vm1967_vm3, %v9407_v53, %v4859_v35 }
 0x6c3   : > { %v5114_v29 = vsel %vm1967_vm3, %v9416_v58, %v4843_v50 }
 0x6c5   : > { %v4867_v16 = vpop.permute.xlu1 %4866 }
 0x6c6   : > { %v4861_v17 = vpop.permute.xlu0 %4860 }
 0x6c9   : > { %v4847_v2 = vpop.permute.xlu1 %4846 }
 0x6ca   : > { %v4863_v33 = vpop.permute.xlu0 %4862 }
 0x6cd   : > { %v4971_v1 = vpop.permute.xlu1 %4970 }
 0x6ce   : > { %v4845_v21 = vpop.permute.xlu0 %4844  ;;  %v5138_v43 = vsel %vm506_vm1, %v5122_v0, %v4971_v1 }
 0x6d1   : > { %v9705_v13 = vpop.permute.xlu1 %4868 }
 0x6d2   : > { %v4851_v57 = vpop.permute.xlu0 %4850 }
 0x6d5   : > { %v9707_v23 = vpop.permute.xlu1 %4848 }
 0x6d6   : > { %v9709_v30 = vpop.permute.xlu0 %4864 }
 0x6d9   : > { %v4955_v37 = vpop.permute.xlu1 %4954 }
 0x6da   : > { %v9711_v18 = vpop.permute.xlu0 %4870  ;;  %v5130_v45 = vsel %vm506_vm1, %v5114_v29, %v4955_v37  ;;  %v5126_v29 = vsel %vm1967_vm3, %v9445_v61, %v4867_v16  ;;  %v5116_v61 = vsel %vm1967_vm3, %v9393_v3, %v4847_v2  ;;  %v5118_v3 = vsel %vm1967_vm3, %v9452_v32, %v4851_v57 }
 0x6dd   : > { %v4975_v39 = vpop.permute.xlu1 %4974 }
 0x6de   : > { %v4853_v31 = vpop.permute.xlu0 %4852 }
 0x6e1   : > { %v4979_v46 = vpop.permute.xlu1 %4978 }
 0x6e2   : > { %v9713_v27 = vpop.permute.xlu0 %4854 }
 0x6e5   : > { %v9715_v4 = vpop.permute.xlu1 %4872 }
 0x6e6   : > { %v4973_v62 = vpop.permute.xlu0 %4972 }
 0x6e9   : > { %v4957_v26 = vpop.permute.xlu1 %4956 }
 0x6ea   : > { %v4963_v56 = vpop.permute.xlu0 %4962 }
 0x6ed   : > { %v4959_v14 = vpop.permute.xlu1 %4958 }
 0x6ee   : > { %v4977_v52 = vpop.permute.xlu0 %4976 }
 0x6f1   : > { %v9717_v7 = vpop.permute.xlu1 %4856 }
 0x6f2   : > { %v4981_v19 = vpop.permute.xlu0 %4980 }
 0x6f5   : > { %v5083_v6 = vpop.permute.xlu1 %5082 }
 0x6f6   : > { %v5154_v47 = vsel %vm2241_vm4, %v5138_v43, %v5083_v6  ;;  %v9724_v59 = vpop.permute.xlu0 %4960  ;;  %v5123_v6 = vsel %vm1967_vm3, %v9369_v40, %v4861_v17  ;;  %v5142_v40 = vsel %vm506_vm1, %v5126_v29, %v4979_v46 }
 0x6f7   : > { %5194 = vrot.lane.b32.xlu1 %v5154_v47, %s7888_s28  ;;  %v5139_v43 = vsel %vm506_vm1, %v5123_v6, %v4973_v62  ;;  %v5119_v6 = vsel %vm1967_vm3, %v9474_v12, %v4853_v31 }
 0x6f9   : > { %v9726_v41 = vpop.permute.xlu1 %4982 }
 0x6fa   : > { %v4965_v34 = vpop.permute.xlu0 %4964 }
 0x6fb   : > { %v5135_v32 = vsel %vm506_vm1, %v5119_v6, %v4965_v34  ;;  %v5120_v34 = vsel %vm1967_vm3, %v9492_v24, %v9713_v27  ;;  %v5243_v24 = vld [vmem:[%s10311_s6 + $0x8] sm:$0xff] }
 0x6fd   : > { %v5067_v51 = vpop.permute.xlu1 %5066 }
 0x6fe   : > { %v5146_v53 = vsel %vm2241_vm4, %v5130_v45, %v5067_v51  ;;  %v5091_v0 = vpop.permute.xlu0 %5090  ;;  %v5124_v51 = vsel %vm1967_vm3, %v9385_v9, %v4863_v33  ;;  %v5115_v9 = vsel %vm1967_vm3, %v9375_v54, %v4845_v21  ;;  %v5134_v54 = vsel %vm506_vm1, %v5118_v3, %v4963_v56 }
 0x6ff   : > { %5178 = vrot.lane.b32.xlu1 %v5146_v53, %s7888_s28  ;;  %v5140_v50 = vsel %vm506_vm1, %v5124_v51, %v4975_v39  ;;  %v5158_v37 = vsel %vm2241_vm4, %v5142_v40, %v5091_v0  ;;  %v5131_v33 = vsel %vm506_vm1, %v5115_v9, %v4957_v26  ;;  %v5132_v39 = vsel %vm506_vm1, %v5116_v61, %v4959_v14  ;;  %v5247_v61 = vld [vmem:[%s10311_s6 + $0x28] sm:$0xff] }
 0x700   : > { %v5125_v14 = vsel %vm1967_vm3, %v9424_v15, %v9709_v30  ;;  %v5127_v15 = vsel %vm1967_vm3, %v9469_v11, %v9705_v13  ;;  %v5242_v13 = vld [vmem:[%s10311_s6] sm:$0xff] }
 0x701   : > { %v4967_v35 = vpop.permute.xlu1 %4966  ;;  %v5143_v12 = vsel %vm506_vm1, %v5127_v15, %v4981_v19 }
 0x702   : > { %v9735_v47 = vpop.permute.xlu0 %4984  ;;  %v5136_v29 = vsel %vm506_vm1, %v5120_v34, %v4967_v35  ;;  %v5121_v35 = vsel %vm1967_vm3, %v9515_v25, %v9717_v7  ;;  %v5246_v7 = vld [vmem:[%s10311_s6 + $0x20] sm:$0xff] }
 0x703   : > { %v5309_v9 = vand.u32 4294901760, %v5246_v7 }
 0x705   : > { %v5085_v1 = vpop.permute.xlu1 %5084 }
 0x706   : > { %v5155_v58 = vsel %vm2241_vm4, %v5139_v43, %v5085_v1  ;;  %v5071_v45 = vpop.permute.xlu0 %5070  ;;  %v5141_v1 = vsel %vm506_vm1, %v5125_v14, %v4977_v52  ;;  %v5117_v52 = vsel %vm1967_vm3, %v9431_v5, %v9707_v23  ;;  %v5297_v5 = vand.u32 4294901760, %v5242_v13 }
 0x707   : > { %5196 = vrot.lane.b32.xlu0 %v5155_v58, %s7888_s28  ;;  %v5148_v53 = vsel %vm2241_vm4, %v5132_v39, %v5071_v45  ;;  %v5133_v11 = vsel %vm506_vm1, %v5117_v52, %v9724_v59  ;;  %v5300_v23 = vand.u32 4294901760, %v5243_v24  ;;  %v5128_v59 = vsel %vm1967_vm3, %v9483_v22, %v9711_v18  ;;  %v5245_v22 = vld [vmem:[%s10311_s6 + $0x18] sm:$0xff] }
 0x708   : > { %v5306_v18 = vand.u32 4294901760, %v5245_v22  ;;  %v5312_v39 = vand.u32 4294901760, %v5247_v61 }
 0x709   : > { %v5087_v17 = vpop.permute.xlu1 %5086 }
 0x70a   : > { %v5156_v62 = vsel %vm2241_vm4, %v5140_v50, %v5087_v17  ;;  %v5075_v16 = vpop.permute.xlu0 %5074  ;;  %v5144_v50 = vsel %vm506_vm1, %v5128_v59, %v9726_v41  ;;  %v9837_v3 = vpack.c.bf16 %v5312_v39, %v5309_v9 }
 0x70b   : > { %5202 = vrot.lane.b32.xlu0 %v5158_v37, %s7888_s28  ;;  %5198 = vrot.lane.b32.xlu1 %v5156_v62, %s7888_s28  ;;  %v5150_v26 = vsel %vm2241_vm4, %v5134_v54, %v5075_v16  ;;  %v9810_v37 = vpack.c.bf16 %v5300_v23, %v5297_v5  ;;  %v5244_v62 = vld [vmem:[%s10311_s6 + $0x10] sm:$0xff]  ;;  %v5396_v54 = vsub.f32 %v5243_v24, %v5300_v23 }
 0x70c   : > { %v5303_v41 = vand.u32 4294901760, %v5244_v62 }
 0x70d   : > { %v5069_v46 = vpop.permute.xlu1 %5068  ;;  %7527 = vmatprep.subr.bf16.mxu1 %v9810_v37 }
 0x70e   : > { %v5147_v0 = vsel %vm2241_vm4, %v5131_v33, %v5069_v46  ;;  %v4969_v2 = vpop.permute.xlu0 %4968  ;;  %v5129_v46 = vsel %vm1967_vm3, %v9510_v8, %v9715_v4  ;;  %7529 = vmatpush3.bf16.msra.mxu1 %v9810_v37  ;;  %v5397_v4 = vand.u32 4294901760, %v5396_v54  ;;  %v5403_v6 = vsub.f32 %v5244_v62, %v5303_v41 }
 0x70f   : > { %5180 = vrot.lane.b32.xlu0 %v5147_v0, %s7888_s28  ;;  %5182 = vrot.lane.b32.xlu1 %v5148_v53, %s7888_s28  ;;  %v5137_v40 = vsel %vm506_vm1, %v5121_v35, %v4969_v2  ;;  %v9833_v53 = vpack.c.bf16 %v5306_v18, %v5303_v41  ;;  %v5145_v0 = vsel %vm506_vm1, %v5129_v46, %v9735_v47 }
 0x710   : > { %v5389_v2 = vsub.f32 %v5242_v13, %v5297_v5  ;;  %v5398_v14 = vsub.f32 %v5396_v54, %v5397_v4  ;;  %v5410_v47 = vsub.f32 %v5245_v22, %v5306_v18 }
 0x711   : > { %v5093_v21 = vpop.permute.xlu1 %5092  ;;  %7531 = vmatprep.subr.bf16.mxu1 %v9833_v53 }
 0x712   : > { %v5089_v43 = vpop.permute.xlu0 %5088  ;;  %v5159_v31 = vsel %vm2241_vm4, %v5143_v12, %v5093_v21  ;;  %v5390_v8 = vand.u32 4294901760, %v5389_v2  ;;  %7533 = vmatpush3.bf16.msra.mxu1 %v9833_v53  ;;  %v5424_v12 = vsub.f32 %v5247_v61, %v5312_v39  ;;  %v9850_v24 = vpack.c.bf16 %v5396_v54, %v5389_v2 }
 0x713   : > { %5186 = vrot.lane.b32.xlu0 %v5150_v26, %s7888_s28  ;;  %v5157_v56 = vsel %vm2241_vm4, %v5141_v1, %v5089_v43  ;;  %7535 = vmatprep.subr.bf16.mxu1 %v9837_v3  ;;  %v5399_v1 = vand.u32 4294901760, %v5398_v14  ;;  %v9854_v5 = vpack.c.bf16 %v5410_v47, %v5403_v6 }
 0x714   : > { %v5391_v26 = vsub.f32 %v5389_v2, %v5390_v8  ;;  %v9858_v59 = vpack.c.bf16 %v5397_v4, %v5390_v8 }
 0x715   : > { %v5077_v57 = vpop.permute.xlu1 %5076 }
 0x716   : > { %v5151_v58 = vsel %vm2241_vm4, %v5135_v32, %v5077_v57  ;;  %v5073_v30 = vpop.permute.xlu0 %5072  ;;  %v5392_v43 = vand.u32 4294901760, %v5391_v26  ;;  %v5404_v32 = vand.u32 4294901760, %v5403_v6  ;;  %v5411_v57 = vand.u32 4294901760, %v5410_v47  ;;  %7537 = vmatpush3.bf16.msra.mxu1 %v9837_v3 }
 0x717   : > { %5200 = vrot.lane.b32.xlu0 %v5157_v56, %s7888_s28  ;;  %5188 = vrot.lane.b32.xlu1 %v5151_v58, %s7888_s28  ;;  %v5149_v27 = vsel %vm2241_vm4, %v5133_v11, %v5073_v30  ;;  %v5417_v30 = vsub.f32 %v5246_v7, %v5309_v9 }
 0x718   : > { %v9845_v56 = vpack.c.bf16 %v5399_v1, %v5392_v43  ;;  %v5405_v58 = vsub.f32 %v5403_v6, %v5404_v32  ;;  %v5412_v15 = vsub.f32 %v5410_v47, %v5411_v57  ;;  %v9860_v35 = vpack.c.bf16 %v5411_v57, %v5404_v32  ;;  %v10612_v1 = vld [vmem:[#allocation22_spill] sm:$0xff]  ;;  %v10613_v57 = vld [vmem:[#allocation35_spill] sm:$0xff] }
 0x719   : > { %v5081_v51 = vpop.permute.xlu1 %5080  ;;  %v5418_v52 = vand.u32 4294901760, %v5417_v30  ;;  %v9856_v23 = vpack.c.bf16 %v5424_v12, %v5417_v30 }
 0x71a   : > { %v5079_v45 = vpop.permute.xlu0 %5078  ;;  %v5153_v25 = vsel %vm2241_vm4, %v5137_v40, %v5081_v51  ;;  %7539 = vmatprep.subr.bf16.mxu1 %v9845_v56  ;;  %v5413_v34 = vand.u32 4294901760, %v5412_v15 }
 0x71b   : > { %5204 = vrot.lane.b32.xlu0 %v5159_v31, %s7888_s28  ;;  %v5152_v19 = vsel %vm2241_vm4, %v5136_v29, %v5079_v45  ;;  %v5406_v31 = vand.u32 4294901760, %v5405_v58  ;;  %v5425_v29 = vand.u32 4294901760, %v5424_v12  ;;  %v5419_v45 = vsub.f32 %v5417_v30, %v5418_v52 }
 0x71c   : > { %5190 = vrot.lane.b32.xlu1 %v5152_v19, %s7888_s28 }
 0x71d   : > { %v5097_v16 = vpop.permute.xlu1 %5096  ;;  %v9848_v51 = vpack.c.bf16 %v5413_v34, %v5406_v31  ;;  %v5426_v11 = vsub.f32 %v5424_v12, %v5425_v29  ;;  %v5420_v19 = vand.u32 4294901760, %v5419_v45 }
 0x71e   : > { %v5095_v17 = vpop.permute.xlu0 %5094  ;;  %v5161_v21 = vsel %vm2241_vm4, %v5145_v0, %v5097_v16 }
 0x71f   : > { %5184 = vrot.lane.b32.xlu0 %v5149_v27, %s7888_s28  ;;  %v5160_v33 = vsel %vm2241_vm4, %v5144_v50, %v5095_v17  ;;  %v5427_v13 = vand.u32 4294901760, %v5426_v11  ;;  %v9862_v50 = vpack.c.bf16 %v5425_v29, %v5418_v52  ;;  %v10614_v52 = vld [vmem:[#allocation31_spill] sm:$0xff] }
 0x720   : > { %5192 = vrot.lane.b32.xlu1 %v5153_v25, %s7888_s28 }
 0x721   : > { %v9852_v27 = vpack.c.bf16 %v5427_v13, %v5420_v19  ;;  %v10615_v13 = vld [vmem:[#allocation37_spill] sm:$0xff] }
 0x723   : > { %5206 = vrot.lane.b32.xlu0 %v5160_v33, %s7888_s28 }
 0x724   : > { %5208 = vrot.lane.b32.xlu1 %v5161_v21, %s7888_s28  ;;  %s7898_s28 = smov 120  }
 0x769   : > { %v5195_v40 = vpop.permute.xlu1 %5194 }
 0x771   : > { %v5179_v62 = vpop.permute.xlu1 %5178 }
 0x779   : > { %v5197_v17 = vpop.permute.xlu0 %5196 }
 0x77a   : > { %v5235_v33 = vsel %vm506_vm1, %v8909_v63, %v5197_v17  ;;  %v5234_v63 = vsel %vm506_vm1, %v8876_v10, %v5195_v40 }
 0x77b   : > { %v5278_v21 = vrot.slane %v5235_v33, 7 }
 0x77d   : > { %v5203_v22 = vpop.permute.xlu0 %5202  ;;  %v5199_v7 = vpop.permute.xlu1 %5198  ;;  %v5279_v47 = vsel %vm2475_vm6, %v5278_v21, %v5234_v63 }
 0x77e   : > { %v5236_v39 = vsel %vm506_vm1, %v8893_v36, %v5199_v7 }
 0x77f   : > { %v5280_v8 = vrot.slane %v5236_v39, 6 }
 0x781   : > { %v5181_v25 = vpop.permute.xlu0 %5180  ;;  %v5183_v18 = vpop.permute.xlu1 %5182  ;;  %v5281_v32 = vsel %vm2478_vm7, %v5280_v8, %v5279_v47  ;;  %v10623_v47 = vld [vmem:[#allocation64_spill] sm:$0xff] }
 0x782   : > { %v5227_v9 = vsel %vm506_vm1, %v8859_v20, %v5181_v25  ;;  %v5228_v0 = vsel %vm506_vm1, %v8903_v60, %v5183_v18  ;;  %v5226_v20 = vsel %vm506_vm1, %v8887_v49, %v5179_v62  ;;  %v5238_v49 = vsel %vm506_vm1, %v8929_v44, %v5203_v22 }
 0x783   : > { %v5264_v46 = vrot.slane %v5227_v9, 7  ;;  %v5266_v4 = vrot.slane %v5228_v0, 6  ;;  %v5284_v44 = vrot.slane %v5238_v49, 4  ;;  %v6491_v49 = vrot.slane %v10623_v47, %v10611_v42 }
 0x785   : > { %v5187_v41 = vpop.permute.xlu0 %5186  ;;  %v5265_v36 = vsel %vm2475_vm6, %v5264_v46, %v5226_v20 }
 0x786   : > { %v5230_v60 = vsel %vm506_vm1, %v8913_v28, %v5187_v41 }
 0x787   : > { %v5270_v15 = vrot.slane %v5230_v60, 4 }
 0x789   : > { %v5201_v61 = vpop.permute.xlu0 %5200  ;;  %v5189_v16 = vpop.permute.xlu1 %5188 }
 0x78a   : > { %v5237_v2 = vsel %vm506_vm1, %v8921_v38, %v5201_v61  ;;  %v5231_v43 = vsel %vm506_vm1, %v8938_v55, %v5189_v16  ;;  %v10616_v16 = vld [vmem:[#allocation29_spill] sm:$0xff] }
 0x78b   : > { %v5282_v26 = vrot.slane %v5237_v2, 5  ;;  %v5272_v34 = vrot.slane %v5231_v43, 3  ;;  %v10624_v43 = vld [vmem:[#allocation52_spill] sm:$0xff] }
 0x78d   : > { %v5205_v54 = vpop.permute.xlu0 %5204  ;;  %v5283_v30 = vsel %vm2481_vm8, %v5282_v26, %v5281_v32 }
 0x78e   : > { %v5191_v14 = vpop.permute.xlu1 %5190  ;;  %v5239_v38 = vsel %vm506_vm1, %v8958_v48, %v5205_v54  ;;  %v5267_v48 = vsel %vm2478_vm7, %v5266_v4, %v5265_v36  ;;  %v5285_v17 = vsel %vm2484_vm9, %v5284_v44, %v5283_v30  ;;  %v10630_v44 = vld [vmem:[#allocation77_spill] sm:$0xff] }
 0x78f   : > { %v5232_v28 = vsel %vm506_vm1, %v10613_v57, %v5191_v14  ;;  %v5286_v12 = vrot.slane %v5239_v38, 3  ;;  %v10622_v38 = vld [vmem:[#allocation7_spill] sm:$0xff]  ;;  %v10626_v57 = vld [vmem:[#allocation70_spill] sm:$0xff] }
 0x790   : > { %v5274_v11 = vrot.slane %v5232_v28, 2  ;;  %v6463_v28 = vrot.slane %v10626_v57, %v10611_v42 }
 0x791   : > { %v5185_v6 = vpop.permute.xlu0 %5184  ;;  %v5287_v25 = vsel %vm2487_vm11, %v5286_v12, %v5285_v17  ;;  %v10629_v12 = vld [vmem:[#allocation75_spill] sm:$0xff]  ;;  %v6295_v17 = vld [vmem:[%s10312_s7 + $0x8] sm:$0xff] }
 0x792   : > { %v5229_v10 = vsel %vm506_vm1, %v10612_v1, %v5185_v6  ;;  %v5193_v31 = vpop.permute.xlu1 %5192  ;;  %v6447_v6 = vrot.slane %v10622_v38, %v10611_v42  ;;  %v6479_v1 = vrot.slane %v10624_v43, %v10611_v42 }
 0x793   : > { %v5268_v58 = vrot.slane %v5229_v10, 5  ;;  %v5233_v29 = vsel %vm506_vm1, %v10614_v52, %v5193_v31  ;;  %v10625_v10 = vld [vmem:[#allocation69_spill] sm:$0xff]  ;;  %v6503_v31 = vrot.slane %v10629_v12, %v10611_v42 }
 0x794   : > { %v5276_v22 = vrot.slane %v5233_v29, 1  ;;  %v6495_v32 = vrot.slane %v10625_v10, %v10611_v42  ;;  %v10632_v29 = vld [vmem:[#allocation80_spill] sm:$0xff] }
 0x795   : > { %v5269_v55 = vsel %vm2481_vm8, %v5268_v58, %v5267_v48  ;;  %v5207_v45 = vpop.permute.xlu0 %5206  ;;  %v10627_v58 = vld [vmem:[#allocation71_spill] sm:$0xff] }
 0x796   : > { %v5271_v19 = vsel %vm2484_vm9, %v5270_v15, %v5269_v55  ;;  %v5240_v40 = vsel %vm506_vm1, %v10615_v13, %v5207_v45  ;;  %v5209_v18 = vpop.permute.xlu1 %5208  ;;  %v6499_v48 = vrot.slane %v10627_v58, %v10611_v42  ;;  %v10628_v15 = vld [vmem:[#allocation73_spill] sm:$0xff]  ;;  %v10631_v55 = vld [vmem:[#allocation79_spill] sm:$0xff]  ;;  %v6475_v45 = vrot.slane %v10632_v29, %v10611_v42 }
 0x797   : > { %v5273_v62 = vsel %vm2487_vm11, %v5272_v34, %v5271_v19  ;;  %v5288_v7 = vrot.slane %v5240_v40, 2  ;;  %v5241_v33 = vsel %vm506_vm1, %v10616_v16, %v5209_v18  ;;  %v6467_v30 = vrot.slane %v10628_v15, %v10611_v42  ;;  %v10025_v16 = vld [vmem:[%s10312_s7] sm:$0xff] }
 0x798   : > { %v5275_v41 = vsel %vm2490_vm10, %v5274_v11, %v5273_v62  ;;  %v5290_v46 = vrot.slane %v5241_v33, 1  ;;  %v6471_v34 = vrot.slane %v10630_v44, %v10611_v42  ;;  %v6507_v52 = vrot.slane %v10631_v55, %v10611_v42 }
 0x799   : > { %v5277_v61 = vsel %vm2493_vm12, %v5276_v22, %v5275_v41  ;;  %v5289_v9 = vsel %vm2490_vm10, %v5288_v7, %v5287_v25  ;;  %v6347_v22 = vcombine.high %v6295_v17, %v6295_v17  ;;  %v10633_v25 = vld [vmem:[#allocation11_spill] sm:$0xff] }
 0x79a   : > { %v5292_v39 = vsel %vm2509_vm13, %v5277_v61, 0  ;;  %v5291_v2 = vsel %vm2493_vm12, %v5290_v46, %v5289_v9  ;;  %v6354_v41 = vrot.slane %v6295_v17, %v10633_v25  ;;  %v6305_v33 = vrot.slane %v10025_v16, %v10633_v25  ;;  %v10635_v17 = vld [vmem:[#allocation43_spill] sm:$0xff] }
 0x79b   : > { %v5367_v0 = vand.u32 4294901760, %v5292_v39  ;;  %v5294_v21 = vsel %vm2509_vm13, %v5291_v2, 0 }
 0x79c   : > { %v5377_v8 = vand.u32 4294901760, %v5294_v21  ;;  %v6362_v9 = vcombine.high %v6354_v41, %v6354_v41 }
 0x79d   : > { %v5368_v54 = vsub.f32 %v5292_v39, %v5367_v0 }
 0x79e   : > { %v5378_v4 = vsub.f32 %v5294_v21, %v5377_v8 }
 0x79f   : > { %v5369_v20 = vand.u32 4294901760, %v5368_v54 }
 0x7a0   : > { %v5379_v14 = vand.u32 4294901760, %v5378_v4 }
 0x7a1   : > { %v5370_v26 = vsub.f32 %v5368_v54, %v5369_v20 }
 0x7a2   : > { %v5380_v36 = vsub.f32 %v5378_v4, %v5379_v14 }
 0x7a3   : > { %v5371_v63 = vand.u32 4294901760, %v5370_v26 }
 0x7a4   : > { %v5381_v60 = vand.u32 4294901760, %v5380_v36  ;;  %v6313_v36 = vcombine.high %v6305_v33, %v6305_v33 }
 0x7a5   : > { %7328 = vmatprep.mubr.f32.mxu1 %v5371_v63 }
 0x7a6   : > { %7329 = vmatmul.mubr.f32.vlgmr.msra.gmra.mrb[2].mxu1 %v5381_v60 }
 0x7a7   : > { %7541 = vmatpush3.bf16.msra.mxu1 %v9845_v56  ;;  %7343 = vmatprep.mubr.f32.mxu1 %v5367_v0 }
 0x7a8   : > { %7543 = vmatprep.subr.bf16.mxu1 %v9848_v51 }
 0x7ab   : > { %7545 = vmatpush3.bf16.msra.mxu1 %v9848_v51 }
 0x7ac   : > { %7547 = vmatprep.subr.bf16.mxu1 %v9852_v27 }
 0x7af   : > { %7549 = vmatpush3.bf16.msra.mxu1 %v9852_v27  ;;  %v10619_v27 = vld [vmem:[#allocation58_spill] sm:$0xff] }
 0x7b0   : > { %7551 = vmatprep.subr.bf16.mxu1 %v9850_v24 }
 0x7b2   : > { %7344 = vmatmul.mubr.f32.vlgmr.msra.gmra.mrb[2].mxu1 %v5377_v8 }
 0x7b3   : > { %7553 = vmatpush3.bf16.msra.mxu1 %v9850_v24  ;;  %7358 = vmatprep.mubr.f32.mxu1 %v5368_v54  ;;  %v10030_v54 = vrot.slane %v6354_v41, %v10633_v25 }
 0x7b4   : > { %7555 = vmatprep.subr.bf16.mxu1 %v9854_v5 }
 0x7b7   : > { %7557 = vmatpush3.bf16.msra.mxu1 %v9854_v5  ;;  %v6487_v5 = vrot.slane %v10619_v27, %v10611_v42 }
 0x7b8   : > { %7559 = vmatprep.subr.bf16.mxu1 %v9856_v23 }
 0x7bb   : > { %7561 = vmatpush3.bf16.msra.mxu1 %v9856_v23  ;;  %v10620_v23 = vld [vmem:[#allocation60_spill] sm:$0xff] }
 0x7bc   : > { %7563 = vmatprep.subr.bf16.mxu1 %v9810_v37 }
 0x7be   : > { %7359 = vmatmul.mubr.f32.vlgmr.msra.gmra.mrb[2].mxu1 %v5378_v4  ;;  %v10038_v4 = vrot.slane %v6362_v9, %v10633_v25 }
 0x7bf   : > { %7565 = vmatpush3.bf16.msra.mxu1 %v9810_v37  ;;  %7373 = vmatprep.mubr.f32.mxu1 %v5369_v20 }
 0x7c0   : > { %7567 = vmatprep.subr.bf16.mxu1 %v9833_v53 }
 0x7c3   : > { %7569 = vmatpush3.bf16.msra.mxu1 %v9833_v53 }
 0x7c4   : > { %7571 = vmatprep.subr.bf16.mxu1 %v9837_v3 }
 0x7c7   : > { %7573 = vmatpush3.bf16.msra.mxu1 %v9837_v3 }
 0x7c8   : > { %7575 = vmatprep.subr.bf16.mxu1 %v9858_v59 }
 0x7ca   : > { %7374 = vmatmul.mubr.f32.vlgmr.msra.gmra.mrb[2].mxu1 %v5379_v14 }
 0x7cb   : > { %7577 = vmatpush3.bf16.msra.mxu1 %v9858_v59  ;;  %7388 = vmatprep.mubr.f32.mxu1 %v5367_v0  ;;  %v6455_v59 = vrot.slane %v10620_v23, %v10611_v42  ;;  %v6392_v23 = vcombine.high %v10030_v54, %v10030_v54 }
 0x7cc   : > { %7579 = vmatprep.subr.bf16.mxu1 %v9860_v35 }
 0x7cf   : > { %7581 = vmatpush3.bf16.msra.mxu1 %v9860_v35  ;;  %v10621_v35 = vld [vmem:[#allocation66_spill] sm:$0xff] }
 0x7d0   : > { %7583 = vmatprep.subr.bf16.mxu1 %v9862_v50 }
 0x7d3   : > { %7585 = vmatpush3.bf16.msra.mxu1 %v9862_v50  ;;  %v6459_v50 = vrot.slane %v10621_v35, %v10611_v42 }
 0x7d4   : > { %7587 = vmatprep.subr.bf16.mxu1 %v9810_v37 }
 0x7d6   : > { %7389 = vmatmul.mubr.f32.vlgmr.msra.gmra.mrb[2].mxu1 %v5377_v8 }
 0x7d7   : > { %7589 = vmatpush3.bf16.msra.mxu1 %v9810_v37  ;;  %7403 = vmatprep.mubr.f32.mxu1 %v5367_v0  ;;  %v10617_v37 = vld [vmem:[#allocation55_spill] sm:$0xff] }
 0x7d8   : > { %7591 = vmatprep.subr.bf16.mxu1 %v9833_v53 }
 0x7db   : > { %7593 = vmatpush3.bf16.msra.mxu1 %v9833_v53  ;;  %v6483_v53 = vrot.slane %v10617_v37, %v10611_v42 }
 0x7dc   : > { %7595 = vmatprep.subr.bf16.mxu1 %v9837_v3 }
 0x7df   : > { %7597 = vmatpush3.bf16.msra.mxu1 %v9837_v3  ;;  %v10618_v3 = vld [vmem:[#allocation57_spill] sm:$0xff] }
 0x7e0   : > { %v6451_v24 = vrot.slane %v10618_v3, %v10611_v42  ;;  %v6361_v42 = vrot.slane %v6347_v22, %v10633_v25 }
 0x7e2   : > { %7404 = vmatmul.mubr.f32.vlgmr.msra.gmra.mrb[2].mxu1 %v5377_v8  ;;  %v6363_v2 = vcombine.high %v6361_v42, %v6361_v42  ;;  %v10035_v20 = vrot.slane %v6361_v42, %v10633_v25 }
 0x7e4   : > { %v6393_v35 = vcombine.high %v10035_v20, %v10035_v20 }
 0x8b5   : > { %v9941_v56 = vpop.f32.mrb[2].mxu1 }
 0x8b6   : > { %5854 = vrot.lane.b32.xlu1 %v9941_v56, %s7898_s28  ;;  %v9945_v51 = vpop.f32.mrb[3].mxu1 }
 0x8b7   : > { %5852 = vrot.lane.b32.xlu0 %v9945_v51, %s7898_s28 }
 0x8ba   : > { %5860 = vrot.lane.b32.xlu1 %v9941_v56, %s7889_s13 }
 0x8bb   : > { %5858 = vrot.lane.b32.xlu0 %v9945_v51, %s7889_s13  ;;  %s7901_s13 = smov 72  }
 0x8be   : > { %5866 = vrot.lane.b32.xlu1 %v9941_v56, %s7899_s12 }
 0x8bf   : > { %5864 = vrot.lane.b32.xlu0 %v9945_v51, %s7899_s12 }
 0x8c2   : > { %5872 = vrot.lane.b32.xlu1 %v9941_v56, %s7890_s14 }
 0x8c3   : > { %5870 = vrot.lane.b32.xlu0 %v9945_v51, %s7890_s14 }
 0x8c6   : > { %5878 = vrot.lane.b32.xlu1 %v9941_v56, %s7900_s27 }
 0x8c7   : > { %5876 = vrot.lane.b32.xlu0 %v9945_v51, %s7900_s27 }
 0x8ca   : > { %5884 = vrot.lane.b32.xlu1 %v9941_v56, %s7891_s15 }
 0x8cb   : > { %5882 = vrot.lane.b32.xlu0 %v9945_v51, %s7891_s15 }
 0x8ce   : > { %5890 = vrot.lane.b32.xlu1 %v9941_v56, %s7901_s13 }
 0x8cf   : > { %5888 = vrot.lane.b32.xlu0 %v9945_v51, %s7901_s13 }
 0x8d2   : > { %6526 = vrot.lane.b32.xlu1 %v6483_v53, %s7886_s24  ;;  %v10634_v53 = vld [vmem:[#allocation42_spill] sm:$0xff] }
 0x8d3   : > { %6510 = vrot.lane.b32.xlu0 %v6451_v24, %s7886_s24 }
 0x8d6   : > { %6528 = vrot.lane.b32.xlu1 %v6487_v5, %s7886_s24  ;;  %v10047_v5 = vrot.slane %v6363_v2, %v10633_v25 }
 0x8d7   : > { %6512 = vrot.lane.b32.xlu0 %v6455_v59, %s7886_s24 }
 0x8da   : > { %6514 = vrot.lane.b32.xlu1 %v6459_v50, %s7886_s24  ;;  %v10059_v50 = vrot.slane %v6305_v33, %v10633_v25 }
 0x8db   : > { %6508 = vrot.lane.b32.xlu0 %v6447_v6, %s7886_s24 }
 0x8de   : > { %6530 = vrot.lane.b32.xlu1 %v6491_v49, %s7886_s24  ;;  %v10067_v49 = vrot.slane %v6313_v36, %v10633_v25 }
 0x8df   : > { %6524 = vrot.lane.b32.xlu0 %v6479_v1, %s7886_s24 }
 0x8e2   : > { %6532 = vrot.lane.b32.xlu1 %v6495_v32, %s7886_s24 }
 0x8e3   : > { %6516 = vrot.lane.b32.xlu0 %v6463_v28, %s7886_s24 }
 0x8e6   : > { %6534 = vrot.lane.b32.xlu1 %v6499_v48, %s7886_s24 }
 0x8e7   : > { %6518 = vrot.lane.b32.xlu0 %v6467_v30, %s7886_s24 }
 0x8ea   : > { %6536 = vrot.lane.b32.xlu1 %v6503_v31, %s7886_s24 }
 0x8eb   : > { %6520 = vrot.lane.b32.xlu0 %v6471_v34, %s7886_s24 }
 0x8ee   : > { %6538 = vrot.lane.b32.xlu1 %v6507_v52, %s7886_s24 }
 0x8ef   : > { %6522 = vrot.lane.b32.xlu0 %v6475_v45, %s7886_s24 }
 0x928   : > { %v5855_v11 = vpop.permute.xlu1 %5854 }
 0x929   : > { %v5853_v19 = vpop.permute.xlu0 %5852 }
 0x92c   : > { %v5861_v13 = vpop.permute.xlu1 %5860 }
 0x92d   : > { %v5859_v40 = vpop.permute.xlu0 %5858  ;;  %v6030_v26 = vcombine.low %v9941_v56, %v5861_v13  ;;  %v6031_v14 = vcombine.high %v9941_v56, %v5861_v13 }
 0x92e   : > { %v5894_v60 = vcombine.low %v9945_v51, %v5859_v40  ;;  %v5895_v37 = vcombine.high %v9945_v51, %v5859_v40  ;;  %v6394_v51 = vcombine.high %v10038_v4, %v10038_v4 }
 0x92f   : > { %v6038_v38 = vrot.slane %v6030_v26, %v10634_v53  ;;  %v6045_v6 = vrot.slane %v6031_v14, %v10634_v53 }
 0x930   : > { %v5867_v62 = vpop.permute.xlu1 %5866  ;;  %v10070_v43 = vrot.slane %v5894_v60, %v10634_v53  ;;  %v10073_v1 = vrot.slane %v5895_v37, %v10634_v53 }
 0x931   : > { %v5865_v7 = vpop.permute.xlu0 %5864  ;;  %v6046_v39 = vcombine.low %v5855_v11, %v5867_v62  ;;  %v6047_v46 = vcombine.high %v5855_v11, %v5867_v62 }
 0x932   : > { %v5910_v21 = vcombine.low %v5853_v19, %v5865_v7  ;;  %v5911_v63 = vcombine.high %v5853_v19, %v5865_v7 }
 0x933   : > { %v6054_v3 = vrot.slane %v6046_v39, %v10634_v53  ;;  %v6061_v24 = vrot.slane %v6047_v46, %v10634_v53 }
 0x934   : > { %v5873_v18 = vpop.permute.xlu1 %5872  ;;  %v10052_v59 = vrot.slane %v5910_v21, %v10634_v53  ;;  %v10064_v47 = vrot.slane %v5911_v63, %v10634_v53 }
 0x935   : > { %v10020_v61 = vpop.permute.xlu0 %5870  ;;  %v6094_v57 = vcombine.low %v6038_v38, %v6054_v3  ;;  %v6095_v28 = vcombine.high %v6038_v38, %v6054_v3  ;;  %v6110_v58 = vcombine.low %v6045_v6, %v6061_v24  ;;  %v6111_v48 = vcombine.high %v6045_v6, %v6061_v24 }
 0x936   : > { %v5958_v30 = vcombine.low %v10070_v43, %v10052_v59  ;;  %v5959_v12 = vcombine.high %v10070_v43, %v10052_v59  ;;  %v5974_v55 = vcombine.low %v10073_v1, %v10064_v47  ;;  %v5975_v52 = vcombine.high %v10073_v1, %v10064_v47 }
 0x937   : > { %v6102_v62 = vrot.slane %v6094_v57, %v10635_v17  ;;  %v6109_v39 = vrot.slane %v6095_v28, %v10635_v17  ;;  %v6118_v46 = vrot.slane %v6110_v58, %v10635_v17  ;;  %v10637_v28 = vld [vmem:[#allocation32_spill] sm:$0xff] }
 0x938   : > { %v5879_v0 = vpop.permute.xlu1 %5878  ;;  %v10106_v14 = vrot.slane %v5958_v30, %v10635_v17  ;;  %v10639_v30 = vld [vmem:[#allocation36_spill] sm:$0xff]  ;;  %v5982_v59 = vrot.slane %v5974_v55, %v10635_v17 }
 0x939   : > { %v10032_v8 = vpop.permute.xlu0 %5876 }
 0x93c   : > { %v5885_v27 = vpop.permute.xlu1 %5884 }
 0x93d   : > { %v5883_v56 = vpop.permute.xlu0 %5882  ;;  %v6062_v10 = vcombine.low %v5873_v18, %v5885_v27  ;;  %v6063_v32 = vcombine.high %v5873_v18, %v5885_v27 }
 0x93e   : > { %v5926_v29 = vcombine.low %v10020_v61, %v5883_v56  ;;  %v5927_v22 = vcombine.high %v10020_v61, %v5883_v56 }
 0x93f   : > { %v6070_v11 = vrot.slane %v6062_v10, %v10634_v53  ;;  %v6077_v19 = vrot.slane %v6063_v32, %v10634_v53  ;;  %v10636_v32 = vld [vmem:[#allocation41_spill] sm:$0xff] }
 0x940   : > { %v5891_v15 = vpop.permute.xlu1 %5890  ;;  %v10099_v2 = vrot.slane %v5926_v29, %v10634_v53  ;;  %v10109_v63 = vrot.slane %v5927_v22, %v10634_v53 }
 0x941   : > { %v6078_v31 = vcombine.low %v5879_v0, %v5891_v15  ;;  %v6079_v44 = vcombine.high %v5879_v0, %v5891_v15  ;;  %v5889_v34 = vpop.permute.xlu0 %5888  ;;  %v6125_v0 = vrot.slane %v6111_v48, %v10635_v17  ;;  %v10638_v48 = vld [vmem:[#allocation34_spill] sm:$0xff] }
 0x942   : > { %v5942_v45 = vcombine.low %v10032_v8, %v5889_v34  ;;  %v5943_v7 = vcombine.high %v10032_v8, %v5889_v34  ;;  %v10641_v34 = vld [vmem:[#allocation46_spill] sm:$0xff] }
 0x943   : > { %v6086_v13 = vrot.slane %v6078_v31, %v10634_v53  ;;  %v6093_v40 = vrot.slane %v6079_v44, %v10634_v53  ;;  %v10640_v31 = vld [vmem:[#allocation33_spill] sm:$0xff] }
 0x944   : > { %v10093_v41 = vrot.slane %v5942_v45, %v10634_v53  ;;  %v10112_v36 = vrot.slane %v5943_v7, %v10634_v53  ;;  %v10642_v45 = vld [vmem:[#allocation48_spill] sm:$0xff] }
 0x945   : > { %v6126_v18 = vcombine.low %v6070_v11, %v6086_v13  ;;  %v6127_v42 = vcombine.high %v6070_v11, %v6086_v13  ;;  %v6142_v9 = vcombine.low %v6077_v19, %v6093_v40  ;;  %v6143_v33 = vcombine.high %v6077_v19, %v6093_v40  ;;  %v10643_v19 = vld [vmem:[#allocation50_spill] sm:$0xff] }
 0x946   : > { %v5990_v60 = vcombine.low %v10099_v2, %v10093_v41 }
 0x947   : > { %v6134_v61 = vrot.slane %v6126_v18, %v10635_v17  ;;  %v6141_v21 = vrot.slane %v6127_v42, %v10635_v17  ;;  %v6150_v8 = vrot.slane %v6142_v9, %v10635_v17  ;;  %v6157_v26 = vrot.slane %v6143_v33, %v10635_v17 }
 0x949   : > { %v6158_v37 = vcombine.low %v6102_v62, %v6134_v61  ;;  %v6159_v3 = vcombine.high %v6102_v62, %v6134_v61  ;;  %v6160_v24 = vcombine.low %v6109_v39, %v6141_v21  ;;  %v6161_v27 = vcombine.high %v6109_v39, %v6141_v21 }
 0x94a   : > { %v6162_v56 = vcombine.low %v6118_v46, %v6150_v8  ;;  %v6163_v38 = vcombine.high %v6118_v46, %v6150_v8  ;;  %v6164_v6 = vcombine.low %v6125_v0, %v6157_v26  ;;  %v6165_v10 = vcombine.high %v6125_v0, %v6157_v26 }
 0x94b   : > { %v6174_v57 = vmul.f32 %v6158_v37, %v10636_v32  ;;  %v6175_v58 = vmul.f32 %v6159_v3, %v10637_v28  ;;  %v6176_v15 = vmul.f32 %v6160_v24, %v10638_v48  ;;  %v6177_v53 = vmul.f32 %v6161_v27, %v10639_v30 }
 0x94c   : > { %v6178_v44 = vmul.f32 %v6162_v56, %v10640_v31  ;;  %v6179_v29 = vmul.f32 %v6163_v38, %v10641_v34  ;;  %v6180_v11 = vmul.f32 %v6164_v6, %v10642_v45  ;;  %v6181_v13 = vmul.f32 %v6165_v10, %v10643_v19 }
 0x94d   : > { %v6238_v40 = vsel %vm1967_vm3, %v6174_v57, 0.0  ;;  %v6245_v62 = vsel %vm1967_vm3, %v6175_v58, 0.0  ;;  %v6252_v22 = vsel %vm1967_vm3, %v6176_v15, 0.0  ;;  %v6259_v7 = vsel %vm1967_vm3, %v6177_v53, 0.0 }
 0x94e   : > { %v6239_v18 = vrot.slane %v6238_v40, 4  ;;  %v6246_v42 = vrot.slane %v6245_v62, 4  ;;  %v6253_v9 = vrot.slane %v6252_v22, 4  ;;  %v6260_v33 = vrot.slane %v6259_v7, 4 }
 0x94f   : > { %v6266_v39 = vsel %vm1967_vm3, %v6178_v44, 0.0  ;;  %v6273_v46 = vsel %vm1967_vm3, %v6179_v29, 0.0  ;;  %v6280_v0 = vsel %vm1967_vm3, %v6180_v11, 0.0  ;;  %v6287_v61 = vsel %vm1967_vm3, %v6181_v13, 0.0 }
 0x950   : > { %v6240_v21 = vadd.f32 %v6239_v18, %v6238_v40  ;;  %v6247_v8 = vadd.f32 %v6246_v42, %v6245_v62  ;;  %v6254_v26 = vadd.f32 %v6253_v9, %v6252_v22  ;;  %v6261_v37 = vadd.f32 %v6260_v33, %v6259_v7 }
 0x951   : > { %v6267_v3 = vrot.slane %v6266_v39, 4  ;;  %v6274_v24 = vrot.slane %v6273_v46, 4  ;;  %v6281_v27 = vrot.slane %v6280_v0, 4  ;;  %v6288_v56 = vrot.slane %v6287_v61, 4 }
 0x952   : > { %v6241_v38 = vrot.slane %v6240_v21, 2  ;;  %v6248_v6 = vrot.slane %v6247_v8, 2  ;;  %v6255_v10 = vrot.slane %v6254_v26, 2  ;;  %v6262_v32 = vrot.slane %v6261_v37, 2 }
 0x953   : > { %v6268_v57 = vadd.f32 %v6267_v3, %v6266_v39  ;;  %v6275_v28 = vadd.f32 %v6274_v24, %v6273_v46  ;;  %v6282_v58 = vadd.f32 %v6281_v27, %v6280_v0  ;;  %v5991_v48 = vcombine.high %v10099_v2, %v10093_v41 }
 0x954   : > { %v6242_v15 = vadd.f32 %v6241_v38, %v6240_v21  ;;  %v6249_v30 = vadd.f32 %v6248_v6, %v6247_v8  ;;  %v6256_v53 = vadd.f32 %v6255_v10, %v6254_v26  ;;  %v6263_v31 = vadd.f32 %v6262_v32, %v6261_v37  ;;  %v10645_v32 = vld [vmem:[#allocation44_spill] sm:$0xff] }
 0x955   : > { %v6269_v44 = vrot.slane %v6268_v57, 2  ;;  %v6276_v34 = vrot.slane %v6275_v28, 2  ;;  %v6283_v29 = vrot.slane %v6282_v58, 2  ;;  %v6289_v45 = vadd.f32 %v6288_v56, %v6287_v61 }
 0x956   : > { %v6243_v11 = vrot.slane %v6242_v15, 1  ;;  %v6250_v19 = vrot.slane %v6249_v30, 1  ;;  %v6257_v13 = vrot.slane %v6256_v53, 1  ;;  %v6006_v40 = vcombine.low %v10109_v63, %v10112_v36 }
 0x957   : > { %v5973_v62 = vrot.slane %v5959_v12, %v10635_v17  ;;  %v6264_v22 = vrot.slane %v6263_v31, 1  ;;  %v6270_v7 = vadd.f32 %v6269_v44, %v6268_v57  ;;  %v6007_v18 = vcombine.high %v10109_v63, %v10112_v36 }
 0x958   : > { %v6244_v42 = vadd.f32 %v6243_v11, %v6242_v15  ;;  %v6251_v9 = vadd.f32 %v6250_v19, %v6249_v30  ;;  %v5998_v33 = vrot.slane %v5990_v60, %v10635_v17  ;;  %v6005_v39 = vrot.slane %v5991_v48, %v10635_v17  ;;  %v10647_v48 = vld [vmem:[#allocation39_spill] sm:$0xff]  ;;  %v10648_v30 = vld [vmem:[#allocation45_spill] sm:$0xff] }
 0x959   : > { %v6258_v46 = vadd.f32 %v6257_v13, %v6256_v53  ;;  %v6277_v0 = vadd.f32 %v6276_v34, %v6275_v28  ;;  %v6284_v61 = vadd.f32 %v6283_v29, %v6282_v58  ;;  %v6290_v21 = vrot.slane %v6289_v45, 2  ;;  %v10646_v28 = vld [vmem:[#allocation38_spill] sm:$0xff]  ;;  %v10650_v34 = vld [vmem:[#allocation49_spill] sm:$0xff] }
 0x95a   : > { %v6420_v43 = vadd.f32 %v10030_v54, %v6244_v42  ;;  %v6421_v12 = vadd.f32 %v10038_v4, %v6251_v9  ;;  %v6014_v63 = vrot.slane %v6006_v40, %v10635_v17  ;;  %v5989_v41 = vrot.slane %v5975_v52, %v10635_v17  ;;  %v10651_v40 = vld [vmem:[#allocation51_spill] sm:$0xff] }
 0x95b   : > { %v6265_v2 = vadd.f32 %v6264_v22, %v6263_v31  ;;  %v6271_v36 = vrot.slane %v6270_v7, 1  ;;  %v6021_v60 = vrot.slane %v6007_v18, %v10635_v17  ;;  %v6022_v8 = vcombine.low %v10106_v14, %v5998_v33  ;;  %v10649_v31 = vld [vmem:[#allocation47_spill] sm:$0xff] }
 0x95c   : > { %7808 = vtanh.f32 %v6420_v43  ;;  %v6023_v55 = vcombine.high %v10106_v14, %v5998_v33  ;;  %v6024_v26 = vcombine.low %v5973_v62, %v6005_v39  ;;  %v6278_v37 = vrot.slane %v6277_v0, 1  ;;  %v10644_v14 = vld [vmem:[#allocation40_spill] sm:$0xff] }
 0x95d   : > { %v6285_v3 = vrot.slane %v6284_v61, 1  ;;  %v10161_v24 = vadd.f32 %v6290_v21, %v6289_v45  ;;  %v6422_v27 = vadd.f32 %v6392_v23, %v6258_v46  ;;  %7810 = vtanh.f32 %v6421_v12 }
 0x95e   : > { %v6025_v47 = vcombine.high %v5973_v62, %v6005_v39  ;;  %v6026_v1 = vcombine.low %v5982_v59, %v6014_v63  ;;  %v6027_v52 = vcombine.high %v5982_v59, %v6014_v63  ;;  %v6272_v56 = vadd.f32 %v6271_v36, %v6270_v7 }
 0x95f   : > { %v6423_v17 = vadd.f32 %v6394_v51, %v6265_v2  ;;  %v6028_v38 = vcombine.low %v5989_v41, %v6021_v60  ;;  %v6166_v6 = vmul.f32 %v6022_v8, %v10644_v14  ;;  %v6029_v10 = vcombine.high %v5989_v41, %v6021_v60 }
 0x960   : > { %v6167_v57 = vmul.f32 %v6023_v55, %v10645_v32  ;;  %v6168_v58 = vmul.f32 %v6024_v26, %v10646_v28  ;;  %v6169_v54 = vmul.f32 %v6025_v47, %v10647_v48  ;;  %v6279_v23 = vadd.f32 %v6278_v37, %v6277_v0 }
 0x961   : > { %v6286_v15 = vadd.f32 %v6285_v3, %v6284_v61  ;;  %7812 = vtanh.f32 %v6422_v27  ;;  %v6170_v53 = vmul.f32 %v6026_v1, %v10648_v30  ;;  %v6171_v44 = vmul.f32 %v6027_v52, %v10649_v31 }
 0x962   : > { %v6172_v4 = vmul.f32 %v6028_v38, %v10650_v34  ;;  %v6182_v51 = vsel %vm1967_vm3, %v6166_v6, 0.0  ;;  %v6189_v29 = vsel %vm1967_vm3, %v6167_v57, 0.0  ;;  %v6424_v45 = vadd.f32 %v10035_v20, %v6272_v56 }
 0x963   : > { %v6183_v11 = vrot.slane %v6182_v51, 4  ;;  %v6190_v19 = vrot.slane %v6189_v29, 4  ;;  %v6196_v13 = vsel %vm1967_vm3, %v6168_v58, 0.0  ;;  %v6173_v62 = vmul.f32 %v6029_v10, %v10651_v40 }
 0x964   : > { %v6197_v22 = vrot.slane %v6196_v13, 4  ;;  %v6203_v7 = vsel %vm1967_vm3, %v6169_v54, 0.0  ;;  %v6210_v18 = vsel %vm1967_vm3, %v6170_v53, 0.0  ;;  %7814 = vtanh.f32 %v6423_v17 }
 0x965   : > { %v6184_v42 = vadd.f32 %v6183_v11, %v6182_v51  ;;  %v6191_v9 = vadd.f32 %v6190_v19, %v6189_v29  ;;  %v6204_v33 = vrot.slane %v6203_v7, 4  ;;  %v6211_v39 = vrot.slane %v6210_v18, 4 }
 0x966   : > { %v7809_v46 = vpop.eup %7808  ;;  %v6198_v0 = vadd.f32 %v6197_v22, %v6196_v13  ;;  %v6217_v61 = vsel %vm1967_vm3, %v6171_v44, 0.0  ;;  %v6224_v21 = vsel %vm1967_vm3, %v6172_v4, 0.0  ;;  %v6425_v2 = vadd.f32 %v10047_v5, %v6279_v23 }
 0x967   : > { %v6185_v59 = vrot.slane %v6184_v42, 2  ;;  %v6192_v43 = vrot.slane %v6191_v9, 2  ;;  %v6205_v12 = vadd.f32 %v6204_v33, %v6203_v7  ;;  %v6212_v63 = vadd.f32 %v6211_v39, %v6210_v18  ;;  %6620 = vrot.lane.b32.xlu0 %v7809_v46, %s7886_s24  ;;  %v7811_v41 = vpop.eup %7810 }
 0x968   : > { %v6199_v36 = vrot.slane %v6198_v0, 2  ;;  %v6218_v60 = vrot.slane %v6217_v61, 4  ;;  %v6231_v8 = vsel %vm1967_vm3, %v6173_v62, 0.0  ;;  %v6225_v3 = vrot.slane %v6224_v21, 4  ;;  %6622 = vrot.lane.b32.xlu1 %v7811_v41, %s7886_s24 }
 0x969   : > { %v6186_v55 = vadd.f32 %v6185_v59, %v6184_v42  ;;  %v6193_v26 = vadd.f32 %v6192_v43, %v6191_v9  ;;  %v6206_v37 = vrot.slane %v6205_v12, 2  ;;  %7816 = vtanh.f32 %v6424_v45 }
 0x96a   : > { %v6200_v27 = vadd.f32 %v6199_v36, %v6198_v0  ;;  %v6213_v47 = vrot.slane %v6212_v63, 2  ;;  %v6219_v1 = vadd.f32 %v6218_v60, %v6217_v61  ;;  %v6343_v56 = vcombine.high %v10059_v50, %v10059_v50 }
 0x96b   : > { %v7813_v52 = vpop.eup %7812  ;;  %v6345_v17 = vcombine.high %v10067_v49, %v10067_v49  ;;  %v6194_v38 = vrot.slane %v6193_v26, 1  ;;  %v6207_v14 = vadd.f32 %v6206_v37, %v6205_v12  ;;  %v6292_v6 = vrot.slane %v10161_v24, 1 }
 0x96c   : > { %v6426_v10 = vadd.f32 %v6393_v35, %v6286_v15  ;;  %v6201_v32 = vrot.slane %v6200_v27, 1  ;;  %v6232_v57 = vrot.slane %v6231_v8, 4  ;;  %v6187_v28 = vrot.slane %v6186_v55, 1  ;;  %6624 = vrot.lane.b32.xlu1 %v7813_v52, %s7886_s24 }
 0x96d   : > { %v6195_v58 = vadd.f32 %v6194_v38, %v6193_v26  ;;  %v6208_v48 = vrot.slane %v6207_v14, 1  ;;  %v6226_v54 = vadd.f32 %v6225_v3, %v6224_v21  ;;  %7818 = vtanh.f32 %v6425_v2 }
 0x96e   : > { %v6202_v23 = vadd.f32 %v6201_v32, %v6200_v27  ;;  %v6214_v30 = vadd.f32 %v6213_v47, %v6212_v63  ;;  %v6220_v53 = vrot.slane %v6219_v1, 2  ;;  %v7815_v34 = vpop.eup %7814  ;;  %v6395_v20 = vcombine.high %v10047_v5, %v10047_v5 }
 0x96f   : > { %v6209_v31 = vadd.f32 %v6208_v48, %v6207_v14  ;;  %v6413_v44 = vadd.f32 %v10067_v49, %v6195_v58  ;;  %v6293_v35 = vadd.f32 %v6292_v6, %v10161_v24  ;;  %7820 = vtanh.f32 %v6426_v10 }
 0x970   : > { %v6298_v15 = vcombine.high %v10025_v16, %v10025_v16  ;;  %v6188_v4 = vadd.f32 %v6187_v28, %v6186_v55  ;;  %v6227_v51 = vrot.slane %v6226_v54, 2  ;;  %v6233_v29 = vadd.f32 %v6232_v57, %v6231_v8  ;;  %6626 = vrot.lane.b32.xlu1 %v7815_v34, %s7886_s24 }
 0x971   : > { %v6414_v45 = vadd.f32 %v6343_v56, %v6202_v23  ;;  %v6215_v11 = vrot.slane %v6214_v30, 1  ;;  %v6221_v19 = vadd.f32 %v6220_v53, %v6219_v1  ;;  %v6415_v13 = vadd.f32 %v6345_v17, %v6209_v31  ;;  %v6527_v1 = vpop.permute.xlu1 %6526  ;;  %v6511_v17 = vpop.permute.xlu0 %6510 }
 0x972   : > { %7822 = vtanh.f32 %v6413_v44  ;;  %v6312_v40 = vrot.slane %v6298_v15, %v10633_v25  ;;  %v6427_v5 = vadd.f32 %v6395_v20, %v6293_v35  ;;  %v6228_v62 = vadd.f32 %v6227_v51, %v6226_v54  ;;  %v10652_v20 = vld [vmem:[#allocation53_spill] sm:$0xff]  ;;  %v10653_v51 = vld [vmem:[#allocation59_spill] sm:$0xff] }
 0x973   : > { %v7817_v49 = vpop.eup %7816  ;;  %v6234_v24 = vrot.slane %v6233_v29, 2  ;;  %7824 = vtanh.f32 %v6414_v45  ;;  %v6216_v16 = vadd.f32 %v6215_v11, %v6214_v30  ;;  %v6222_v22 = vrot.slane %v6221_v19, 1  ;;  %v10654_v11 = vld [vmem:[#allocation62_spill] sm:$0xff] }
 0x974   : > { %6628 = vrot.lane.b32.xlu1 %v7817_v49, %s7886_s24  ;;  %v6412_v7 = vadd.f32 %v10059_v50, %v6188_v4  ;;  %7826 = vtanh.f32 %v6415_v13  ;;  %v6314_v42 = vcombine.high %v6312_v40, %v6312_v40  ;;  %v6328_v9 = vrot.slane %v6312_v40, %v10633_v25  ;;  %v10655_v40 = vld [vmem:[#allocation67_spill] sm:$0xff] }
 0x975   : > { %7828 = vtanh.f32 %v6427_v5  ;;  %v6235_v33 = vadd.f32 %v6234_v24, %v6233_v29  ;;  %v6223_v46 = vadd.f32 %v6222_v22, %v6221_v19  ;;  %v6229_v0 = vrot.slane %v6228_v62, 1  ;;  %v6529_v52 = vpop.permute.xlu1 %6528  ;;  %v10221_v14 = vpop.permute.xlu0 %6512  ;;  %v10657_v22 = vld [vmem:[#allocation72_spill] sm:$0xff] }
 0x976   : > { %v6416_v61 = vadd.f32 %v6328_v9, %v6216_v16  ;;  %7830 = vtanh.f32 %v6412_v7  ;;  %v6342_v59 = vrot.slane %v6314_v42, %v10633_v25  ;;  %v6344_v43 = vcombine.high %v6328_v9, %v6328_v9 }
 0x977   : > { %v7819_v18 = vpop.eup %7818  ;;  %v6230_v50 = vadd.f32 %v6229_v0, %v6228_v62  ;;  %v6236_v12 = vrot.slane %v6235_v33, 1  ;;  %v6581_v35 = vsub.f32 1.0, %v10652_v20  ;;  %v6582_v29 = vsub.f32 1.0, %v10653_v51  ;;  %v10656_v62 = vld [vmem:[#allocation56_spill] sm:$0xff] }
 0x978   : > { %6630 = vrot.lane.b32.xlu1 %v7819_v18, %s7886_s24  ;;  %v6417_v63 = vadd.f32 %v6342_v59, %v6223_v46  ;;  %7832 = vtanh.f32 %v6416_v61  ;;  %v6346_v36 = vcombine.high %v6342_v59, %v6342_v59  ;;  %v6583_v19 = vsub.f32 1.0, %v10654_v11 }
 0x979   : > { %v7821_v39 = vpop.eup %7820  ;;  %v6237_v60 = vadd.f32 %v6236_v12, %v6235_v33  ;;  %v6418_v8 = vadd.f32 %v6344_v43, %v6230_v50  ;;  %v6515_v56 = vpop.permute.xlu1 %6514  ;;  %v6565_v13 = vmul.f32 %v10652_v20, %v6527_v1  ;;  %v6584_v5 = vsub.f32 1.0, %v10655_v40 }
 0x97a   : > { %7834 = vtanh.f32 %v6417_v63  ;;  %v6509_v10 = vpop.permute.xlu0 %6508  ;;  %v6580_v24 = vsub.f32 1.0, %v10656_v62  ;;  %v6585_v7 = vsub.f32 1.0, %v10657_v22  ;;  %v6566_v18 = vmul.f32 %v10653_v51, %v6529_v52 }
 0x97b   : > { %v6419_v26 = vadd.f32 %v6346_v36, %v6237_v60  ;;  %7836 = vtanh.f32 %v6418_v8  ;;  %v10660_v60 = vld [vmem:[#allocation61_spill] sm:$0xff] }
 0x97c   : > { %v7823_v21 = vpop.eup %7822  ;;  %6632 = vrot.lane.b32.xlu1 %v7821_v39, %s7886_s24  ;;  %v10658_v39 = vld [vmem:[#allocation76_spill] sm:$0xff]  ;;  %v6574_v8 = vsub.f32 1.0, %v10660_v60 }
 0x97d   : > { %6606 = vrot.lane.b32.xlu0 %v7823_v21, %s7886_s24  ;;  %v7825_v41 = vpop.eup %7824  ;;  %7838 = vtanh.f32 %v6419_v26  ;;  %v6531_v38 = vpop.permute.xlu1 %6530  ;;  %v6586_v46 = vsub.f32 1.0, %v10658_v39  ;;  %v10659_v21 = vld [vmem:[#allocation54_spill] sm:$0xff] }
 0x97e   : > { %v7827_v2 = vpop.eup %7826  ;;  %v6525_v57 = vpop.permute.xlu0 %6524  ;;  %v6567_v61 = vmul.f32 %v10654_v11, %v6531_v38  ;;  %v6573_v59 = vsub.f32 1.0, %v10659_v21 }
 0x97f   : > { %v7829_v25 = vpop.eup %7828  ;;  %v6564_v26 = vmul.f32 %v10656_v62, %v6525_v57  ;;  %v6558_v62 = vmul.f32 %v10660_v60, %v10221_v14 }
 0x980   : > { %6610 = vrot.lane.b32.xlu1 %v7827_v2, %s7886_s24  ;;  %v7831_v55 = vpop.eup %7830 }
 0x981   : > { %6608 = vrot.lane.b32.xlu0 %v7825_v41, %s7886_s24  ;;  %v6533_v6 = vpop.permute.xlu1 %6532 }
 0x982   : > { %v7833_v37 = vpop.eup %7832  ;;  %v10223_v58 = vpop.permute.xlu0 %6516  ;;  %v6568_v50 = vmul.f32 %v10655_v40, %v6533_v6  ;;  %v10662_v6 = vld [vmem:[#allocation65_spill] sm:$0xff] }
 0x984   : > { %6634 = vrot.lane.b32.xlu1 %v7829_v25, %s7886_s24  ;;  %v7835_v3 = vpop.eup %7834  ;;  %v10661_v25 = vld [vmem:[#allocation63_spill] sm:$0xff] }
 0x985   : > { %6604 = vrot.lane.b32.xlu0 %v7831_v55, %s7886_s24  ;;  %v7837_v27 = vpop.eup %7836  ;;  %v6535_v32 = vpop.permute.xlu1 %6534  ;;  %v6572_v55 = vsub.f32 1.0, %v10661_v25  ;;  %v6556_v57 = vmul.f32 %v10661_v25, %v6509_v10  ;;  %v10664_v10 = vld [vmem:[#allocation68_spill] sm:$0xff] }
 0x986   : > { %v10225_v54 = vpop.permute.xlu0 %6518  ;;  %v6569_v2 = vmul.f32 %v10657_v22, %v6535_v32  ;;  %v6557_v32 = vmul.f32 %v10659_v21, %v6511_v17  ;;  %v6560_v14 = vmul.f32 %v10664_v10, %v10223_v58 }
 0x987   : > { %v7839_v47 = vpop.eup %7838 }
 0x989   : > { %6612 = vrot.lane.b32.xlu0 %v7833_v37, %s7886_s24  ;;  %v6537_v28 = vpop.permute.xlu1 %6536 }
 0x98a   : > { %v10227_v30 = vpop.permute.xlu0 %6520  ;;  %v6570_v37 = vmul.f32 %v10658_v39, %v6537_v28 }
 0x98d   : > { %6614 = vrot.lane.b32.xlu0 %v7835_v3, %s7886_s24  ;;  %v6539_v48 = vpop.permute.xlu1 %6538 }
 0x98e   : > { %v10229_v44 = vpop.permute.xlu0 %6522 }
 0x991   : > { %6616 = vrot.lane.b32.xlu0 %v7837_v27, %s7886_s24 }
 0x995   : > { %6618 = vrot.lane.b32.xlu0 %v7839_v47, %s7886_s24 }
 0x9d9   : > { %v6621_v15 = vpop.permute.xlu0 %6620 }
 0x9da   : > { %v6623_v23 = vpop.permute.xlu1 %6622  ;;  %v6660_v12 = vmul.f32 %v6621_v15, %v6580_v24  ;;  %v6559_v15 = vmul.f32 %v10662_v6, %v6515_v56  ;;  %v6576_v24 = vsub.f32 1.0, %v10664_v10 }
 0x9db   : > { %v6661_v4 = vmul.f32 %v6623_v23, %v6581_v35  ;;  %v6575_v23 = vsub.f32 1.0, %v10662_v6 }
 0x9dd   : > { %v6677_v42 = vadd.f32 %v6661_v4, %v6565_v13 }
 0x9de   : > { %v6625_v53 = vpop.permute.xlu1 %6624 }
 0x9df   : > { %v6662_v49 = vmul.f32 %v6625_v53, %v6582_v29  ;;  %v6714_v3 = vrot.slane %v6677_v42, 7  ;;  %v10663_v53 = vld [vmem:[#allocation81_spill] sm:$0xff] }
 0x9e0   : > { %v6571_v51 = vmul.f32 %v10663_v53, %v6539_v48 }
 0x9e1   : > { %v6678_v63 = vadd.f32 %v6662_v49, %v6566_v18 }
 0x9e2   : > { %v6627_v31 = vpop.permute.xlu1 %6626 }
 0x9e3   : > { %v6663_v16 = vmul.f32 %v6627_v31, %v6583_v19  ;;  %v6587_v31 = vsub.f32 1.0, %v10663_v53  ;;  %v6716_v20 = vrot.slane %v6678_v63, 6 }
 0x9e5   : > { %v6679_v36 = vadd.f32 %v6663_v16, %v6567_v61 }
 0x9e6   : > { %v6629_v34 = vpop.permute.xlu1 %6628 }
 0x9e7   : > { %v6664_v33 = vmul.f32 %v6629_v34, %v6584_v5  ;;  %v6676_v34 = vadd.f32 %v6660_v12, %v6564_v26  ;;  %v6718_v28 = vrot.slane %v6679_v36, 5  ;;  %v10666_v26 = vld [vmem:[#allocation78_spill] sm:$0xff] }
 0x9e9   : > { %v6680_v47 = vadd.f32 %v6664_v33, %v6568_v50  ;;  %v6715_v29 = vsel %vm2475_vm6, %v6714_v3, %v6676_v34 }
 0x9ea   : > { %v6631_v45 = vpop.permute.xlu1 %6630  ;;  %v6717_v56 = vsel %vm2478_vm7, %v6716_v20, %v6715_v29 }
 0x9eb   : > { %v6665_v43 = vmul.f32 %v6631_v45, %v6585_v7  ;;  %v6720_v11 = vrot.slane %v6680_v47, 4  ;;  %v6719_v48 = vsel %vm2481_vm8, %v6718_v28, %v6717_v56  ;;  %v6562_v47 = vmul.f32 %v10666_v26, %v10227_v30 }
 0x9ed   : > { %v6681_v38 = vadd.f32 %v6665_v43, %v6569_v2  ;;  %v10665_v43 = vld [vmem:[#allocation74_spill] sm:$0xff] }
 0x9ee   : > { %v6633_v0 = vpop.permute.xlu1 %6632  ;;  %v6577_v50 = vsub.f32 1.0, %v10665_v43  ;;  %v6561_v60 = vmul.f32 %v10665_v43, %v10225_v54  ;;  %v10667_v54 = vld [vmem:[#allocation82_spill] sm:$0xff] }
 0x9ef   : > { %v6607_v9 = vpop.permute.xlu0 %6606  ;;  %v6666_v41 = vmul.f32 %v6633_v0, %v6586_v46  ;;  %v6722_v17 = vrot.slane %v6681_v38, 3 }
 0x9f0   : > { %v6653_v52 = vmul.f32 %v6607_v9, %v6573_v59  ;;  %v6721_v9 = vsel %vm2484_vm9, %v6720_v11, %v6719_v48 }
 0x9f1   : > { %v6682_v35 = vadd.f32 %v6666_v41, %v6570_v37  ;;  %v6723_v46 = vsel %vm2487_vm11, %v6722_v17, %v6721_v9  ;;  %v6578_v37 = vsub.f32 1.0, %v10666_v26 }
 0x9f2   : > { %v6611_v1 = vpop.permute.xlu1 %6610  ;;  %v6669_v49 = vadd.f32 %v6653_v52, %v6557_v32 }
 0x9f3   : > { %v6609_v27 = vpop.permute.xlu0 %6608  ;;  %v6655_v4 = vmul.f32 %v6611_v1, %v6575_v23  ;;  %v6724_v16 = vrot.slane %v6682_v35, 2  ;;  %v6579_v23 = vsub.f32 1.0, %v10667_v54 }
 0x9f4   : > { %v6654_v45 = vmul.f32 %v6609_v27, %v6574_v8  ;;  %v6700_v39 = vrot.slane %v6669_v49, 7 }
 0x9f5   : > { %v6671_v7 = vadd.f32 %v6655_v4, %v6559_v15  ;;  %v6725_v21 = vsel %vm2490_vm10, %v6724_v16, %v6723_v46 }
 0x9f6   : > { %v6635_v13 = vpop.permute.xlu1 %6634  ;;  %v6670_v42 = vadd.f32 %v6654_v45, %v6558_v62 }
 0x9f7   : > { %v6605_v19 = vpop.permute.xlu0 %6604  ;;  %v6667_v5 = vmul.f32 %v6635_v13, %v6587_v31  ;;  %v6704_v12 = vrot.slane %v6671_v7, 5  ;;  %v6563_v31 = vmul.f32 %v10667_v54, %v10229_v44 }
 0x9f8   : > { %v6652_v40 = vmul.f32 %v6605_v19, %v6572_v55  ;;  %v6702_v41 = vrot.slane %v6670_v42, 6 }
 0x9f9   : > { %v6683_v18 = vadd.f32 %v6667_v5, %v6571_v51 }
 0x9fa   : > { %v6668_v22 = vadd.f32 %v6652_v40, %v6556_v57 }
 0x9fb   : > { %v6613_v33 = vpop.permute.xlu0 %6612  ;;  %v6726_v61 = vrot.slane %v6683_v18, 1 }
 0x9fc   : > { %v6656_v0 = vmul.f32 %v6613_v33, %v6576_v24  ;;  %v6701_v59 = vsel %vm2475_vm6, %v6700_v39, %v6668_v22 }
 0x9fd   : > { %v6727_v63 = vsel %vm2493_vm12, %v6726_v61, %v6725_v21  ;;  %v6703_v58 = vsel %vm2478_vm7, %v6702_v41, %v6701_v59 }
 0x9fe   : > { %v6672_v2 = vadd.f32 %v6656_v0, %v6560_v14  ;;  %6730 = vrot.lane.b32.xlu1 %v6727_v63, %s7898_s28  ;;  %v6705_v55 = vsel %vm2481_vm8, %v6704_v12, %v6703_v58 }
 0x9ff   : > { %v6615_v36 = vpop.permute.xlu0 %6614 }
 0xa00   : > { %v6657_v8 = vmul.f32 %v6615_v36, %v6577_v50  ;;  %v6706_v3 = vrot.slane %v6672_v2, 4 }
 0xa02   : > { %v6673_v25 = vadd.f32 %v6657_v8, %v6561_v60  ;;  %v6707_v52 = vsel %vm2484_vm9, %v6706_v3, %v6705_v55 }
 0xa03   : > { %v6617_v27 = vpop.permute.xlu0 %6616 }
 0xa04   : > { %v6658_v1 = vmul.f32 %v6617_v27, %v6578_v37  ;;  %v6708_v38 = vrot.slane %v6673_v25, 3 }
 0xa06   : > { %v6674_v6 = vadd.f32 %v6658_v1, %v6562_v47  ;;  %v6709_v34 = vsel %vm2487_vm11, %v6708_v38, %v6707_v52 }
 0xa07   : > { %v6619_v53 = vpop.permute.xlu0 %6618 }
 0xa08   : > { %v6659_v32 = vmul.f32 %v6619_v53, %v6579_v23  ;;  %v6710_v20 = vrot.slane %v6674_v6, 2 }
 0xa0a   : > { %v6675_v35 = vadd.f32 %v6659_v32, %v6563_v31  ;;  %v6711_v30 = vsel %vm2490_vm10, %v6710_v20, %v6709_v34 }
 0xa0c   : > { %v6712_v15 = vrot.slane %v6675_v35, 1 }
 0xa0e   : > { %v6713_v57 = vsel %vm2493_vm12, %v6712_v15, %v6711_v30 }
 0xa0f   : > { %6728 = vrot.lane.b32.xlu0 %v6713_v57, %s7898_s28 }
 0xa70   : > { %v6731_v28 = vpop.permute.xlu1 %6730 }
 0xa71   : > { %6735 = vst.msk [vmem:[#allocation2 + $0x8] sm:$0xff] %vm1967_vm3, %v6731_v28  ;;  %6737 = vst.msk [vmem:[%s7988_s25 + $0x8] sm:$0xff] %vm1967_vm3, %v6731_v28 }
 0xa81   : > { %v6729_v4 = vpop.permute.xlu0 %6728 }
 0xa82   : > { %6734 = vst.msk [vmem:[#allocation2] sm:$0xff] %vm1967_vm3, %v6729_v4  ;;  %6736 = vst.msk [vmem:[%s7988_s25] sm:$0xff] %vm1967_vm3, %v6729_v4 }
 0xa83 PF: > { %s18_s9 = sadd.s32 1, %s7880_s9   ;;  %s10668_s27 = smov %s7872_s29 }
 0xa84   : > { %p15_p8 = scmp.ge.s32.totalorder %s18_s9, 18   ;;  %s10669_s28 = smov %s7876_s30 }
 0xa85   : > { %s10670_s29 = smov %s10673_s10  ;;  %s10671_s30 = smov %s10677_s11 }
 0xa86   :  { %17 = sbr.rel (!%p15_p8) target bundleno = 3 (0x3), region = 89 }

</bundles_post_ra>
